<compile_context>
chip_gen: v7x
topology: tpu7x:2x2x1
jax: 0.10.0
libtpu: 0.0.40
codegen_flags: <defaults>
</compile_context>

<pallas_src>
import math
from functools import partial

import jax
import jax.numpy as jnp
import numpy as np
from jax.experimental import pallas as pl
from jax.experimental.pallas import tpu as pltpu

# Make the pure-JAX reference use full f32 matmuls so it matches the kernel's
# f32 MXU accumulation within tight tolerances.
jax.config.update("jax_default_matmul_precision", "highest")

# ----------------------------- model config ---------------------------------
INPUT_DIM = 4
D_MODEL = 32
NHEAD = 4
NUM_LAYERS = 2
DIM_FF = 64
NUM_CLASSES = 3
BATCH = 2
SEQ = 8
LN_EPS = 1e-5

HD = D_MODEL // NHEAD          # head dim = 8
BS = BATCH * SEQ               # collapsed activation rows = 16
NROWS = BATCH * NHEAD * SEQ    # head-major attention rows = 64
LANES = 128                    # slab / logits lane width
NEG_INF = -1e30                # off-block additive bias; exp() underflows to exactly 0


# -------------------------- packed weight slab layout ------------------------
def _build_layout():
    offs, row = {}, 0

    def add(name, rows):
        nonlocal row
        offs[name] = row
        row += ((rows + 7) // 8) * 8          # keep every section 8-row aligned

    add("w_proj", INPUT_DIM)
    add("pe_bias", BS)                         # b_proj + tiled positional encoding
    add("attn_bias", NROWS)                    # constant block-diagonal additive mask
    for l in range(NUM_LAYERS):
        add(f"w_in{l}", D_MODEL); add(f"b_in{l}", 1)
        add(f"w_out{l}", D_MODEL); add(f"b_out{l}", 1)
        add(f"ln1g{l}", 1); add(f"ln1b{l}", 1)
        add(f"w1{l}", D_MODEL); add(f"b1{l}", 1)
        add(f"w2{l}", DIM_FF); add(f"b2{l}", 1)
        add(f"ln2g{l}", 1); add(f"ln2b{l}", 1)
    add("w_h1", D_MODEL); add("b_h1", 1)
    add("w_h2", D_MODEL // 2); add("b_h2", 1)
    return offs, row


SLAB_OFFS, SLAB_ROWS = _build_layout()

# Column permutation of w_in: (q heads | k heads | v heads) -> (head, [q|k|v], hd)
_QKV_PERM = np.concatenate([
    np.concatenate([h * HD + np.arange(HD),
                    D_MODEL + h * HD + np.arange(HD),
                    2 * D_MODEL + h * HD + np.arange(HD)])
    for h in range(NHEAD)]).astype(np.int32)

# Fold the 1/sqrt(hd) attention scale into the (permuted) Q columns.
_QKV_SCALE = np.concatenate([
    np.concatenate([np.full(HD, 1.0 / math.sqrt(HD), np.float32),
                    np.ones(HD, np.float32), np.ones(HD, np.float32)])
    for _ in range(NHEAD)]).astype(np.float32)

# Constant block-diagonal additive bias (0 on the (head,batch) block, -1e30 off).
_blk = np.arange(NROWS) // SEQ
_ATTN_BIAS = np.where(_blk[:, None] == _blk[None, :], 0.0, NEG_INF).astype(np.float32)


def _pack_slab(params):
    """Pack every parameter into one lane-padded (SLAB_ROWS, 128) f32 slab."""
    slab = jnp.zeros((SLAB_ROWS, LANES), jnp.float32)

    def put(s, name, arr):
        arr = jnp.asarray(arr, jnp.float32)
        r = SLAB_OFFS[name]
        return s.at[r:r + arr.shape[0], :arr.shape[1]].set(arr)

    slab = put(slab, "w_proj", params["w_proj"])
    pe_bias = jnp.tile(params["pe"][:SEQ], (BATCH, 1)) + params["b_proj"]
    slab = put(slab, "pe_bias", pe_bias)
    slab = put(slab, "attn_bias", _ATTN_BIAS)
    for l, lp in enumerate(params["layers"]):
        slab = put(slab, f"w_in{l}", lp["w_in"][:, _QKV_PERM] * _QKV_SCALE)
        slab = put(slab, f"b_in{l}", lp["b_in"][:, _QKV_PERM] * _QKV_SCALE)
        slab = put(slab, f"w_out{l}", lp["w_out"])
        slab = put(slab, f"b_out{l}", lp["b_out"])
        slab = put(slab, f"ln1g{l}", lp["ln1_g"])
        slab = put(slab, f"ln1b{l}", lp["ln1_b"])
        slab = put(slab, f"w1{l}", lp["w1"])
        slab = put(slab, f"b1{l}", lp["b1"])
        slab = put(slab, f"w2{l}", lp["w2"])
        slab = put(slab, f"b2{l}", lp["b2"])
        slab = put(slab, f"ln2g{l}", lp["ln2_g"])
        slab = put(slab, f"ln2b{l}", lp["ln2_b"])
    slab = put(slab, "w_h1", params["w_h1"])
    slab = put(slab, "b_h1", params["b_h1"])
    slab = put(slab, "w_h2", params["w_h2"])   # zero-padded to 128 lanes
    slab = put(slab, "b_h2", params["b_h2"])
    return slab


def _layernorm(x, gamma, beta):
    mean = jnp.mean(x, axis=-1, keepdims=True)
    var = jnp.mean((x - mean) ** 2, axis=-1, keepdims=True)
    return (x - mean) * jax.lax.rsqrt(var + LN_EPS) * gamma + beta


# ------------------------------ fused kernel ---------------------------------
def fused_transformer_kernel(x_ref, slab_ref, out_ref, attn_ref):
    """Whole forward pass in one grid-less kernel invocation.

    x_ref    : (B*S, INPUT_DIM)  collapsed input
    slab_ref : (SLAB_ROWS, 128)  packed weights/biases/PE/mask
    out_ref  : (B, 128)          lane-padded logits (first NUM_CLASSES lanes valid)
    attn_ref : (L, NROWS, NROWS) full attention probabilities per layer
    """
    f32 = jnp.float32
    g3 = 3 * HD

    def ld(name, rows, cols):
        r = SLAB_OFFS[name]
        return slab_ref[r:r + rows, 0:cols]

    w_proj = ld("w_proj", INPUT_DIM, D_MODEL)
    pe_bias = ld("pe_bias", BS, D_MODEL)           # b_proj + positional encoding (tiled)
    attn_bias = ld("attn_bias", NROWS, NROWS)      # 0 / -1e30 block-diagonal additive mask

    # input projection + positional encoding (bias folded)
    h = jnp.dot(x_ref[...], w_proj, preferred_element_type=f32) + pe_bias

    for l in range(NUM_LAYERS):
        w_in = ld(f"w_in{l}", D_MODEL, 3 * D_MODEL)
        b_in = ld(f"b_in{l}", 1, 3 * D_MODEL)
        w_out = ld(f"w_out{l}", D_MODEL, D_MODEL)
        b_out = ld(f"b_out{l}", 1, D_MODEL)
        ln1g = ld(f"ln1g{l}", 1, D_MODEL); ln1b = ld(f"ln1b{l}", 1, D_MODEL)
        w1 = ld(f"w1{l}", D_MODEL, DIM_FF); b1 = ld(f"b1{l}", 1, DIM_FF)
        w2 = ld(f"w2{l}", DIM_FF, D_MODEL); b2 = ld(f"b2{l}", 1, D_MODEL)
        ln2g = ld(f"ln2g{l}", 1, D_MODEL); ln2b = ld(f"ln2b{l}", 1, D_MODEL)

        # Fused QKV projection; columns are host-permuted to (head, {q,k,v}, hd)
        # and the Q columns are pre-scaled by 1/sqrt(hd).
        qkv = jnp.dot(h, w_in, preferred_element_type=f32) + b_in        # (BS, 3D)

        # Single head-major stack: row g = head*BS + (b*SEQ + s), cols = [q|k|v].
        hm = jnp.concatenate(
            [qkv[:, hh * g3:(hh + 1) * g3] for hh in range(NHEAD)], axis=0)  # (NROWS, 3*HD)
        q_r = hm[:, 0:HD]
        k_r = hm[:, HD:2 * HD]
        v_r = hm[:, 2 * HD:3 * HD]

        # One block-diagonal scores matmul for all (head, batch) pairs.
        s = jax.lax.dot_general(q_r, k_r, (((1,), (1,)), ((), ())),
                                preferred_element_type=f32) + attn_bias  # (NROWS, NROWS)
        s = s - jnp.max(s, axis=-1, keepdims=True)
        # Off-block entries are (-1e30 - max) -> exp underflows to EXACTLY 0 in f32,
        # so the PV matmul cannot leak across (head, batch) blocks.  Do not change
        # NEG_INF to a "small" value without revisiting this.
        p = jnp.exp(s)
        p = p / jnp.sum(p, axis=-1, keepdims=True)

        # Emit the full probability matrix; diagonal-block extraction and head
        # averaging happen in the wrapper (XLA), not in the kernel.
        attn_ref[l] = p

        # One PV matmul for all heads & batches, then re-merge heads on lanes.
        o_r = jnp.dot(p, v_r, preferred_element_type=f32)                # (NROWS, HD)
        o = jnp.concatenate(
            [o_r[hh * BS:(hh + 1) * BS, :] for hh in range(NHEAD)], axis=1)  # (BS, D)
        o = jnp.dot(o, w_out, preferred_element_type=f32) + b_out

        src = _layernorm(h + o, ln1g, ln1b)
        hid = jnp.maximum(jnp.dot(src, w1, preferred_element_type=f32) + b1, 0.0)
        ff = jnp.dot(hid, w2, preferred_element_type=f32) + b2
        h = _layernorm(src + ff, ln2g, ln2b)

    # mean pool over sequence + 2-layer classification head (lane-padded logits)
    pooled = jnp.concatenate(
        [jnp.mean(h[b * SEQ:(b + 1) * SEQ, :], axis=0, keepdims=True)
         for b in range(BATCH)], axis=0)                                  # (B, D)
    w_h1 = ld("w_h1", D_MODEL, D_MODEL // 2)
    b_h1 = ld("b_h1", 1, D_MODEL // 2)
    w_h2 = ld("w_h2", D_MODEL // 2, LANES)       # zero-padded past NUM_CLASSES
    b_h2 = ld("b_h2", 1, LANES)
    z = jnp.maximum(jnp.dot(pooled, w_h1, preferred_element_type=f32) + b_h1, 0.0)
    out_ref[...] = jnp.dot(z, w_h2, preferred_element_type=f32) + b_h2


# ------------------------------ wrapper ---------------------------------------
@jax.jit
def transformer_forward(x, params):
    B, S, F = x.shape
    assert (B, S, F) == (BATCH, SEQ, INPUT_DIM)

    x2 = x.reshape(B * S, F)
    slab = _pack_slab(params)

    vmem = pl.BlockSpec(memory_space=pltpu.MemorySpace.VMEM)
    out_pad, attn_p = pl.pallas_call(
        fused_transformer_kernel,
        out_shape=(jax.ShapeDtypeStruct((B, LANES), jnp.float32),
                   jax.ShapeDtypeStruct((NUM_LAYERS, NROWS, NROWS), jnp.float32)),
        in_specs=[vmem, vmem],
        out_specs=(vmem, vmem),
    )(x2, slab)

    logits = out_pad[:, :NUM_CLASSES]

    # Head-averaged attention weights (average_attn_weights=True semantics).
    # Block extraction in XLA is free at this size.
    attn_ws = []
    for b in range(B):
        acc = None
        for hh in range(NHEAD):
            g = hh * B + b
            blk = attn_p[:, g * S:(g + 1) * S, g * S:(g + 1) * S]
            acc = blk if acc is None else acc + blk
        attn_ws.append(acc * (1.0 / NHEAD))          # (L, S, S)
    attn = jnp.stack(attn_ws, axis=1)                # (L, B, S, S)
    return logits, [attn[l] for l in range(NUM_LAYERS)]


# ------------------------- deterministic parameters ---------------------------
def sinusoidal_pe(seq_len, d_model):
    pos = np.arange(seq_len, dtype=np.float32)[:, None]
    div = np.exp(np.arange(0, d_model, 2, dtype=np.float32) *
                 (-math.log(10000.0) / d_model))
    pe = np.zeros((seq_len, d_model), dtype=np.float32)
    pe[:, 0::2] = np.sin(pos * div)
    pe[:, 1::2] = np.cos(pos * div)
    return jnp.asarray(pe)


def init_params(key):
    ks = iter(jax.random.split(key, 64))
    nrm = lambda shape, scale=0.05: (scale * jax.random.normal(next(ks), shape)
                                     ).astype(jnp.float32)
    params = {
        "w_proj": nrm((INPUT_DIM, D_MODEL)),
        "b_proj": nrm((1, D_MODEL)),
        "pe": sinusoidal_pe(SEQ, D_MODEL),
        "layers": [],
        "w_h1": nrm((D_MODEL, D_MODEL // 2)),
        "b_h1": nrm((1, D_MODEL // 2)),
        "w_h2": nrm((D_MODEL // 2, NUM_CLASSES)),
        "b_h2": nrm((1, NUM_CLASSES)),
    }
    for _ in range(NUM_LAYERS):
        params["layers"].append({
            "w_in": nrm((D_MODEL, 3 * D_MODEL)),
            "b_in": nrm((1, 3 * D_MODEL)),
            "w_out": nrm((D_MODEL, D_MODEL)),
            "b_out": nrm((1, D_MODEL)),
            "ln1_g": jnp.ones((1, D_MODEL), jnp.float32),
            "ln1_b": jnp.zeros((1, D_MODEL), jnp.float32),
            "w1": nrm((D_MODEL, DIM_FF)),
            "b1": nrm((1, DIM_FF)),
            "w2": nrm((DIM_FF, D_MODEL)),
            "b2": nrm((1, D_MODEL)),
            "ln2_g": jnp.ones((1, D_MODEL), jnp.float32),
            "ln2_b": jnp.zeros((1, D_MODEL), jnp.float32),
        })
    return params


# ------------------------------ pure-JAX ref ----------------------------------
def reference_forward(x, params):
    h = x @ params["w_proj"] + params["b_proj"] + params["pe"][None]
    attn_ws = []
    for lp in params["layers"]:
        qkv = h @ lp["w_in"] + lp["b_in"]
        q, k, v = jnp.split(qkv, 3, axis=-1)
        B, S, D = q.shape
        hd = D // NHEAD
        qh = q.reshape(B, S, NHEAD, hd).transpose(0, 2, 1, 3)
        kh = k.reshape(B, S, NHEAD, hd).transpose(0, 2, 1, 3)
        vh = v.reshape(B, S, NHEAD, hd).transpose(0, 2, 1, 3)
        s = jnp.einsum("bhqd,bhkd->bhqk", qh, kh) / math.sqrt(hd)
        p = jax.nn.softmax(s, axis=-1)
        attn_ws.append(p.mean(axis=1))
        o = jnp.einsum("bhqk,bhkd->bhqd", p, vh).transpose(0, 2, 1, 3).reshape(B, S, D)
        o = o @ lp["w_out"] + lp["b_out"]
        h = _layernorm(h + o, lp["ln1_g"], lp["ln1_b"])
        ff = jnp.maximum(h @ lp["w1"] + lp["b1"], 0.0) @ lp["w2"] + lp["b2"]
        h = _layernorm(h + ff, lp["ln2_g"], lp["ln2_b"])
    pooled = h.mean(axis=1)
    out = jnp.maximum(pooled @ params["w_h1"] + params["b_h1"], 0.0) @ params["w_h2"] \
        + params["b_h2"]
    return out, attn_ws


# ---------------------------------- main --------------------------------------
if __name__ == "__main__":
    key = jax.random.PRNGKey(0)
    pkey, xkey = jax.random.split(key)
    params = init_params(pkey)
    x = jax.random.normal(xkey, (BATCH, SEQ, INPUT_DIM), dtype=jnp.float32)

    out, attn_weights = transformer_forward(x, params)
    out = jax.block_until_ready(out)
    attn_weights = [jax.block_until_ready(a) for a in attn_weights]

    ref_out, ref_attn = reference_forward(x, params)
    np.testing.assert_allclose(np.asarray(out), np.asarray(ref_out),
                               rtol=1e-4, atol=1e-5)
    for a, ra in zip(attn_weights, ref_attn):
        np.testing.assert_allclose(np.asarray(a), np.asarray(ra),
                                   rtol=1e-4, atol=1e-5)

    assert out.shape == (BATCH, NUM_CLASSES)
    assert all(a.shape == (BATCH, SEQ, SEQ) for a in attn_weights)
    print("KERNEL_OK")
</pallas_src>

<mosaic_0001>
module attributes {stable_mosaic.version = 11 : i64} {
  func.func @fused_transformer_kernel(%arg0: memref<16x4xf32, #tpu.memory_space<vmem>>, %arg1: memref<600x128xf32, #tpu.memory_space<vmem>>, %arg2: memref<2x128xf32, #tpu.memory_space<vmem>>, %arg3: memref<2x64x64xf32, #tpu.memory_space<vmem>>) attributes {dimension_semantics = [], scalar_prefetch = 0 : i64, scratch_operands = 0 : i64, tpu.core_type = #tpu.core_type<tc>} {
    %c0 = arith.constant 0 : index
    %c0_0 = arith.constant 0 : index
    %0 = vector.load %arg1[%c0, %c0_0] : memref<600x128xf32, #tpu.memory_space<vmem>>, vector<4x32xf32>
    %c8 = arith.constant 8 : index
    %c0_1 = arith.constant 0 : index
    %1 = vector.load %arg1[%c8, %c0_1] : memref<600x128xf32, #tpu.memory_space<vmem>>, vector<16x32xf32>
    %c24 = arith.constant 24 : index
    %c0_2 = arith.constant 0 : index
    %2 = vector.load %arg1[%c24, %c0_2] : memref<600x128xf32, #tpu.memory_space<vmem>>, vector<64x64xf32>
    %c0_3 = arith.constant 0 : index
    %c0_4 = arith.constant 0 : index
    %3 = vector.load %arg0[%c0_3, %c0_4] : memref<16x4xf32, #tpu.memory_space<vmem>>, vector<16x4xf32>
    %cst = arith.constant dense<0.000000e+00> : vector<16x32xf32>
    %4 = tpu.matmul %3, %0, %cst {dimension_numbers = #tpu.dot_dimension_numbers<[1], [0], [0], [1], [0, 0, 1, 1], [], []>, precision = #tpu.contract_precision<fp32>} : vector<16x4xf32>, vector<4x32xf32>, vector<16x32xf32> -> vector<16x32xf32>
    %5 = arith.addf %4, %1 : vector<16x32xf32>
    %c88 = arith.constant 88 : index
    %c0_5 = arith.constant 0 : index
    %6 = vector.load %arg1[%c88, %c0_5] : memref<600x128xf32, #tpu.memory_space<vmem>>, vector<32x96xf32>
    %c120 = arith.constant 120 : index
    %c0_6 = arith.constant 0 : index
    %7 = vector.load %arg1[%c120, %c0_6] : memref<600x128xf32, #tpu.memory_space<vmem>>, vector<1x96xf32>
    %c128 = arith.constant 128 : index
    %c0_7 = arith.constant 0 : index
    %8 = vector.load %arg1[%c128, %c0_7] : memref<600x128xf32, #tpu.memory_space<vmem>>, vector<32x32xf32>
    %c160 = arith.constant 160 : index
    %c0_8 = arith.constant 0 : index
    %9 = vector.load %arg1[%c160, %c0_8] : memref<600x128xf32, #tpu.memory_space<vmem>>, vector<1x32xf32>
    %c168 = arith.constant 168 : index
    %c0_9 = arith.constant 0 : index
    %10 = vector.load %arg1[%c168, %c0_9] : memref<600x128xf32, #tpu.memory_space<vmem>>, vector<1x32xf32>
    %c176 = arith.constant 176 : index
    %c0_10 = arith.constant 0 : index
    %11 = vector.load %arg1[%c176, %c0_10] : memref<600x128xf32, #tpu.memory_space<vmem>>, vector<1x32xf32>
    %c184 = arith.constant 184 : index
    %c0_11 = arith.constant 0 : index
    %12 = vector.load %arg1[%c184, %c0_11] : memref<600x128xf32, #tpu.memory_space<vmem>>, vector<32x64xf32>
    %c216 = arith.constant 216 : index
    %c0_12 = arith.constant 0 : index
    %13 = vector.load %arg1[%c216, %c0_12] : memref<600x128xf32, #tpu.memory_space<vmem>>, vector<1x64xf32>
    %c224 = arith.constant 224 : index
    %c0_13 = arith.constant 0 : index
    %14 = vector.load %arg1[%c224, %c0_13] : memref<600x128xf32, #tpu.memory_space<vmem>>, vector<64x32xf32>
    %c288 = arith.constant 288 : index
    %c0_14 = arith.constant 0 : index
    %15 = vector.load %arg1[%c288, %c0_14] : memref<600x128xf32, #tpu.memory_space<vmem>>, vector<1x32xf32>
    %c296 = arith.constant 296 : index
    %c0_15 = arith.constant 0 : index
    %16 = vector.load %arg1[%c296, %c0_15] : memref<600x128xf32, #tpu.memory_space<vmem>>, vector<1x32xf32>
    %c304 = arith.constant 304 : index
    %c0_16 = arith.constant 0 : index
    %17 = vector.load %arg1[%c304, %c0_16] : memref<600x128xf32, #tpu.memory_space<vmem>>, vector<1x32xf32>
    %cst_17 = arith.constant dense<0.000000e+00> : vector<16x96xf32>
    %18 = tpu.matmul %5, %6, %cst_17 {dimension_numbers = #tpu.dot_dimension_numbers<[1], [0], [0], [1], [0, 0, 1, 1], [], []>, precision = #tpu.contract_precision<fp32>} : vector<16x32xf32>, vector<32x96xf32>, vector<16x96xf32> -> vector<16x96xf32>
    %19 = vector.broadcast %7 : vector<1x96xf32> to vector<16x96xf32>
    %20 = arith.addf %18, %19 : vector<16x96xf32>
    %21 = vector.extract_strided_slice %20 {offsets = [0, 0], sizes = [16, 24], strides = [1, 1]} : vector<16x96xf32> to vector<16x24xf32>
    %22 = vector.extract_strided_slice %20 {offsets = [0, 24], sizes = [16, 24], strides = [1, 1]} : vector<16x96xf32> to vector<16x24xf32>
    %23 = vector.extract_strided_slice %20 {offsets = [0, 48], sizes = [16, 24], strides = [1, 1]} : vector<16x96xf32> to vector<16x24xf32>
    %24 = vector.extract_strided_slice %20 {offsets = [0, 72], sizes = [16, 24], strides = [1, 1]} : vector<16x96xf32> to vector<16x24xf32>
    %25 = tpu.concatenate %21, %22, %23, %24 in 0 : vector<16x24xf32>, vector<16x24xf32>, vector<16x24xf32>, vector<16x24xf32> -> vector<64x24xf32>
    %26 = vector.extract_strided_slice %25 {offsets = [0, 0], sizes = [64, 8], strides = [1, 1]} : vector<64x24xf32> to vector<64x8xf32>
    %27 = vector.extract_strided_slice %25 {offsets = [0, 8], sizes = [64, 8], strides = [1, 1]} : vector<64x24xf32> to vector<64x8xf32>
    %28 = vector.extract_strided_slice %25 {offsets = [0, 16], sizes = [64, 8], strides = [1, 1]} : vector<64x24xf32> to vector<64x8xf32>
    %cst_18 = arith.constant dense<0.000000e+00> : vector<64x64xf32>
    %29 = tpu.matmul %26, %27, %cst_18 {dimension_numbers = #tpu.dot_dimension_numbers<[1], [1], [0], [0], [0, 0, 1, 0], [], []>, precision = #tpu.contract_precision<fp32>} : vector<64x8xf32>, vector<64x8xf32>, vector<64x64xf32> -> vector<64x64xf32>
    %30 = arith.addf %29, %2 : vector<64x64xf32>
    %cst_19 = arith.constant dense<0xFF800000> : vector<64xf32>
    %31 = vector.multi_reduction <maximumf>, %30, %cst_19 [1] : vector<64x64xf32> to vector<64xf32>
    %32 = vector.shape_cast %31 : vector<64xf32> to vector<64x1xf32>
    %33 = vector.broadcast %32 : vector<64x1xf32> to vector<64x64xf32>
    %34 = arith.subf %30, %33 : vector<64x64xf32>
    %35 = math.exp %34 : vector<64x64xf32>
    %cst_20 = arith.constant dense<0.000000e+00> : vector<64xf32>
    %36 = vector.multi_reduction <add>, %35, %cst_20 [1] : vector<64x64xf32> to vector<64xf32>
    %37 = vector.shape_cast %36 : vector<64xf32> to vector<64x1xf32>
    %38 = vector.broadcast %37 : vector<64x1xf32> to vector<64x64xf32>
    %39 = arith.divf %35, %38 : vector<64x64xf32>
    %c0_21 = arith.constant 0 : index
    %c0_22 = arith.constant 0 : index
    %c0_23 = arith.constant 0 : index
    %40 = vector.load %arg3[%c0_21, %c0_22, %c0_23] : memref<2x64x64xf32, #tpu.memory_space<vmem>>, vector<1x64x64xf32>
    %41 = vector.shape_cast %40 : vector<1x64x64xf32> to vector<64x64xf32>
    %42 = vector.shape_cast %39 : vector<64x64xf32> to vector<1x64x64xf32>
    tpu.vector_store %arg3[%c0_21, %c0_22, %c0_23], %42 {strides = array<i32>} : memref<2x64x64xf32, #tpu.memory_space<vmem>>, vector<1x64x64xf32>,
    %cst_24 = arith.constant dense<0.000000e+00> : vector<64x8xf32>
    %43 = tpu.matmul %39, %28, %cst_24 {dimension_numbers = #tpu.dot_dimension_numbers<[1], [0], [0], [1], [0, 0, 1, 1], [], []>, precision = #tpu.contract_precision<fp32>} : vector<64x64xf32>, vector<64x8xf32>, vector<64x8xf32> -> vector<64x8xf32>
    %44 = vector.extract_strided_slice %43 {offsets = [0, 0], sizes = [16, 8], strides = [1, 1]} : vector<64x8xf32> to vector<16x8xf32>
    %45 = vector.extract_strided_slice %43 {offsets = [16, 0], sizes = [16, 8], strides = [1, 1]} : vector<64x8xf32> to vector<16x8xf32>
    %46 = vector.extract_strided_slice %43 {offsets = [32, 0], sizes = [16, 8], strides = [1, 1]} : vector<64x8xf32> to vector<16x8xf32>
    %47 = vector.extract_strided_slice %43 {offsets = [48, 0], sizes = [16, 8], strides = [1, 1]} : vector<64x8xf32> to vector<16x8xf32>
    %48 = tpu.concatenate %44, %45, %46, %47 in 1 : vector<16x8xf32>, vector<16x8xf32>, vector<16x8xf32>, vector<16x8xf32> -> vector<16x32xf32>
    %cst_25 = arith.constant dense<0.000000e+00> : vector<16x32xf32>
    %49 = tpu.matmul %48, %8, %cst_25 {dimension_numbers = #tpu.dot_dimension_numbers<[1], [0], [0], [1], [0, 0, 1, 1], [], []>, precision = #tpu.contract_precision<fp32>} : vector<16x32xf32>, vector<32x32xf32>, vector<16x32xf32> -> vector<16x32xf32>
    %50 = vector.broadcast %9 : vector<1x32xf32> to vector<16x32xf32>
    %51 = arith.addf %49, %50 : vector<16x32xf32>
    %52 = arith.addf %5, %51 : vector<16x32xf32>
    %cst_26 = arith.constant dense<0.000000e+00> : vector<16xf32>
    %53 = vector.multi_reduction <add>, %52, %cst_26 [1] : vector<16x32xf32> to vector<16xf32>
    %54 = vector.shape_cast %53 : vector<16xf32> to vector<16x1xf32>
    %cst_27 = arith.constant 3.200000e+01 : f32
    %55 = vector.broadcast %cst_27 : f32 to vector<16x1xf32>
    %56 = arith.divf %54, %55 : vector<16x1xf32>
    %57 = vector.broadcast %56 : vector<16x1xf32> to vector<16x32xf32>
    %58 = arith.subf %52, %57 : vector<16x32xf32>
    %59 = arith.mulf %58, %58 : vector<16x32xf32>
    %cst_28 = arith.constant dense<0.000000e+00> : vector<16xf32>
    %60 = vector.multi_reduction <add>, %59, %cst_28 [1] : vector<16x32xf32> to vector<16xf32>
    %61 = vector.shape_cast %60 : vector<16xf32> to vector<16x1xf32>
    %cst_29 = arith.constant 3.200000e+01 : f32
    %62 = vector.broadcast %cst_29 : f32 to vector<16x1xf32>
    %63 = arith.divf %61, %62 : vector<16x1xf32>
    %64 = vector.broadcast %56 : vector<16x1xf32> to vector<16x32xf32>
    %65 = arith.subf %52, %64 : vector<16x32xf32>
    %cst_30 = arith.constant 9.99999974E-6 : f32
    %66 = vector.broadcast %cst_30 : f32 to vector<16x1xf32>
    %67 = arith.addf %63, %66 : vector<16x1xf32>
    %68 = math.rsqrt %67 : vector<16x1xf32>
    %69 = vector.broadcast %68 : vector<16x1xf32> to vector<16x32xf32>
    %70 = arith.mulf %65, %69 : vector<16x32xf32>
    %71 = vector.broadcast %10 : vector<1x32xf32> to vector<16x32xf32>
    %72 = arith.mulf %70, %71 : vector<16x32xf32>
    %73 = vector.broadcast %11 : vector<1x32xf32> to vector<16x32xf32>
    %74 = arith.addf %72, %73 : vector<16x32xf32>
    %cst_31 = arith.constant dense<0.000000e+00> : vector<16x64xf32>
    %75 = tpu.matmul %74, %12, %cst_31 {dimension_numbers = #tpu.dot_dimension_numbers<[1], [0], [0], [1], [0, 0, 1, 1], [], []>, precision = #tpu.contract_precision<fp32>} : vector<16x32xf32>, vector<32x64xf32>, vector<16x64xf32> -> vector<16x64xf32>
    %76 = vector.broadcast %13 : vector<1x64xf32> to vector<16x64xf32>
    %77 = arith.addf %75, %76 : vector<16x64xf32>
    %cst_32 = arith.constant 0.000000e+00 : f32
    %78 = vector.broadcast %cst_32 : f32 to vector<16x64xf32>
    %79 = arith.maximumf %77, %78 : vector<16x64xf32>
    %cst_33 = arith.constant dense<0.000000e+00> : vector<16x32xf32>
    %80 = tpu.matmul %79, %14, %cst_33 {dimension_numbers = #tpu.dot_dimension_numbers<[1], [0], [0], [1], [0, 0, 1, 1], [], []>, precision = #tpu.contract_precision<fp32>} : vector<16x64xf32>, vector<64x32xf32>, vector<16x32xf32> -> vector<16x32xf32>
    %81 = vector.broadcast %15 : vector<1x32xf32> to vector<16x32xf32>
    %82 = arith.addf %80, %81 : vector<16x32xf32>
    %83 = arith.addf %74, %82 : vector<16x32xf32>
    %cst_34 = arith.constant dense<0.000000e+00> : vector<16xf32>
    %84 = vector.multi_reduction <add>, %83, %cst_34 [1] : vector<16x32xf32> to vector<16xf32>
    %85 = vector.shape_cast %84 : vector<16xf32> to vector<16x1xf32>
    %cst_35 = arith.constant 3.200000e+01 : f32
    %86 = vector.broadcast %cst_35 : f32 to vector<16x1xf32>
    %87 = arith.divf %85, %86 : vector<16x1xf32>
    %88 = vector.broadcast %87 : vector<16x1xf32> to vector<16x32xf32>
    %89 = arith.subf %83, %88 : vector<16x32xf32>
    %90 = arith.mulf %89, %89 : vector<16x32xf32>
    %cst_36 = arith.constant dense<0.000000e+00> : vector<16xf32>
    %91 = vector.multi_reduction <add>, %90, %cst_36 [1] : vector<16x32xf32> to vector<16xf32>
    %92 = vector.shape_cast %91 : vector<16xf32> to vector<16x1xf32>
    %cst_37 = arith.constant 3.200000e+01 : f32
    %93 = vector.broadcast %cst_37 : f32 to vector<16x1xf32>
    %94 = arith.divf %92, %93 : vector<16x1xf32>
    %95 = vector.broadcast %87 : vector<16x1xf32> to vector<16x32xf32>
    %96 = arith.subf %83, %95 : vector<16x32xf32>
    %cst_38 = arith.constant 9.99999974E-6 : f32
    %97 = vector.broadcast %cst_38 : f32 to vector<16x1xf32>
    %98 = arith.addf %94, %97 : vector<16x1xf32>
    %99 = math.rsqrt %98 : vector<16x1xf32>
    %100 = vector.broadcast %99 : vector<16x1xf32> to vector<16x32xf32>
    %101 = arith.mulf %96, %100 : vector<16x32xf32>
    %102 = vector.broadcast %16 : vector<1x32xf32> to vector<16x32xf32>
    %103 = arith.mulf %101, %102 : vector<16x32xf32>
    %104 = vector.broadcast %17 : vector<1x32xf32> to vector<16x32xf32>
    %105 = arith.addf %103, %104 : vector<16x32xf32>
    %c312 = arith.constant 312 : index
    %c0_39 = arith.constant 0 : index
    %106 = vector.load %arg1[%c312, %c0_39] : memref<600x128xf32, #tpu.memory_space<vmem>>, vector<32x96xf32>
    %c344 = arith.constant 344 : index
    %c0_40 = arith.constant 0 : index
    %107 = vector.load %arg1[%c344, %c0_40] : memref<600x128xf32, #tpu.memory_space<vmem>>, vector<1x96xf32>
    %c352 = arith.constant 352 : index
    %c0_41 = arith.constant 0 : index
    %108 = vector.load %arg1[%c352, %c0_41] : memref<600x128xf32, #tpu.memory_space<vmem>>, vector<32x32xf32>
    %c384 = arith.constant 384 : index
    %c0_42 = arith.constant 0 : index
    %109 = vector.load %arg1[%c384, %c0_42] : memref<600x128xf32, #tpu.memory_space<vmem>>, vector<1x32xf32>
    %c392 = arith.constant 392 : index
    %c0_43 = arith.constant 0 : index
    %110 = vector.load %arg1[%c392, %c0_43] : memref<600x128xf32, #tpu.memory_space<vmem>>, vector<1x32xf32>
    %c400 = arith.constant 400 : index
    %c0_44 = arith.constant 0 : index
    %111 = vector.load %arg1[%c400, %c0_44] : memref<600x128xf32, #tpu.memory_space<vmem>>, vector<1x32xf32>
    %c408 = arith.constant 408 : index
    %c0_45 = arith.constant 0 : index
    %112 = vector.load %arg1[%c408, %c0_45] : memref<600x128xf32, #tpu.memory_space<vmem>>, vector<32x64xf32>
    %c440 = arith.constant 440 : index
    %c0_46 = arith.constant 0 : index
    %113 = vector.load %arg1[%c440, %c0_46] : memref<600x128xf32, #tpu.memory_space<vmem>>, vector<1x64xf32>
    %c448 = arith.constant 448 : index
    %c0_47 = arith.constant 0 : index
    %114 = vector.load %arg1[%c448, %c0_47] : memref<600x128xf32, #tpu.memory_space<vmem>>, vector<64x32xf32>
    %c512 = arith.constant 512 : index
    %c0_48 = arith.constant 0 : index
    %115 = vector.load %arg1[%c512, %c0_48] : memref<600x128xf32, #tpu.memory_space<vmem>>, vector<1x32xf32>
    %c520 = arith.constant 520 : index
    %c0_49 = arith.constant 0 : index
    %116 = vector.load %arg1[%c520, %c0_49] : memref<600x128xf32, #tpu.memory_space<vmem>>, vector<1x32xf32>
    %c528 = arith.constant 528 : index
    %c0_50 = arith.constant 0 : index
    %117 = vector.load %arg1[%c528, %c0_50] : memref<600x128xf32, #tpu.memory_space<vmem>>, vector<1x32xf32>
    %cst_51 = arith.constant dense<0.000000e+00> : vector<16x96xf32>
    %118 = tpu.matmul %105, %106, %cst_51 {dimension_numbers = #tpu.dot_dimension_numbers<[1], [0], [0], [1], [0, 0, 1, 1], [], []>, precision = #tpu.contract_precision<fp32>} : vector<16x32xf32>, vector<32x96xf32>, vector<16x96xf32> -> vector<16x96xf32>
    %119 = vector.broadcast %107 : vector<1x96xf32> to vector<16x96xf32>
    %120 = arith.addf %118, %119 : vector<16x96xf32>
    %121 = vector.extract_strided_slice %120 {offsets = [0, 0], sizes = [16, 24], strides = [1, 1]} : vector<16x96xf32> to vector<16x24xf32>
    %122 = vector.extract_strided_slice %120 {offsets = [0, 24], sizes = [16, 24], strides = [1, 1]} : vector<16x96xf32> to vector<16x24xf32>
    %123 = vector.extract_strided_slice %120 {offsets = [0, 48], sizes = [16, 24], strides = [1, 1]} : vector<16x96xf32> to vector<16x24xf32>
    %124 = vector.extract_strided_slice %120 {offsets = [0, 72], sizes = [16, 24], strides = [1, 1]} : vector<16x96xf32> to vector<16x24xf32>
    %125 = tpu.concatenate %121, %122, %123, %124 in 0 : vector<16x24xf32>, vector<16x24xf32>, vector<16x24xf32>, vector<16x24xf32> -> vector<64x24xf32>
    %126 = vector.extract_strided_slice %125 {offsets = [0, 0], sizes = [64, 8], strides = [1, 1]} : vector<64x24xf32> to vector<64x8xf32>
    %127 = vector.extract_strided_slice %125 {offsets = [0, 8], sizes = [64, 8], strides = [1, 1]} : vector<64x24xf32> to vector<64x8xf32>
    %128 = vector.extract_strided_slice %125 {offsets = [0, 16], sizes = [64, 8], strides = [1, 1]} : vector<64x24xf32> to vector<64x8xf32>
    %cst_52 = arith.constant dense<0.000000e+00> : vector<64x64xf32>
    %129 = tpu.matmul %126, %127, %cst_52 {dimension_numbers = #tpu.dot_dimension_numbers<[1], [1], [0], [0], [0, 0, 1, 0], [], []>, precision = #tpu.contract_precision<fp32>} : vector<64x8xf32>, vector<64x8xf32>, vector<64x64xf32> -> vector<64x64xf32>
    %130 = arith.addf %129, %2 : vector<64x64xf32>
    %cst_53 = arith.constant dense<0xFF800000> : vector<64xf32>
    %131 = vector.multi_reduction <maximumf>, %130, %cst_53 [1] : vector<64x64xf32> to vector<64xf32>
    %132 = vector.shape_cast %131 : vector<64xf32> to vector<64x1xf32>
    %133 = vector.broadcast %132 : vector<64x1xf32> to vector<64x64xf32>
    %134 = arith.subf %130, %133 : vector<64x64xf32>
    %135 = math.exp %134 : vector<64x64xf32>
    %cst_54 = arith.constant dense<0.000000e+00> : vector<64xf32>
    %136 = vector.multi_reduction <add>, %135, %cst_54 [1] : vector<64x64xf32> to vector<64xf32>
    %137 = vector.shape_cast %136 : vector<64xf32> to vector<64x1xf32>
    %138 = vector.broadcast %137 : vector<64x1xf32> to vector<64x64xf32>
    %139 = arith.divf %135, %138 : vector<64x64xf32>
    %c1 = arith.constant 1 : index
    %c0_55 = arith.constant 0 : index
    %c0_56 = arith.constant 0 : index
    %140 = vector.load %arg3[%c1, %c0_55, %c0_56] : memref<2x64x64xf32, #tpu.memory_space<vmem>>, vector<1x64x64xf32>
    %141 = vector.shape_cast %140 : vector<1x64x64xf32> to vector<64x64xf32>
    %142 = vector.shape_cast %139 : vector<64x64xf32> to vector<1x64x64xf32>
    tpu.vector_store %arg3[%c1, %c0_55, %c0_56], %142 {strides = array<i32>} : memref<2x64x64xf32, #tpu.memory_space<vmem>>, vector<1x64x64xf32>,
    %cst_57 = arith.constant dense<0.000000e+00> : vector<64x8xf32>
    %143 = tpu.matmul %139, %128, %cst_57 {dimension_numbers = #tpu.dot_dimension_numbers<[1], [0], [0], [1], [0, 0, 1, 1], [], []>, precision = #tpu.contract_precision<fp32>} : vector<64x64xf32>, vector<64x8xf32>, vector<64x8xf32> -> vector<64x8xf32>
    %144 = vector.extract_strided_slice %143 {offsets = [0, 0], sizes = [16, 8], strides = [1, 1]} : vector<64x8xf32> to vector<16x8xf32>
    %145 = vector.extract_strided_slice %143 {offsets = [16, 0], sizes = [16, 8], strides = [1, 1]} : vector<64x8xf32> to vector<16x8xf32>
    %146 = vector.extract_strided_slice %143 {offsets = [32, 0], sizes = [16, 8], strides = [1, 1]} : vector<64x8xf32> to vector<16x8xf32>
    %147 = vector.extract_strided_slice %143 {offsets = [48, 0], sizes = [16, 8], strides = [1, 1]} : vector<64x8xf32> to vector<16x8xf32>
    %148 = tpu.concatenate %144, %145, %146, %147 in 1 : vector<16x8xf32>, vector<16x8xf32>, vector<16x8xf32>, vector<16x8xf32> -> vector<16x32xf32>
    %cst_58 = arith.constant dense<0.000000e+00> : vector<16x32xf32>
    %149 = tpu.matmul %148, %108, %cst_58 {dimension_numbers = #tpu.dot_dimension_numbers<[1], [0], [0], [1], [0, 0, 1, 1], [], []>, precision = #tpu.contract_precision<fp32>} : vector<16x32xf32>, vector<32x32xf32>, vector<16x32xf32> -> vector<16x32xf32>
    %150 = vector.broadcast %109 : vector<1x32xf32> to vector<16x32xf32>
    %151 = arith.addf %149, %150 : vector<16x32xf32>
    %152 = arith.addf %105, %151 : vector<16x32xf32>
    %cst_59 = arith.constant dense<0.000000e+00> : vector<16xf32>
    %153 = vector.multi_reduction <add>, %152, %cst_59 [1] : vector<16x32xf32> to vector<16xf32>
    %154 = vector.shape_cast %153 : vector<16xf32> to vector<16x1xf32>
    %cst_60 = arith.constant 3.200000e+01 : f32
    %155 = vector.broadcast %cst_60 : f32 to vector<16x1xf32>
    %156 = arith.divf %154, %155 : vector<16x1xf32>
    %157 = vector.broadcast %156 : vector<16x1xf32> to vector<16x32xf32>
    %158 = arith.subf %152, %157 : vector<16x32xf32>
    %159 = arith.mulf %158, %158 : vector<16x32xf32>
    %cst_61 = arith.constant dense<0.000000e+00> : vector<16xf32>
    %160 = vector.multi_reduction <add>, %159, %cst_61 [1] : vector<16x32xf32> to vector<16xf32>
    %161 = vector.shape_cast %160 : vector<16xf32> to vector<16x1xf32>
    %cst_62 = arith.constant 3.200000e+01 : f32
    %162 = vector.broadcast %cst_62 : f32 to vector<16x1xf32>
    %163 = arith.divf %161, %162 : vector<16x1xf32>
    %164 = vector.broadcast %156 : vector<16x1xf32> to vector<16x32xf32>
    %165 = arith.subf %152, %164 : vector<16x32xf32>
    %cst_63 = arith.constant 9.99999974E-6 : f32
    %166 = vector.broadcast %cst_63 : f32 to vector<16x1xf32>
    %167 = arith.addf %163, %166 : vector<16x1xf32>
    %168 = math.rsqrt %167 : vector<16x1xf32>
    %169 = vector.broadcast %168 : vector<16x1xf32> to vector<16x32xf32>
    %170 = arith.mulf %165, %169 : vector<16x32xf32>
    %171 = vector.broadcast %110 : vector<1x32xf32> to vector<16x32xf32>
    %172 = arith.mulf %170, %171 : vector<16x32xf32>
    %173 = vector.broadcast %111 : vector<1x32xf32> to vector<16x32xf32>
    %174 = arith.addf %172, %173 : vector<16x32xf32>
    %cst_64 = arith.constant dense<0.000000e+00> : vector<16x64xf32>
    %175 = tpu.matmul %174, %112, %cst_64 {dimension_numbers = #tpu.dot_dimension_numbers<[1], [0], [0], [1], [0, 0, 1, 1], [], []>, precision = #tpu.contract_precision<fp32>} : vector<16x32xf32>, vector<32x64xf32>, vector<16x64xf32> -> vector<16x64xf32>
    %176 = vector.broadcast %113 : vector<1x64xf32> to vector<16x64xf32>
    %177 = arith.addf %175, %176 : vector<16x64xf32>
    %cst_65 = arith.constant 0.000000e+00 : f32
    %178 = vector.broadcast %cst_65 : f32 to vector<16x64xf32>
    %179 = arith.maximumf %177, %178 : vector<16x64xf32>
    %cst_66 = arith.constant dense<0.000000e+00> : vector<16x32xf32>
    %180 = tpu.matmul %179, %114, %cst_66 {dimension_numbers = #tpu.dot_dimension_numbers<[1], [0], [0], [1], [0, 0, 1, 1], [], []>, precision = #tpu.contract_precision<fp32>} : vector<16x64xf32>, vector<64x32xf32>, vector<16x32xf32> -> vector<16x32xf32>
    %181 = vector.broadcast %115 : vector<1x32xf32> to vector<16x32xf32>
    %182 = arith.addf %180, %181 : vector<16x32xf32>
    %183 = arith.addf %174, %182 : vector<16x32xf32>
    %cst_67 = arith.constant dense<0.000000e+00> : vector<16xf32>
    %184 = vector.multi_reduction <add>, %183, %cst_67 [1] : vector<16x32xf32> to vector<16xf32>
    %185 = vector.shape_cast %184 : vector<16xf32> to vector<16x1xf32>
    %cst_68 = arith.constant 3.200000e+01 : f32
    %186 = vector.broadcast %cst_68 : f32 to vector<16x1xf32>
    %187 = arith.divf %185, %186 : vector<16x1xf32>
    %188 = vector.broadcast %187 : vector<16x1xf32> to vector<16x32xf32>
    %189 = arith.subf %183, %188 : vector<16x32xf32>
    %190 = arith.mulf %189, %189 : vector<16x32xf32>
    %cst_69 = arith.constant dense<0.000000e+00> : vector<16xf32>
    %191 = vector.multi_reduction <add>, %190, %cst_69 [1] : vector<16x32xf32> to vector<16xf32>
    %192 = vector.shape_cast %191 : vector<16xf32> to vector<16x1xf32>
    %cst_70 = arith.constant 3.200000e+01 : f32
    %193 = vector.broadcast %cst_70 : f32 to vector<16x1xf32>
    %194 = arith.divf %192, %193 : vector<16x1xf32>
    %195 = vector.broadcast %187 : vector<16x1xf32> to vector<16x32xf32>
    %196 = arith.subf %183, %195 : vector<16x32xf32>
    %cst_71 = arith.constant 9.99999974E-6 : f32
    %197 = vector.broadcast %cst_71 : f32 to vector<16x1xf32>
    %198 = arith.addf %194, %197 : vector<16x1xf32>
    %199 = math.rsqrt %198 : vector<16x1xf32>
    %200 = vector.broadcast %199 : vector<16x1xf32> to vector<16x32xf32>
    %201 = arith.mulf %196, %200 : vector<16x32xf32>
    %202 = vector.broadcast %116 : vector<1x32xf32> to vector<16x32xf32>
    %203 = arith.mulf %201, %202 : vector<16x32xf32>
    %204 = vector.broadcast %117 : vector<1x32xf32> to vector<16x32xf32>
    %205 = arith.addf %203, %204 : vector<16x32xf32>
    %206 = vector.extract_strided_slice %205 {offsets = [0, 0], sizes = [8, 32], strides = [1, 1]} : vector<16x32xf32> to vector<8x32xf32>
    %cst_72 = arith.constant dense<0.000000e+00> : vector<32xf32>
    %207 = vector.multi_reduction <add>, %206, %cst_72 [0] : vector<8x32xf32> to vector<32xf32>
    %208 = vector.shape_cast %207 : vector<32xf32> to vector<1x32xf32>
    %cst_73 = arith.constant 8.000000e+00 : f32
    %209 = vector.broadcast %cst_73 : f32 to vector<1x32xf32>
    %210 = arith.divf %208, %209 : vector<1x32xf32>
    %211 = vector.extract_strided_slice %205 {offsets = [8, 0], sizes = [8, 32], strides = [1, 1]} : vector<16x32xf32> to vector<8x32xf32>
    %cst_74 = arith.constant dense<0.000000e+00> : vector<32xf32>
    %212 = vector.multi_reduction <add>, %211, %cst_74 [0] : vector<8x32xf32> to vector<32xf32>
    %213 = vector.shape_cast %212 : vector<32xf32> to vector<1x32xf32>
    %cst_75 = arith.constant 8.000000e+00 : f32
    %214 = vector.broadcast %cst_75 : f32 to vector<1x32xf32>
    %215 = arith.divf %213, %214 : vector<1x32xf32>
    %216 = tpu.concatenate %210, %215 in 0 : vector<1x32xf32>, vector<1x32xf32> -> vector<2x32xf32>
    %c536 = arith.constant 536 : index
    %c0_76 = arith.constant 0 : index
    %217 = vector.load %arg1[%c536, %c0_76] : memref<600x128xf32, #tpu.memory_space<vmem>>, vector<32x16xf32>
    %c568 = arith.constant 568 : index
    %c0_77 = arith.constant 0 : index
    %218 = vector.load %arg1[%c568, %c0_77] : memref<600x128xf32, #tpu.memory_space<vmem>>, vector<1x16xf32>
    %c576 = arith.constant 576 : index
    %c0_78 = arith.constant 0 : index
    %219 = vector.load %arg1[%c576, %c0_78] : memref<600x128xf32, #tpu.memory_space<vmem>>, vector<16x128xf32>
    %c592 = arith.constant 592 : index
    %c0_79 = arith.constant 0 : index
    %220 = vector.load %arg1[%c592, %c0_79] : memref<600x128xf32, #tpu.memory_space<vmem>>, vector<1x128xf32>
    %cst_80 = arith.constant dense<0.000000e+00> : vector<2x16xf32>
    %221 = tpu.matmul %216, %217, %cst_80 {dimension_numbers = #tpu.dot_dimension_numbers<[1], [0], [0], [1], [0, 0, 1, 1], [], []>, precision = #tpu.contract_precision<fp32>} : vector<2x32xf32>, vector<32x16xf32>, vector<2x16xf32> -> vector<2x16xf32>
    %222 = vector.broadcast %218 : vector<1x16xf32> to vector<2x16xf32>
    %223 = arith.addf %221, %222 : vector<2x16xf32>
    %cst_81 = arith.constant 0.000000e+00 : f32
    %224 = vector.broadcast %cst_81 : f32 to vector<2x16xf32>
    %225 = arith.maximumf %223, %224 : vector<2x16xf32>
    %cst_82 = arith.constant dense<0.000000e+00> : vector<2x128xf32>
    %226 = tpu.matmul %225, %219, %cst_82 {dimension_numbers = #tpu.dot_dimension_numbers<[1], [0], [0], [1], [0, 0, 1, 1], [], []>, precision = #tpu.contract_precision<fp32>} : vector<2x16xf32>, vector<16x128xf32>, vector<2x128xf32> -> vector<2x128xf32>
    %227 = vector.broadcast %220 : vector<1x128xf32> to vector<2x128xf32>
    %228 = arith.addf %226, %227 : vector<2x128xf32>
    %c0_83 = arith.constant 0 : index
    %c0_84 = arith.constant 0 : index
    %229 = vector.load %arg2[%c0_83, %c0_84] : memref<2x128xf32, #tpu.memory_space<vmem>>, vector<2x128xf32>
    tpu.vector_store %arg2[%c0_83, %c0_84], %228 {strides = array<i32>} : memref<2x128xf32, #tpu.memory_space<vmem>>, vector<2x128xf32>,
    return
  }
}

</mosaic_0001>

<bundles_post_ra>
// kernel: transformer_forward.1
= control target key start
LH: loop header
LB: loop body
LE: loop exit
PB: predicated region body
PF: predicated region fallthrough
CT: control target
= control target key end

     0   :  { %vm34_vm0 = vcmask 1043456   ;;  %vm27_vm1 = vcmask 31744   ;;  %s15383_s0 = inlined_call_operand.vmem [shape: f32[16,4], index: 0, kind: input, shape index: {}]   ;;  %s15384_s1 = inlined_call_operand.vmem [shape: f32[600,128], index: 1, kind: input, shape index: {}]   ;;  %s15385_s2 = inlined_call_operand.hbm [shape: f32[2,128], index: 2, kind: output, shape index: {0}]   ;;  %s15386_s3 = inlined_call_operand.vmem [shape: f32[2,64,64], index: 3, kind: output, shape index: {1}]  }
   0x1   :  { %v14_v0 = vld [vmem:[%s15384_s1] sm:$0xf]  ;;  %v26_v2 = vld [vmem:[%s15383_s0 + $0x8] sm:$0xff] }
   0x2   :  { %v25_v1 = vld [vmem:[%s15383_s0] sm:$0xff]  ;;  %v36_v3 = vsel %vm34_vm0, %v14_v0, 0  ;;  %v32_v5 = vsel %vm27_vm1, %v26_v2, 0 }
   0x3   :  { %v29_v4 = vsel %vm27_vm1, %v25_v1, 0 }
   0x4   :  { %9 = vsyncpa [#allocation3], 0  ;;  %v39_v6 = vand.u32 4294901760, %v36_v3  ;;  %v104_v7 = vand.u32 4294901760, %v29_v4  ;;  %v114_v8 = vand.u32 4294901760, %v32_v5  ;;  %v527_v21 = vld [vmem:[%s15384_s1 + $0x58] sm:$0xff] }
   0x5   :  { %v528_v22 = vld [vmem:[%s15384_s1 + $0x60] sm:$0xff]  ;;  %v567_v23 = vand.u32 4294901760, %v527_v21  ;;  %v529_v28 = vld [vmem:[%s15384_s1 + $0x68] sm:$0xff]  ;;  %v530_v29 = vld [vmem:[%s15384_s1 + $0x70] sm:$0xff]  ;;  %vm559_vm2 = vcmask 261120   ;;  %vm1124_vm3 = vcmask 64512  }
   0x6   :  { %10803 = vmatprep.subr.mxu0 %v39_v6  ;;  %v105_v9 = vsub.f32 %v29_v4, %v104_v7  ;;  %v126_v10 = vsub.f32 %v36_v3, %v39_v6  ;;  %v115_v11 = vsub.f32 %v32_v5, %v114_v8  ;;  %v570_v24 = vand.u32 4294901760, %v528_v22  ;;  %v16_v53 = vld [vmem:[%s15384_s1 + $0x10] sm:$0xff]  ;;  %v15_v54 = vld [vmem:[%s15384_s1 + $0x8] sm:$0xff]  ;;  %s13585_s4 = smov 80   ;;  %s13586_s5 = smov 104  }
   0x7   :  { %10804 = vmatpush3.msra.mxu0 %v39_v6  ;;  %v657_v26 = vsub.f32 %v527_v21, %v567_v23  ;;  %v573_v30 = vand.u32 4294901760, %v529_v28  ;;  %v576_v31 = vand.u32 4294901760, %v530_v29  ;;  %s13587_s6 = smov 56   ;;  %s13588_s7 = smov 120   ;;  %vm1995_vm4 = vcmask 523264  }
   0x8   :  { %v106_v12 = vand.u32 4294901760, %v105_v9  ;;  %v127_v13 = vand.u32 4294901760, %v126_v10  ;;  %v116_v14 = vand.u32 4294901760, %v115_v11  ;;  %v13632_v25 = vpack.c.bf16 %v570_v24, %v567_v23  ;;  %s13589_s21 = smov 112   ;;  %s13590_s20 = smov 8  }
   0x9   :  { %v664_v27 = vsub.f32 %v528_v22, %v570_v24  ;;  %v658_v32 = vand.u32 4294901760, %v657_v26  ;;  %v13642_v34 = vpack.c.bf16 %v576_v31, %v573_v30  ;;  %v671_v37 = vsub.f32 %v529_v28, %v573_v30  ;;  %s13591_s26 = smov 16   ;;  %s13592_s27 = smov 24  }
   0xa   :  { %v107_v15 = vsub.f32 %v105_v9, %v106_v12  ;;  %v128_v16 = vsub.f32 %v126_v10, %v127_v13  ;;  %v117_v17 = vsub.f32 %v115_v11, %v116_v14  ;;  %12238 = vmatprep.subr.bf16.mxu1 %v13632_v25  ;;  %v678_v38 = vsub.f32 %v530_v29, %v576_v31  ;;  %s13596_s18 = smov [#allocation2]  }
   0xb   :  { %v665_v33 = vand.u32 4294901760, %v664_v27  ;;  %12240 = vmatpush3.bf16.msra.mxu1 %v13632_v25  ;;  %v659_v35 = vsub.f32 %v657_v26, %v658_v32  ;;  %v672_v41 = vand.u32 4294901760, %v671_v37  ;;  %v12253_v49 = vpack.c.bf16 %v664_v27, %v657_v26  ;;  %s9979_s19 = sshll.u32 %s13596_s18, 4  ;;  %s9980_s19 = int_to_ptr.vmem [resolvable:$true] %s9979_s19 }
   0xc   :  { %v108_v18 = vand.u32 4294901760, %v107_v15  ;;  %v129_v19 = vand.u32 4294901760, %v128_v16  ;;  %v118_v20 = vand.u32 4294901760, %v117_v17  ;;  %12242 = vmatprep.subr.bf16.mxu1 %v13642_v34  ;;  %v679_v42 = vand.u32 4294901760, %v678_v38  ;;  %s13561_s22 = scalar_lea.vmem %s9980_s19, 32  ;;  %p13566_p1 = scmp.lt.s32.totalorder %s9980_s19, %s9980_s19 }
   0xd   :  { %v666_v36 = vsub.f32 %v664_v27, %v665_v33  ;;  %v660_v39 = vand.u32 4294901760, %v659_v35  ;;  %v673_v44 = vsub.f32 %v671_v37, %v672_v41  ;;  %v12257_v50 = vpack.c.bf16 %v678_v38, %v671_v37  ;;  %p13562_p0 = scmp.ne.s32.totalorder %s9980_s19, %s13561_s22  ;;  %p13567_p2 = scmp.lt.s32.totalorder %s13561_s22, %s13561_s22 }
   0xe   :  { %10805 = vmatprep.mubr.f32.mxu0 %v108_v18  ;;  %10808 = vmatprep.subr.mxu0 %v129_v19  ;;  %v680_v45 = vsub.f32 %v678_v38, %v679_v42  ;;  %v12269_v51 = vpack.c.bf16 %v665_v33, %v658_v32  ;;  %v12273_v52 = vpack.c.bf16 %v679_v42, %v672_v41  ;;  %vm3004_vm5 = vcmask 130048  }
   0xf   :  { %10806 = vmatmul.mubr.f32.vlgmr.msra.gmra.mrb[0].mxu0 %v118_v20  ;;  %v667_v40 = vand.u32 4294901760, %v666_v36  ;;  %12244 = vmatpush3.bf16.msra.mxu1 %v13642_v34  ;;  %v674_v46 = vand.u32 4294901760, %v673_v44  ;;  %vm3007_vm6 = vcmask 195584   ;;  %vm13594_vm7 = vmmov 0   ;;  %p13568_p3 = por %p13567_p2, %p13566_p1 }
  0x10   :  { %10809 = vmatpush3.msra.mxu0 %v129_v19  ;;  %10810 = vmatprep.mubr.f32.mxu0 %v104_v7  ;;  %v681_v47 = vand.u32 4294901760, %v680_v45  ;;  %vm9003_vm8 = vcmask 1040384  }
  0x11   :  { %10813 = vmatprep.subr.mxu0 %v126_v10  ;;  %v12245_v43 = vpack.c.bf16 %v667_v40, %v660_v39  ;;  %p13569_p4 = pnand %p13568_p3, %p13562_p0 }
  0x12   :  { %v12249_v48 = vpack.c.bf16 %v681_v47, %v674_v46 }
  0x13   :  { %12246 = vmatprep.subr.bf16.mxu1 %v12245_v43 }
  0x17   :  { %10811 = vmatmul.mubr.f32.vlgmr.msra.gmra.mrb[0].mxu0 %v114_v8 }
  0x18   :  { %10814 = vmatpush3.msra.mxu0 %v126_v10  ;;  %10815 = vmatprep.mubr.f32.mxu0 %v105_v9 }
  0x19   :  { %10818 = vmatprep.subr.mxu0 %v39_v6 }
  0x1f   :  { %10816 = vmatmul.mubr.f32.vlgmr.msra.gmra.mrb[0].mxu0 %v115_v11 }
  0x20   :  { %10819 = vmatpush3.msra.mxu0 %v39_v6  ;;  %10820 = vmatprep.mubr.f32.mxu0 %v106_v12 }
  0x21   :  { %10823 = vmatprep.subr.mxu0 %v127_v13 }
  0x27   :  { %10821 = vmatmul.mubr.f32.vlgmr.msra.gmra.mrb[0].mxu0 %v116_v14 }
  0x28   :  { %10824 = vmatpush3.msra.mxu0 %v127_v13  ;;  %10825 = vmatprep.mubr.f32.mxu0 %v104_v7 }
  0x29   :  { %10828 = vmatprep.subr.mxu0 %v39_v6 }
  0x2f   :  { %10826 = vmatmul.mubr.f32.vlgmr.msra.gmra.mrb[0].mxu0 %v114_v8 }
  0x30   :  { %10829 = vmatpush3.msra.mxu0 %v39_v6  ;;  %10830 = vmatprep.mubr.f32.mxu0 %v104_v7  ;;  %v9991_v7 = vld [vmem:[%s15384_s1 + $0x78] ss:$0 sm:$0xff] }
  0x37   :  { %10831 = vmatmul.mubr.f32.vlgmr.msra.gmra.mrb[0].mxu0 %v114_v8 }
 0x10a   :  { %v10832_v55 = vpop.f32.mrb[0].mxu0 }
 0x10b   :  { %v13652_v56 = vadd.f32 %v10832_v55, %v16_v53  ;;  %v517_v57 = vpop.f32.mrb[1].mxu0 }
 0x10c   :  { %v13654_v58 = vadd.f32 %v517_v57, %v15_v54 }
 0x10d   :  { %v564_v59 = vsel %vm559_vm2, %v13652_v56, 0 }
 0x10e   :  { %v645_v60 = vand.u32 4294901760, %v564_v59  ;;  %v561_v61 = vsel %vm559_vm2, %v13654_v58, 0 }
 0x10f   :  { %v635_v62 = vand.u32 4294901760, %v561_v61 }
 0x110   :  { %v646_v63 = vsub.f32 %v564_v59, %v645_v60 }
 0x111   :  { %v636_v0 = vsub.f32 %v561_v61, %v635_v62 }
 0x112   :  { %v647_v1 = vand.u32 4294901760, %v646_v63 }
 0x113   :  { %v637_v2 = vand.u32 4294901760, %v636_v0 }
 0x114   :  { %v648_v3 = vsub.f32 %v646_v63, %v647_v1 }
 0x115   :  { %v638_v4 = vsub.f32 %v636_v0, %v637_v2 }
 0x116   :  { %v649_v6 = vand.u32 4294901760, %v648_v3 }
 0x117   :  { %v639_v5 = vand.u32 4294901760, %v638_v4 }
 0x119   :  { %10841 = vmatprep.mubr.f32.mxu1 %v639_v5 }
 0x11a   :  { %10842 = vmatmul.mubr.f32.vlgmr.msra.gmra.mrb[0].mxu1 %v649_v6 }
 0x11b   :  { %12248 = vmatpush3.bf16.msra.mxu1 %v12245_v43  ;;  %10852 = vmatprep.mubr.f32.mxu1 %v635_v62 }
 0x11c   :  { %12250 = vmatprep.subr.bf16.mxu1 %v12249_v48 }
 0x11f   :  { %12252 = vmatpush3.bf16.msra.mxu1 %v12249_v48 }
 0x120   :  { %12254 = vmatprep.subr.bf16.mxu1 %v12253_v49 }
 0x122   :  { %10853 = vmatmul.mubr.f32.vlgmr.msra.gmra.mrb[0].mxu1 %v645_v60 }
 0x123   :  { %12256 = vmatpush3.bf16.msra.mxu1 %v12253_v49  ;;  %10863 = vmatprep.mubr.f32.mxu1 %v636_v0 }
 0x124   :  { %12258 = vmatprep.subr.bf16.mxu1 %v12257_v50 }
 0x127   :  { %12260 = vmatpush3.bf16.msra.mxu1 %v12257_v50 }
 0x128   :  { %12262 = vmatprep.subr.bf16.mxu1 %v13632_v25 }
 0x12a   :  { %10864 = vmatmul.mubr.f32.vlgmr.msra.gmra.mrb[0].mxu1 %v646_v63 }
 0x12b   :  { %12264 = vmatpush3.bf16.msra.mxu1 %v13632_v25  ;;  %10874 = vmatprep.mubr.f32.mxu1 %v637_v2 }
 0x12c   :  { %12266 = vmatprep.subr.bf16.mxu1 %v13642_v34 }
 0x12f   :  { %12268 = vmatpush3.bf16.msra.mxu1 %v13642_v34 }
 0x130   :  { %12270 = vmatprep.subr.bf16.mxu1 %v12269_v51 }
 0x132   :  { %10875 = vmatmul.mubr.f32.vlgmr.msra.gmra.mrb[0].mxu1 %v647_v1 }
 0x133   :  { %12272 = vmatpush3.bf16.msra.mxu1 %v12269_v51  ;;  %10885 = vmatprep.mubr.f32.mxu1 %v635_v62 }
 0x134   :  { %12274 = vmatprep.subr.bf16.mxu1 %v12273_v52 }
 0x137   :  { %12276 = vmatpush3.bf16.msra.mxu1 %v12273_v52 }
 0x138   :  { %12278 = vmatprep.subr.bf16.mxu1 %v13632_v25 }
 0x13a   :  { %10886 = vmatmul.mubr.f32.vlgmr.msra.gmra.mrb[0].mxu1 %v645_v60 }
 0x13b   :  { %12280 = vmatpush3.bf16.msra.mxu1 %v13632_v25  ;;  %10896 = vmatprep.mubr.f32.mxu1 %v635_v62 }
 0x13c   :  { %12282 = vmatprep.subr.bf16.mxu1 %v13642_v34 }
 0x13f   :  { %12284 = vmatpush3.bf16.msra.mxu1 %v13642_v34 }
 0x142   :  { %10897 = vmatmul.mubr.f32.vlgmr.msra.gmra.mrb[0].mxu1 %v645_v60 }
 0x215   :  { %v10898_v8 = vpop.f32.mrb[0].mxu1 }
 0x216   :  { %v1084_v9 = vpop.f32.mrb[1].mxu1  ;;  %v13681_v13 = vadd.f32 %v10898_v8, %v9991_v7 }
 0x217   :  { %v13671_v10 = vadd.f32 %v9991_v7, %v1084_v9 }
 0x218   :  { %v1127_v4 = vsel %vm1124_vm3, %v13681_v13, 0 }
 0x219   :  { %1100 = vrot.lane.b32.xlu1 %v13671_v10, %s13585_s4  ;;  %1096 = vrot.lane.b32.xlu0 %v13671_v10, %s13586_s5  ;;  %v1125_v11 = vsel %vm1124_vm3, %v13671_v10, 0 }
 0x21a   :  { %v13679_v12 = vand.u32 4294901760, %v1125_v11 }
 0x21c   :  { %v13684_v14 = vsub.f32 %v1125_v11, %v13679_v12 }
 0x21d   :  { %1102 = vrot.lane.b32.xlu1 %v13681_v13, %s13585_s4  ;;  %1098 = vrot.lane.b32.xlu0 %v13681_v13, %s13586_s5 }
 0x21e   :  { %v1232_v15 = vand.u32 4294901760, %v13684_v14 }
 0x220   :  { %v1233_v16 = vsub.f32 %v13684_v14, %v1232_v15 }
 0x221   :  { %1106 = vrot.lane.b32.xlu1 %v13681_v13, %s13587_s6  ;;  %1104 = vrot.lane.b32.xlu0 %v13671_v10, %s13587_s6 }
 0x222   :  { %v1234_v17 = vand.u32 4294901760, %v1233_v16 }
 0x224   :  { %10915 = vmatprep.mubr.f32.mxu0 %v1234_v17  ;;  %v13771_v17 = vand.u32 4294901760, %v1127_v4 }
 0x225   :  { %1110 = vrot.lane.b32.xlu1 %v13681_v13, %s13588_s7  ;;  %1108 = vrot.lane.b32.xlu0 %v13671_v10, %s13588_s7 }
 0x28b   :  { %v13702_v18 = vpop.permute.xlu1 %1100  ;;  %v13704_v19 = vpop.permute.xlu0 %1096 }
 0x28c   :  { %1112 = vrot.lane.b32.xlu0 %v13704_v19, %s13588_s7  ;;  %v1129_v7 = vsel %vm1124_vm3, %v13704_v19, 0 }
 0x28f   :  { %v13708_v20 = vpop.permute.xlu1 %1102  ;;  %v13710_v21 = vpop.permute.xlu0 %1098 }
 0x290   :  { %1116 = vrot.lane.b32.xlu0 %v13702_v18, %s13588_s7  ;;  %1114 = vrot.lane.b32.xlu1 %v13710_v21, %s13588_s7 }
 0x293   :  { %v13716_v22 = vpop.permute.xlu1 %1106  ;;  %v13718_v23 = vpop.permute.xlu0 %1104 }
 0x294   :  { %1118 = vrot.lane.b32.xlu1 %v13708_v20, %s13588_s7  ;;  %1120 = vrot.lane.b32.xlu0 %v13718_v23, %s13588_s7 }
 0x297   :  { %v1111_v24 = vpop.permute.xlu1 %1110  ;;  %v1109_v25 = vpop.permute.xlu0 %1108 }
 0x298   :  { %v1143_v26 = vsel %vm1124_vm3, %v1111_v24, 0  ;;  %v1141_v27 = vsel %vm1124_vm3, %v1109_v25, 0  ;;  %1122 = vrot.lane.b32.xlu1 %v13716_v22, %s13588_s7  ;;  %v13775_v25 = vand.u32 4294901760, %v1129_v7 }
 0x299   :  { %v1161_v28 = vand.u32 4294901760, %v1143_v26  ;;  %v1158_v29 = vand.u32 4294901760, %v1141_v27 }
 0x29b   :  { %v1319_v30 = vsub.f32 %v1143_v26, %v1161_v28  ;;  %v13728_v31 = vpack.c.bf16 %v1161_v28, %v1158_v29  ;;  %v1312_v32 = vsub.f32 %v1141_v27, %v1158_v29  ;;  %v1131_v26 = vsel %vm1124_vm3, %v13710_v21, 0 }
 0x29c   :  { %v1133_v28 = vsel %vm1124_vm3, %v13702_v18, 0 }
 0x29d   :  { %v1320_v33 = vand.u32 4294901760, %v1319_v30  ;;  %v1313_v34 = vand.u32 4294901760, %v1312_v32  ;;  %12286 = vmatprep.subr.bf16.mxu0 %v13728_v31  ;;  %v13731_v35 = vpack.c.bf16 %v1319_v30, %v1312_v32 }
 0x29e   :  { %12288 = vmatpush3.bf16.xpose.msra.mxu0 %v13728_v31 }
 0x29f   :  { %v1321_v36 = vsub.f32 %v1319_v30, %v1320_v33  ;;  %v1314_v37 = vsub.f32 %v1312_v32, %v1313_v34  ;;  %v13734_v38 = vpack.c.bf16 %v1320_v33, %v1313_v34  ;;  %v13789_v33 = vsub.f32 %v1127_v4, %v13771_v17 }
 0x2a0   :  { %v13791_v34 = vand.u32 4294901760, %v1131_v26 }
 0x2a1   :  { %v1315_v39 = vand.u32 4294901760, %v1314_v37  ;;  %v1322_v40 = vand.u32 4294901760, %v1321_v36  ;;  %v13798_v37 = vand.u32 4294901760, %v1133_v28 }
 0x2a3   :  { %v13736_v41 = vpack.c.bf16 %v1322_v40, %v1315_v39  ;;  %v13801_v39 = vsub.f32 %v1129_v7, %v13775_v25  ;;  %v1135_v40 = vsel %vm1124_vm3, %v13708_v20, 0 }
 0x2fe   :  { %v1113_v42 = vpop.permute.xlu0 %1112 }
 0x2ff   :  { %v1145_v43 = vsel %vm1124_vm3, %v1113_v42, 0  ;;  %v1137_v42 = vsel %vm1124_vm3, %v13718_v23, 0 }
 0x300   :  { %v1164_v44 = vand.u32 4294901760, %v1145_v43 }
 0x302   :  { %v1115_v45 = vpop.permute.xlu1 %1114  ;;  %v1117_v46 = vpop.permute.xlu0 %1116  ;;  %v13741_v50 = vsub.f32 %v1145_v43, %v1164_v44  ;;  %v1242_v43 = vand.u32 4294901760, %v13789_v33 }
 0x303   :  { %v1147_v47 = vsel %vm1124_vm3, %v1115_v45, 0  ;;  %v1149_v48 = vsel %vm1124_vm3, %v1117_v46, 0  ;;  %v13811_v45 = vsub.f32 %v1131_v26, %v13791_v34  ;;  %v13814_v46 = vsub.f32 %v1133_v28, %v13798_v37 }
 0x304   :  { %v1167_v49 = vand.u32 4294901760, %v1147_v47  ;;  %v1170_v51 = vand.u32 4294901760, %v1149_v48  ;;  %v1327_v63 = vand.u32 4294901760, %v13741_v50 }
 0x306   :  { %v13743_v52 = vpack.c.bf16 %v1167_v49, %v1164_v44  ;;  %v13745_v53 = vsub.f32 %v1147_v47, %v1167_v49  ;;  %v1119_v54 = vpop.permute.xlu1 %1118  ;;  %v1121_v55 = vpop.permute.xlu0 %1120  ;;  %v13752_v0 = vsub.f32 %v1149_v48, %v1170_v51  ;;  %v13808_v44 = vand.u32 4294901760, %v1135_v40 }
 0x307   :  { %v1151_v57 = vsel %vm1124_vm3, %v1119_v54, 0  ;;  %v1153_v59 = vsel %vm1124_vm3, %v1121_v55, 0  ;;  %v1139_v47 = vsel %vm1124_vm3, %v13716_v22, 0  ;;  %v13818_v48 = vand.u32 4294901760, %v1137_v42 }
 0x308   :  { %v1334_v60 = vand.u32 4294901760, %v13745_v53  ;;  %v1173_v61 = vand.u32 4294901760, %v1151_v57  ;;  %v1176_v62 = vand.u32 4294901760, %v1153_v59  ;;  %12290 = vmatprep.subr.bf16.mxu0 %v13743_v52  ;;  %v1341_v16 = vand.u32 4294901760, %v13752_v0 }
 0x309   :  { %12292 = vmatpush3.bf16.xpose.msra.mxu0 %v13743_v52  ;;  %v1252_v49 = vand.u32 4294901760, %v13801_v39  ;;  %v1243_v54 = vsub.f32 %v13789_v33, %v1242_v43  ;;  %v13827_v55 = vsub.f32 %v1135_v40, %v13808_v44 }
 0x30a   :  { %v13755_v1 = vpack.c.bf16 %v1173_v61, %v1170_v51  ;;  %v13757_v2 = vsub.f32 %v1151_v57, %v1173_v61  ;;  %v1123_v3 = vpop.permute.xlu1 %1122  ;;  %v13762_v6 = vpack.c.bf16 %v1334_v60, %v1327_v63  ;;  %v13767_v9 = vsub.f32 %v1153_v59, %v1176_v62 }
 0x30b   :  { %v1155_v5 = vsel %vm1124_vm3, %v1123_v3, 0  ;;  %v1335_v51 = vsub.f32 %v13745_v53, %v1334_v60  ;;  %v13829_v57 = vand.u32 4294901760, %v1139_v47  ;;  %v1328_v59 = vsub.f32 %v13741_v50, %v1327_v63 }
 0x30c   :  { %v1348_v8 = vand.u32 4294901760, %v13757_v2  ;;  %v1179_v11 = vand.u32 4294901760, %v1155_v5  ;;  %12294 = vmatprep.subr.bf16.mxu0 %v13755_v1  ;;  %v1355_v29 = vand.u32 4294901760, %v13767_v9  ;;  %v15387_v61 = vand.u32 4294901760, %v13811_v45 }
 0x30d   :  { %v1253_v60 = vsub.f32 %v13801_v39, %v1252_v49  ;;  %v15388_v3 = vand.u32 4294901760, %v13814_v46  ;;  %v1336_v4 = vand.u32 4294901760, %v1335_v51  ;;  %v13842_v7 = vsub.f32 %v1139_v47, %v13829_v57 }
 0x30e   :  { %v13773_v24 = vsub.f32 %v1155_v5, %v1179_v11  ;;  %v13779_v27 = vpack.c.bf16 %v1348_v8, %v1341_v16  ;;  %v13784_v30 = vpack.c.bf16 %v1179_v11, %v1176_v62  ;;  %v13835_v62 = vsub.f32 %v1137_v42, %v13818_v48 }
 0x30f   :  { %v1244_v5 = vand.u32 4294901760, %v1243_v54  ;;  %v1329_v11 = vand.u32 4294901760, %v1328_v59  ;;  %v1263_v63 = vsub.f32 %v13811_v45, %v15387_v61  ;;  %v1282_v26 = vand.u32 4294901760, %v13827_v55 }
 0x310   :  { %v1362_v32 = vand.u32 4294901760, %v13773_v24  ;;  %v1254_v28 = vand.u32 4294901760, %v1253_v60  ;;  %v1273_v40 = vsub.f32 %v13814_v46, %v15388_v3  ;;  %v1292_v42 = vand.u32 4294901760, %v13835_v62 }
 0x311   :  { %12296 = vmatpush3.bf16.xpose.msra.mxu0 %v13755_v1  ;;  %v1349_v51 = vsub.f32 %v13757_v2, %v1348_v8  ;;  %v12305_v54 = vpack.c.bf16 %v1336_v4, %v1329_v11  ;;  %v1342_v47 = vsub.f32 %v13752_v0, %v1341_v16  ;;  %v1264_v59 = vand.u32 4294901760, %v1263_v63 }
 0x312   :  { %12298 = vmatprep.subr.bf16.mxu0 %v13784_v30  ;;  %v13796_v36 = vpack.c.bf16 %v1362_v32, %v1355_v29  ;;  %v1283_v60 = vsub.f32 %v13827_v55, %v1282_v26  ;;  %v1302_v61 = vand.u32 4294901760, %v13842_v7  ;;  %v1274_v3 = vand.u32 4294901760, %v1273_v40 }
 0x313   :  { %v1293_v8 = vsub.f32 %v13835_v62, %v1292_v42  ;;  %v1350_v4 = vand.u32 4294901760, %v1349_v51  ;;  %v1363_v63 = vsub.f32 %v13773_v24, %v1362_v32  ;;  %v1356_v40 = vsub.f32 %v13767_v9, %v1355_v29 }
 0x314   :  { %v1303_v16 = vsub.f32 %v13842_v7, %v1302_v61  ;;  %v12321_v32 = vpack.c.bf16 %v13745_v53, %v13741_v50  ;;  %v12325_v29 = vpack.c.bf16 %v13757_v2, %v13752_v0 }
 0x315   :  { %v1294_v11 = vand.u32 4294901760, %v1293_v8 }
 0x316   :  { %v1304_v51 = vand.u32 4294901760, %v1303_v16 }
 0x319   :  { %12300 = vmatpush3.bf16.xpose.msra.mxu0 %v13784_v30 }
 0x31a   :  { %12302 = vmatprep.subr.bf16.mxu0 %v13736_v41 }
 0x320   :  { %10916 = vmatmul.mubr.f32.vlgmr.msra.gmra.mrb[2].mxu0 %v1244_v5  ;;  %v1284_v5 = vand.u32 4294901760, %v1283_v60 }
 0x321   :  { %10918 = vmatprep.mubr.f32.mxu0 %v1254_v28  ;;  %12304 = vmatpush3.bf16.xpose.msra.mxu0 %v13736_v41  ;;  %v1343_v41 = vand.u32 4294901760, %v1342_v47  ;;  %v1357_v47 = vand.u32 4294901760, %v1356_v40 }
 0x322   :  { %12306 = vmatprep.subr.bf16.mxu0 %v12305_v54 }
 0x323   :  { %v12309_v28 = vpack.c.bf16 %v1350_v4, %v1343_v41 }
 0x324   :  { %10919 = vmatmul.mubr.f32.gmra.mrb[4].mxu0 %v1264_v59 }
 0x325   :  { %10921 = vmatprep.mubr.f32.mxu0 %v1274_v3  ;;  %v1364_v3 = vand.u32 4294901760, %v1363_v63 }
 0x327   :  { %v12313_v59 = vpack.c.bf16 %v1364_v3, %v1357_v47 }
 0x328   :  { %10922 = vmatmul.mubr.f32.gmra.mrb[6].mxu0 %v1284_v5 }
 0x329   :  { %10924 = vmatprep.mubr.f32.mxu0 %v1294_v11  ;;  %12308 = vmatpush3.bf16.xpose.msra.mxu0 %v12305_v54 }
 0x32a   :  { %12310 = vmatprep.subr.bf16.mxu0 %v12309_v28 }
 0x32c   :  { %10925 = vmatmul.mubr.f32.gmra.mrb[8].mxu0 %v1304_v51 }
 0x32d   :  { %10943 = vmatprep.mubr.f32.mxu0 %v13679_v12 }
 0x331   :  { %12312 = vmatpush3.bf16.xpose.msra.mxu0 %v12309_v28 }
 0x332   :  { %12314 = vmatprep.subr.bf16.mxu0 %v12313_v59 }
 0x339   :  { %12316 = vmatpush3.bf16.xpose.msra.mxu0 %v12313_v59 }
 0x33a   :  { %12318 = vmatprep.subr.bf16.mxu0 %v13731_v35 }
 0x340   :  { %10944 = vmatmul.mubr.f32.vlgmr.msra.gmra.mrb[2].mxu0 %v13771_v17 }
 0x341   :  { %10946 = vmatprep.mubr.f32.mxu0 %v13775_v25  ;;  %12320 = vmatpush3.bf16.xpose.msra.mxu0 %v13731_v35  ;;  %v12329_v35 = vpack.c.bf16 %v13773_v24, %v13767_v9  ;;  %v20_v9 = vld [vmem:[%s15384_s1 + $0x30] sm:$0xff] }
 0x342   :  { %12322 = vmatprep.subr.bf16.mxu0 %v12321_v32 }
 0x344   :  { %10947 = vmatmul.mubr.f32.gmra.mrb[4].mxu0 %v13791_v34 }
 0x345   :  { %10949 = vmatprep.mubr.f32.mxu0 %v13798_v37 }
 0x348   :  { %10950 = vmatmul.mubr.f32.gmra.mrb[6].mxu0 %v13808_v44 }
 0x349   :  { %10952 = vmatprep.mubr.f32.mxu0 %v13818_v48  ;;  %12324 = vmatpush3.bf16.xpose.msra.mxu0 %v12321_v32 }
 0x34a   :  { %12326 = vmatprep.subr.bf16.mxu0 %v12325_v29 }
 0x34c   :  { %10953 = vmatmul.mubr.f32.gmra.mrb[8].mxu0 %v13829_v57 }
 0x34d   :  { %10971 = vmatprep.mubr.f32.mxu0 %v13684_v14  ;;  %v15392_v14 = vand.u32 4294901760, %v13811_v45 }
 0x351   :  { %12328 = vmatpush3.bf16.xpose.msra.mxu0 %v12325_v29 }
 0x352   :  { %12330 = vmatprep.subr.bf16.mxu0 %v12329_v35 }
 0x359   :  { %12332 = vmatpush3.bf16.xpose.msra.mxu0 %v12329_v35 }
 0x35a   :  { %12334 = vmatprep.subr.bf16.mxu0 %v13728_v31 }
 0x360   :  { %10972 = vmatmul.mubr.f32.vlgmr.msra.gmra.mrb[2].mxu0 %v13789_v33 }
 0x361   :  { %10974 = vmatprep.mubr.f32.mxu0 %v13801_v39  ;;  %12336 = vmatpush3.bf16.xpose.msra.mxu0 %v13728_v31 }
 0x362   :  { %12338 = vmatprep.subr.bf16.mxu0 %v13743_v52 }
 0x364   :  { %10975 = vmatmul.mubr.f32.gmra.mrb[4].mxu0 %v13811_v45 }
 0x365   :  { %10977 = vmatprep.mubr.f32.mxu0 %v13814_v46 }
 0x368   :  { %10978 = vmatmul.mubr.f32.gmra.mrb[6].mxu0 %v13827_v55 }
 0x369   :  { %10980 = vmatprep.mubr.f32.mxu0 %v13835_v62  ;;  %12340 = vmatpush3.bf16.xpose.msra.mxu0 %v13743_v52 }
 0x36a   :  { %12342 = vmatprep.subr.bf16.mxu0 %v13755_v1 }
 0x36c   :  { %10981 = vmatmul.mubr.f32.gmra.mrb[8].mxu0 %v13842_v7 }
 0x36d   :  { %10999 = vmatprep.mubr.f32.mxu0 %v1232_v15  ;;  %v15393_v15 = vand.u32 4294901760, %v13814_v46  ;;  %v24_v46 = vld [vmem:[%s15384_s1 + $0x50] sm:$0xff] }
 0x371   :  { %12344 = vmatpush3.bf16.xpose.msra.mxu0 %v13755_v1 }
 0x372   :  { %12346 = vmatprep.subr.bf16.mxu0 %v13784_v30 }
 0x379   :  { %12348 = vmatpush3.bf16.xpose.msra.mxu0 %v13784_v30 }
 0x37a   :  { %12350 = vmatprep.subr.bf16.mxu0 %v13734_v38 }
 0x380   :  { %11000 = vmatmul.mubr.f32.vlgmr.msra.gmra.mrb[2].mxu0 %v1242_v43 }
 0x381   :  { %11002 = vmatprep.mubr.f32.mxu0 %v1252_v49  ;;  %12352 = vmatpush3.bf16.xpose.msra.mxu0 %v13734_v38 }
 0x382   :  { %12354 = vmatprep.subr.bf16.mxu0 %v13762_v6 }
 0x384   :  { %11003 = vmatmul.mubr.f32.gmra.mrb[4].mxu0 %v15392_v14 }
 0x385   :  { %11005 = vmatprep.mubr.f32.mxu0 %v15393_v15 }
 0x388   :  { %11006 = vmatmul.mubr.f32.gmra.mrb[6].mxu0 %v1282_v26 }
 0x389   :  { %11008 = vmatprep.mubr.f32.mxu0 %v1292_v42  ;;  %12356 = vmatpush3.bf16.xpose.msra.mxu0 %v13762_v6 }
 0x38a   :  { %12358 = vmatprep.subr.bf16.mxu0 %v13779_v27 }
 0x38c   :  { %11009 = vmatmul.mubr.f32.gmra.mrb[8].mxu0 %v1302_v61  ;;  %v23_v61 = vld [vmem:[%s15384_s1 + $0x48] sm:$0xff] }
 0x38d   :  { %11027 = vmatprep.mubr.f32.mxu0 %v13679_v12 }
 0x391   :  { %12360 = vmatpush3.bf16.xpose.msra.mxu0 %v13779_v27 }
 0x392   :  { %12362 = vmatprep.subr.bf16.mxu0 %v13796_v36 }
 0x399   :  { %12364 = vmatpush3.bf16.xpose.msra.mxu0 %v13796_v36 }
 0x39a   :  { %12366 = vmatprep.subr.bf16.mxu0 %v13728_v31 }
 0x3a0   :  { %11028 = vmatmul.mubr.f32.vlgmr.msra.gmra.mrb[2].mxu0 %v13771_v17 }
 0x3a1   :  { %11030 = vmatprep.mubr.f32.mxu0 %v13775_v25  ;;  %12368 = vmatpush3.bf16.xpose.msra.mxu0 %v13728_v31  ;;  %v17_v31 = vld [vmem:[%s15384_s1 + $0x18] sm:$0xff] }
 0x3a2   :  { %12370 = vmatprep.subr.bf16.mxu0 %v13743_v52 }
 0x3a4   :  { %11031 = vmatmul.mubr.f32.gmra.mrb[4].mxu0 %v13791_v34 }
 0x3a5   :  { %11033 = vmatprep.mubr.f32.mxu0 %v13798_v37 }
 0x3a8   :  { %11034 = vmatmul.mubr.f32.gmra.mrb[6].mxu0 %v13808_v44 }
 0x3a9   :  { %11036 = vmatprep.mubr.f32.mxu0 %v13818_v48  ;;  %12372 = vmatpush3.bf16.xpose.msra.mxu0 %v13743_v52 }
 0x3aa   :  { %12374 = vmatprep.subr.bf16.mxu0 %v13755_v1 }
 0x3ac   :  { %11037 = vmatmul.mubr.f32.gmra.mrb[8].mxu0 %v13829_v57 }
 0x3ad   :  { %11055 = vmatprep.mubr.f32.mxu0 %v13679_v12  ;;  %v18_v12 = vld [vmem:[%s15384_s1 + $0x20] sm:$0xff] }
 0x3b1   :  { %12376 = vmatpush3.bf16.xpose.msra.mxu0 %v13755_v1  ;;  %v19_v1 = vld [vmem:[%s15384_s1 + $0x28] sm:$0xff] }
 0x3b2   :  { %12378 = vmatprep.subr.bf16.mxu0 %v13784_v30 }
 0x3b9   :  { %12380 = vmatpush3.bf16.xpose.msra.mxu0 %v13784_v30 }
 0x3c0   :  { %11056 = vmatmul.mubr.f32.vlgmr.msra.gmra.mrb[2].mxu0 %v13771_v17 }
 0x3c1   :  { %11058 = vmatprep.mubr.f32.mxu0 %v13775_v25  ;;  %v21_v25 = vld [vmem:[%s15384_s1 + $0x38] sm:$0xff] }
 0x3c4   :  { %11059 = vmatmul.mubr.f32.gmra.mrb[4].mxu0 %v13791_v34  ;;  %v22_v34 = vld [vmem:[%s15384_s1 + $0x40] sm:$0xff] }
 0x3c5   :  { %11061 = vmatprep.mubr.f32.mxu0 %v13798_v37 }
 0x3c8   :  { %11062 = vmatmul.mubr.f32.gmra.mrb[6].mxu0 %v13808_v44 }
 0x3c9   :  { %11064 = vmatprep.mubr.f32.mxu0 %v13818_v48 }
 0x3cc   :  { %11065 = vmatmul.mubr.f32.gmra.mrb[8].mxu0 %v13829_v57 }
 0x493   :  { %v11057_v38 = vpop.f32.mrb[2].mxu0 }
 0x494   :  { %v13159_v50 = vadd.f32 %v11057_v38, %v18_v12  ;;  %v1949_v52 = vpop.f32.mrb[3].mxu0 }
 0x495   :  { %v13160_v53 = vadd.f32 %v1949_v52, %v17_v31 }
 0x496   :  { %v1999_v0 = vsel %vm1995_vm4, %v13159_v50, -inf }
 0x497   :  { %2000 = vmax.xlane.f32.xlu1 %v1999_v0  ;;  %v11060_v2 = vpop.f32.mrb[4].mxu0  ;;  %v1996_v6 = vsel %vm1995_vm4, %v13160_v53, -inf }
 0x498   :  { %v1961_v17 = vpop.f32.mrb[5].mxu0  ;;  %1997 = vmax.xlane.f32.xlu0 %v1996_v6  ;;  %v13161_v27 = vadd.f32 %v11060_v2, %v20_v9 }
 0x499   :  { %v13162_v24 = vadd.f32 %v1961_v17, %v19_v1 }
 0x49a   :  { %v2005_v45 = vsel %vm1995_vm4, %v13161_v27, -inf }
 0x49b   :  { %v11063_v30 = vpop.f32.mrb[6].mxu0  ;;  %v2002_v33 = vsel %vm1995_vm4, %v13162_v24, -inf }
 0x49c   :  { %v1973_v36 = vpop.f32.mrb[7].mxu0  ;;  %2003 = vmax.xlane.f32.xlu0 %v2002_v33  ;;  %v13163_v39 = vadd.f32 %v11063_v30, %v22_v34 }
 0x49d   :  { %v13164_v37 = vadd.f32 %v1973_v36, %v21_v25 }
 0x49e   :  { %v2011_v55 = vsel %vm1995_vm4, %v13163_v39, -inf }
 0x49f   :  { %v11066_v43 = vpop.f32.mrb[8].mxu0  ;;  %v2008_v44 = vsel %vm1995_vm4, %v13164_v37, -inf }
 0x4a0   :  { %v1985_v48 = vpop.f32.mrb[9].mxu0  ;;  %2009 = vmax.xlane.f32.xlu1 %v2008_v44  ;;  %2006 = vmax.xlane.f32.xlu0 %v2005_v45  ;;  %v13165_v49 = vadd.f32 %v11066_v43, %v24_v46 }
 0x4a1   :  { %v13986_v62 = vadd.f32 %v1985_v48, %v23_v61 }
 0x4a2   :  { %v2017_v57 = vsel %vm1995_vm4, %v13165_v49, -inf }
 0x4a3   :  { %v2014_v7 = vsel %vm1995_vm4, %v13986_v62, -inf }
 0x4a4   :  { %2012 = vmax.xlane.f32.xlu0 %v2011_v55 }
 0x4a8   :  { %2018 = vmax.xlane.f32.xlu0 %v2017_v57 }
 0x4b1   :  { %2092 = vrot.lane.b32.xlu1 %v13671_v10, %s13589_s21 }
 0x4be   :  { %2094 = vrot.lane.b32.xlu0 %v13681_v13, %s13589_s21 }
 0x4c2   :  { %2100 = vrot.lane.b32.xlu0 %v13702_v18, %s13589_s21 }
 0x4d5   :  { %2015 = vmax.xlane.f32.xlu1 %v2014_v7 }
 0x4e6   :  { %2096 = vrot.lane.b32.xlu1 %v13704_v19, %s13589_s21 }
 0x4ea   :  { %2098 = vrot.lane.b32.xlu1 %v13710_v21, %s13589_s21 }
 0x4ee   :  { %2102 = vrot.lane.b32.xlu1 %v13708_v20, %s13589_s21 }
 0x524   :  { %v2001_v10 = vpop.xlane.xlu1 %2000 }
 0x525   :  { %v2021_v13 = vsub.f32 %v13159_v50, %v2001_v10  ;;  %v1998_v18 = vpop.xlane.xlu0 %1997 }
 0x526   :  { %v2020_v26 = vsub.f32 %v13160_v53, %v1998_v18 }
 0x527   :  { %v2030_v42 = vmul.f32 1.442695, %v2021_v13 }
 0x528   :  { %v2028_v54 = vmul.f32 1.442695, %v2020_v26 }
 0x529   :  { %13473 = vpow2.f32 %v2030_v42  ;;  %v2004_v60 = vpop.xlane.xlu0 %2003 }
 0x52a   :  { %13475 = vpow2.f32 %v2028_v54  ;;  %v2022_v8 = vsub.f32 %v13162_v24, %v2004_v60 }
 0x52c   :  { %v2032_v4 = vmul.f32 1.442695, %v2022_v8 }
 0x52d   :  { %v2010_v5 = vpop.xlane.xlu1 %2009  ;;  %v2007_v41 = vpop.xlane.xlu0 %2006 }
 0x52e   :  { %13477 = vpow2.f32 %v2032_v4  ;;  %v2024_v19 = vsub.f32 %v13164_v37, %v2010_v5  ;;  %v2023_v16 = vsub.f32 %v13161_v27, %v2007_v41 }
 0x530   :  { %v2036_v21 = vmul.f32 1.442695, %v2024_v19  ;;  %v2034_v11 = vmul.f32 1.442695, %v2023_v16 }
 0x531   :  { %v2093_v63 = vpop.permute.xlu1 %2092  ;;  %v2013_v20 = vpop.xlane.xlu0 %2012 }
 0x532   :  { %13479 = vpow2.f32 %v2036_v21  ;;  %v2141_v28 = vand.u32 4294901760, %v2093_v63  ;;  %v2025_v40 = vsub.f32 %v13163_v39, %v2013_v20 }
 0x533   :  { %v13996_v51 = vpop.eup %13473  ;;  %13481 = vpow2.f32 %v2034_v11 }
 0x534   :  { %v13998_v3 = vpop.eup %13475  ;;  %v2295_v47 = vsub.f32 %v2093_v63, %v2141_v28  ;;  %v2038_v59 = vmul.f32 1.442695, %v2025_v40  ;;  %v2047_v32 = vsel %vm1995_vm4, %v13996_v51, 0.0 }
 0x535   :  { %2048 = vadd.xlane.f32.xlu0 %v2047_v32  ;;  %v2019_v29 = vpop.xlane.xlu0 %2018  ;;  %v2044_v35 = vsel %vm1995_vm4, %v13998_v3, 0.0 }
 0x536   :  { %13483 = vpow2.f32 %v2038_v59  ;;  %v2027_v14 = vsub.f32 %v13165_v49, %v2019_v29  ;;  %2045 = vadd.xlane.f32.xlu1 %v2044_v35  ;;  %v2296_v50 = vand.u32 4294901760, %v2295_v47 }
 0x538   :  { %v14004_v15 = vpop.eup %13477  ;;  %v2042_v12 = vmul.f32 1.442695, %v2027_v14  ;;  %v2297_v9 = vsub.f32 %v2295_v47, %v2296_v50 }
 0x539   :  { %v2095_v31 = vpop.permute.xlu0 %2094  ;;  %v2050_v38 = vsel %vm1995_vm4, %v14004_v15, 0.0 }
 0x53a   :  { %13485 = vpow2.f32 %v2042_v12  ;;  %v2144_v52 = vand.u32 4294901760, %v2095_v31  ;;  %2051 = vadd.xlane.f32.xlu1 %v2050_v38  ;;  %v2298_v36 = vand.u32 4294901760, %v2297_v9 }
 0x53c   :  { %v14008_v53 = vpop.eup %13479  ;;  %v14010_v0 = vpack.c.bf16 %v2144_v52, %v2141_v28  ;;  %v2302_v1 = vsub.f32 %v2095_v31, %v2144_v52 }
 0x53d   :  { %v14012_v2 = vpop.eup %13481  ;;  %v2056_v6 = vsel %vm1995_vm4, %v14008_v53, 0.0  ;;  %v2101_v46 = vpop.permute.xlu0 %2100 }
 0x53e   :  { %v2303_v17 = vand.u32 4294901760, %v2302_v1  ;;  %2057 = vadd.xlane.f32.xlu1 %v2056_v6  ;;  %v2053_v24 = vsel %vm1995_vm4, %v14012_v2, 0.0  ;;  %12382 = vmatprep.subr.bf16.mxu1 %v14010_v0  ;;  %v14019_v25 = vpack.c.bf16 %v2302_v1, %v2295_v47  ;;  %v2153_v55 = vand.u32 4294901760, %v2101_v46 }
 0x53f   :  { %2054 = vadd.xlane.f32.xlu0 %v2053_v24  ;;  %12384 = vmatpush3.bf16.msra.mxu1 %v14010_v0 }
 0x540   :  { %v14022_v27 = vpop.eup %13483  ;;  %v2304_v30 = vsub.f32 %v2302_v1, %v2303_v17  ;;  %v14024_v33 = vpack.c.bf16 %v2303_v17, %v2296_v50  ;;  %v2323_v10 = vsub.f32 %v2101_v46, %v2153_v55 }
 0x541   :  { %v2059_v34 = vsel %vm1995_vm4, %v14022_v27, 0.0 }
 0x542   :  { %v2305_v37 = vand.u32 4294901760, %v2304_v30  ;;  %v2324_v60 = vand.u32 4294901760, %v2323_v10 }
 0x543   :  { %2060 = vadd.xlane.f32.xlu0 %v2059_v34 }
 0x544   :  { %v14028_v39 = vpop.eup %13485  ;;  %v14030_v43 = vpack.c.bf16 %v2305_v37, %v2298_v36  ;;  %v2325_v63 = vsub.f32 %v2323_v10, %v2324_v60 }
 0x545   :  { %v2065_v44 = vsel %vm1995_vm4, %v14028_v39, 0.0 }
 0x546   :  { %v2326_v14 = vand.u32 4294901760, %v2325_v63 }
 0x547   :  { %2066 = vadd.xlane.f32.xlu0 %v2065_v44 }
 0x55d   :  { %2104 = vrot.lane.b32.xlu0 %v13718_v23, %s13589_s21 }
 0x562   :  { %v2016_v45 = vpop.xlane.xlu1 %2015 }
 0x563   :  { %v2026_v48 = vsub.f32 %v13986_v62, %v2016_v45 }
 0x565   :  { %v2040_v49 = vmul.f32 1.442695, %v2026_v48 }
 0x566   :  { %v2097_v57 = vpop.permute.xlu1 %2096 }
 0x567   :  { %13487 = vpow2.f32 %v2040_v49  ;;  %v2147_v61 = vand.u32 4294901760, %v2097_v57 }
 0x569   :  { %v2309_v7 = vsub.f32 %v2097_v57, %v2147_v61 }
 0x56a   :  { %v2099_v13 = vpop.permute.xlu1 %2098 }
 0x56b   :  { %v2310_v18 = vand.u32 4294901760, %v2309_v7  ;;  %v2150_v26 = vand.u32 4294901760, %v2099_v13 }
 0x56d   :  { %v14037_v42 = vpack.c.bf16 %v2150_v26, %v2147_v61  ;;  %v2316_v54 = vsub.f32 %v2099_v13, %v2150_v26  ;;  %v2311_v23 = vsub.f32 %v2309_v7, %v2310_v18 }
 0x56e   :  { %v2103_v8 = vpop.permute.xlu1 %2102 }
 0x56f   :  { %v2317_v4 = vand.u32 4294901760, %v2316_v54  ;;  %v2156_v5 = vand.u32 4294901760, %v2103_v8  ;;  %12386 = vmatprep.subr.bf16.mxu1 %v14037_v42  ;;  %v14040_v62 = vpack.c.bf16 %v2316_v54, %v2309_v7  ;;  %v2312_v40 = vand.u32 4294901760, %v2311_v23 }
 0x570   :  { %12388 = vmatpush3.bf16.msra.mxu1 %v14037_v42 }
 0x571   :  { %v14043_v41 = vpop.eup %13487  ;;  %v2318_v19 = vsub.f32 %v2316_v54, %v2317_v4  ;;  %v14045_v16 = vpack.c.bf16 %v2156_v5, %v2153_v55  ;;  %v2330_v21 = vsub.f32 %v2103_v8, %v2156_v5  ;;  %v14047_v11 = vpack.c.bf16 %v2317_v4, %v2310_v18 }
 0x572   :  { %v2062_v20 = vsel %vm1995_vm4, %v14043_v41, 0.0 }
 0x573   :  { %v2331_v28 = vand.u32 4294901760, %v2330_v21  ;;  %2063 = vadd.xlane.f32.xlu1 %v2062_v20  ;;  %12390 = vmatprep.subr.bf16.mxu1 %v14045_v16  ;;  %v2319_v47 = vand.u32 4294901760, %v2318_v19  ;;  %v14052_v59 = vpack.c.bf16 %v2330_v21, %v2323_v10 }
 0x574   :  { %12392 = vmatpush3.bf16.msra.mxu1 %v14045_v16 }
 0x575   :  { %v2332_v32 = vsub.f32 %v2330_v21, %v2331_v28  ;;  %v14055_v29 = vpack.c.bf16 %v2319_v47, %v2312_v40  ;;  %v14057_v35 = vpack.c.bf16 %v2331_v28, %v2324_v60 }
 0x577   :  { %v2333_v12 = vand.u32 4294901760, %v2332_v32 }
 0x579   :  { %v14059_v31 = vpack.c.bf16 %v2333_v12, %v2326_v14 }
 0x584   :  { %2106 = vrot.lane.b32.xlu1 %v13716_v22, %s13589_s21 }
 0x5c2   :  { %v2049_v38 = vpop.xlane.xlu0 %2048 }
 0x5c3   :  { %13489 = vrcp.f32 %v2049_v38  ;;  %v2046_v50 = vpop.xlane.xlu1 %2045 }
 0x5c4   :  { %13491 = vrcp.f32 %v2046_v50 }
 0x5c7   :  { %v2052_v52 = vpop.xlane.xlu1 %2051 }
 0x5c8   :  { %13493 = vrcp.f32 %v2052_v52 }
 0x5cb   :  { %v2058_v1 = vpop.xlane.xlu1 %2057 }
 0x5cc   :  { %13495 = vrcp.f32 %v2058_v1  ;;  %v2055_v6 = vpop.xlane.xlu0 %2054 }
 0x5cd   :  { %v13490_v9 = vpop.eup %13489  ;;  %13497 = vrcp.f32 %v2055_v6 }
 0x5ce   :  { %v13492_v17 = vpop.eup %13491  ;;  %v2071_v24 = vmul.f32 %v13490_v9, %v13996_v51 }
 0x5cf   :  { %v2069_v30 = vmul.f32 %v13492_v17, %v13998_v3 }
 0x5d0   :  { %2085 = vst.msk [vmem:[%s15386_s3 + $0x8] sm:$0xff] %vm1995_vm4, %v2071_v24  ;;  %v2061_v22 = vpop.xlane.xlu0 %2060  ;;  %v2120_v10 = vsel %vm1995_vm4, %v2071_v24, 0 }
 0x5d1   :  { %2084 = vst.msk [vmem:[%s15386_s3] sm:$0xff] %vm1995_vm4, %v2069_v30  ;;  %13499 = vrcp.f32 %v2061_v22  ;;  %v2117_v34 = vsel %vm1995_vm4, %v2069_v30, 0  ;;  %v14110_v18 = vand.u32 4294901760, %v2120_v10 }
 0x5d2   :  { %v13494_v36 = vpop.eup %13493  ;;  %v14074_v37 = vand.u32 4294901760, %v2117_v34 }
 0x5d3   :  { %v2073_v51 = vmul.f32 %v13494_v36, %v14004_v15  ;;  %v14117_v60 = vsub.f32 %v2120_v10, %v14110_v18 }
 0x5d4   :  { %v2067_v3 = vpop.xlane.xlu0 %2066  ;;  %v14078_v44 = vsub.f32 %v2117_v34, %v14074_v37 }
 0x5d5   :  { %2086 = vst.msk [vmem:[%s15386_s3 + $0x10] sm:$0xff] %vm1995_vm4, %v2073_v51  ;;  %13501 = vrcp.f32 %v2067_v3  ;;  %v2123_v13 = vsel %vm1995_vm4, %v2073_v51, 0  ;;  %v2225_v63 = vand.u32 4294901760, %v14117_v60 }
 0x5d6   :  { %v13496_v45 = vpop.eup %13495  ;;  %v2215_v46 = vand.u32 4294901760, %v14078_v44 }
 0x5d7   :  { %v13498_v48 = vpop.eup %13497  ;;  %v2077_v49 = vmul.f32 %v13496_v45, %v14008_v53  ;;  %v2226_v50 = vsub.f32 %v14117_v60, %v2225_v63 }
 0x5d8   :  { %v2075_v55 = vmul.f32 %v13498_v48, %v14012_v2  ;;  %v2216_v15 = vsub.f32 %v14078_v44, %v2215_v46 }
 0x5d9   :  { %2088 = vst.msk [vmem:[%s15386_s3 + $0x20] sm:$0xff] %vm1995_vm4, %v2077_v49  ;;  %v2129_v54 = vsel %vm1995_vm4, %v2077_v49, 0  ;;  %v2227_v51 = vand.u32 4294901760, %v2226_v50 }
 0x5da   :  { %2087 = vst.msk [vmem:[%s15386_s3 + $0x18] sm:$0xff] %vm1995_vm4, %v2075_v55  ;;  %v2217_v57 = vand.u32 4294901760, %v2216_v15  ;;  %v2126_v26 = vsel %vm1995_vm4, %v2075_v55, 0  ;;  %v14124_v5 = vand.u32 4294901760, %v2129_v54 }
 0x5db   :  { %v13500_v61 = vpop.eup %13499  ;;  %v14119_v8 = vand.u32 4294901760, %v2126_v26 }
 0x5dc   :  { %v2079_v53 = vmul.f32 %v13500_v61, %v14022_v27  ;;  %11083 = vmatprep.mubr.f32.mxu1 %v2217_v57  ;;  %v14112_v27 = vand.u32 4294901760, %v2123_v13  ;;  %v14135_v32 = vsub.f32 %v2129_v54, %v14124_v5 }
 0x5dd   :  { %v14129_v20 = vsub.f32 %v2126_v26, %v14119_v8 }
 0x5de   :  { %2089 = vst.msk [vmem:[%s15386_s3 + $0x28] sm:$0xff] %vm1995_vm4, %v2079_v53  ;;  %v14122_v4 = vsub.f32 %v2123_v13, %v14112_v27  ;;  %v2132_v19 = vsel %vm1995_vm4, %v2079_v53, 0  ;;  %v2255_v24 = vand.u32 4294901760, %v14135_v32 }
 0x5df   :  { %v13502_v2 = vpop.eup %13501  ;;  %v14131_v28 = vand.u32 4294901760, %v2132_v19  ;;  %v2245_v6 = vand.u32 4294901760, %v14129_v20 }
 0x5e0   :  { %v2083_v7 = vmul.f32 %v13502_v2, %v14028_v39  ;;  %v2105_v39 = vpop.permute.xlu0 %2104  ;;  %v2235_v47 = vand.u32 4294901760, %v14122_v4  ;;  %v2256_v55 = vsub.f32 %v14135_v32, %v2255_v24 }
 0x5e1   :  { %v2159_v21 = vand.u32 4294901760, %v2105_v39  ;;  %v14149_v9 = vsub.f32 %v2132_v19, %v14131_v28  ;;  %v2246_v3 = vsub.f32 %v14129_v20, %v2245_v6 }
 0x5e2   :  { %2091 = vst.msk [vmem:[%s15386_s3 + $0x38] sm:$0xff] %vm1995_vm4, %v2083_v7  ;;  %v2138_v12 = vsel %vm1995_vm4, %v2083_v7, 0  ;;  %v2236_v17 = vsub.f32 %v14122_v4, %v2235_v47  ;;  %v2257_v10 = vand.u32 4294901760, %v2256_v55 }
 0x5e3   :  { %v14138_v38 = vsub.f32 %v2105_v39, %v2159_v21  ;;  %v14155_v30 = vand.u32 4294901760, %v2138_v12  ;;  %v2265_v45 = vand.u32 4294901760, %v14149_v9  ;;  %v2247_v53 = vand.u32 4294901760, %v2246_v3 }
 0x5e4   :  { %v2237_v49 = vand.u32 4294901760, %v2236_v17 }
 0x5e5   :  { %v2338_v36 = vand.u32 4294901760, %v14138_v38  ;;  %v14171_v15 = vsub.f32 %v2138_v12, %v14155_v30  ;;  %v2266_v2 = vsub.f32 %v14149_v9, %v2265_v45 }
 0x5e7   :  { %v2339_v61 = vsub.f32 %v14138_v38, %v2338_v36  ;;  %v2285_v13 = vand.u32 4294901760, %v14171_v15  ;;  %v2267_v54 = vand.u32 4294901760, %v2266_v2 }
 0x5e9   :  { %v2340_v39 = vand.u32 4294901760, %v2339_v61  ;;  %v2286_v19 = vsub.f32 %v14171_v15, %v2285_v13 }
 0x5eb   :  { %v2287_v12 = vand.u32 4294901760, %v2286_v19 }
 0x600   :  { %v2064_v23 = vpop.xlane.xlu1 %2063 }
 0x601   :  { %13503 = vrcp.f32 %v2064_v23 }
 0x604   :  { %v2107_v40 = vpop.permute.xlu1 %2106 }
 0x605   :  { %v2162_v14 = vand.u32 4294901760, %v2107_v40 }
 0x607   :  { %v14143_v52 = vpack.c.bf16 %v2162_v14, %v2159_v21  ;;  %v14145_v1 = vsub.f32 %v2107_v40, %v2162_v14 }
 0x609   :  { %v2345_v22 = vand.u32 4294901760, %v14145_v1  ;;  %12394 = vmatprep.subr.bf16.mxu1 %v14143_v52 }
 0x60a   :  { %12396 = vmatpush3.bf16.msra.mxu1 %v14143_v52 }
 0x60b   :  { %v13504_v34 = vpop.eup %13503  ;;  %12398 = vmatprep.subr.bf16.mxu1 %v14030_v43  ;;  %v2346_v57 = vsub.f32 %v14145_v1, %v2345_v22 }
 0x60c   :  { %v2081_v48 = vmul.f32 %v13504_v34, %v14043_v41 }
 0x60d   :  { %11084 = vmatmul.mubr.f32.vlgmr.msra.gmra.mrb[2].mxu1 %v2227_v51 }
 0x60e   :  { %2090 = vst.msk [vmem:[%s15386_s3 + $0x30] sm:$0xff] %vm1995_vm4, %v2081_v48  ;;  %11086 = vmatprep.mubr.f32.mxu1 %v2237_v49  ;;  %12400 = vmatpush3.bf16.msra.mxu1 %v14030_v43  ;;  %v2135_v41 = vsel %vm1995_vm4, %v2081_v48, 0  ;;  %v2347_v43 = vand.u32 4294901760, %v2346_v57 }
 0x60f   :  { %12402 = vmatprep.subr.bf16.mxu1 %v14055_v29  ;;  %v14189_v7 = vand.u32 4294901760, %v2135_v41 }
 0x610   :  { %v12409_v21 = vpack.c.bf16 %v2347_v43, %v2340_v39 }
 0x611   :  { %11087 = vmatmul.mubr.f32.gmra.mrb[4].mxu1 %v2247_v53  ;;  %v14193_v26 = vsub.f32 %v2135_v41, %v14189_v7 }
 0x612   :  { %11089 = vmatprep.mubr.f32.mxu1 %v2257_v10  ;;  %12404 = vmatpush3.bf16.msra.mxu1 %v14055_v29  ;;  %v12425_v29 = vpack.c.bf16 %v14145_v1, %v14138_v38 }
 0x613   :  { %12406 = vmatprep.subr.bf16.mxu1 %v14059_v31  ;;  %v2275_v23 = vand.u32 4294901760, %v14193_v26 }
 0x615   :  { %11090 = vmatmul.mubr.f32.gmra.mrb[6].mxu1 %v2267_v54  ;;  %v2276_v40 = vsub.f32 %v14193_v26, %v2275_v23 }
 0x616   :  { %12408 = vmatpush3.bf16.msra.mxu1 %v14059_v31 }
 0x617   :  { %12410 = vmatprep.subr.bf16.mxu1 %v12409_v21  ;;  %v2277_v14 = vand.u32 4294901760, %v2276_v40 }
 0x619   :  { %11092 = vmatprep.mubr.f32.mxu1 %v2277_v14 }
 0x61a   :  { %11093 = vmatmul.mubr.f32.gmra.mrb[8].mxu1 %v2287_v12 }
 0x61b   :  { %12412 = vmatpush3.bf16.msra.mxu1 %v12409_v21  ;;  %11111 = vmatprep.mubr.f32.mxu1 %v14074_v37 }
 0x61c   :  { %12414 = vmatprep.subr.bf16.mxu1 %v14019_v25 }
 0x61e   :  { %11112 = vmatmul.mubr.f32.vlgmr.msra.gmra.mrb[2].mxu1 %v14110_v18 }
 0x61f   :  { %12416 = vmatpush3.bf16.msra.mxu1 %v14019_v25  ;;  %11114 = vmatprep.mubr.f32.mxu1 %v14112_v27  ;;  %v12457_v25 = vpack.c.bf16 %v2345_v22, %v2338_v36 }
 0x620   :  { %12418 = vmatprep.subr.bf16.mxu1 %v14040_v62 }
 0x622   :  { %11115 = vmatmul.mubr.f32.gmra.mrb[4].mxu1 %v14119_v8 }
 0x623   :  { %12420 = vmatpush3.bf16.msra.mxu1 %v14040_v62  ;;  %11117 = vmatprep.mubr.f32.mxu1 %v14124_v5 }
 0x624   :  { %12422 = vmatprep.subr.bf16.mxu1 %v14052_v59 }
 0x626   :  { %11118 = vmatmul.mubr.f32.gmra.mrb[6].mxu1 %v14131_v28 }
 0x627   :  { %12424 = vmatpush3.bf16.msra.mxu1 %v14052_v59  ;;  %11120 = vmatprep.mubr.f32.mxu1 %v14189_v7 }
 0x628   :  { %12426 = vmatprep.subr.bf16.mxu1 %v12425_v29 }
 0x62a   :  { %11121 = vmatmul.mubr.f32.gmra.mrb[8].mxu1 %v14155_v30 }
 0x62b   :  { %12428 = vmatpush3.bf16.msra.mxu1 %v12425_v29  ;;  %11139 = vmatprep.mubr.f32.mxu1 %v14078_v44 }
 0x62c   :  { %12430 = vmatprep.subr.bf16.mxu1 %v14010_v0 }
 0x62e   :  { %11140 = vmatmul.mubr.f32.vlgmr.msra.gmra.mrb[2].mxu1 %v14117_v60 }
 0x62f   :  { %12432 = vmatpush3.bf16.msra.mxu1 %v14010_v0  ;;  %11142 = vmatprep.mubr.f32.mxu1 %v14122_v4 }
 0x630   :  { %12434 = vmatprep.subr.bf16.mxu1 %v14037_v42 }
 0x632   :  { %11143 = vmatmul.mubr.f32.gmra.mrb[4].mxu1 %v14129_v20 }
 0x633   :  { %12436 = vmatpush3.bf16.msra.mxu1 %v14037_v42  ;;  %11145 = vmatprep.mubr.f32.mxu1 %v14135_v32 }
 0x634   :  { %12438 = vmatprep.subr.bf16.mxu1 %v14045_v16 }
 0x636   :  { %11146 = vmatmul.mubr.f32.gmra.mrb[6].mxu1 %v14149_v9 }
 0x637   :  { %12440 = vmatpush3.bf16.msra.mxu1 %v14045_v16  ;;  %11148 = vmatprep.mubr.f32.mxu1 %v14193_v26 }
 0x638   :  { %12442 = vmatprep.subr.bf16.mxu1 %v14143_v52 }
 0x63a   :  { %11149 = vmatmul.mubr.f32.gmra.mrb[8].mxu1 %v14171_v15 }
 0x63b   :  { %12444 = vmatpush3.bf16.msra.mxu1 %v14143_v52  ;;  %11167 = vmatprep.mubr.f32.mxu1 %v2215_v46  ;;  %v534_v46 = vld [vmem:[%s15384_s1 + $0x90] sm:$0xff] }
 0x63c   :  { %12446 = vmatprep.subr.bf16.mxu1 %v14024_v33 }
 0x63e   :  { %11168 = vmatmul.mubr.f32.vlgmr.msra.gmra.mrb[2].mxu1 %v2225_v63 }
 0x63f   :  { %12448 = vmatpush3.bf16.msra.mxu1 %v14024_v33  ;;  %11170 = vmatprep.mubr.f32.mxu1 %v2235_v47  ;;  %v533_v33 = vld [vmem:[%s15384_s1 + $0x88] sm:$0xff] }
 0x640   :  { %12450 = vmatprep.subr.bf16.mxu1 %v14047_v11  ;;  %v3024_v62 = vand.u32 4294901760, %v533_v33 }
 0x642   :  { %11171 = vmatmul.mubr.f32.gmra.mrb[4].mxu1 %v2245_v6  ;;  %v3118_v44 = vsub.f32 %v533_v33, %v3024_v62 }
 0x643   :  { %12452 = vmatpush3.bf16.msra.mxu1 %v14047_v11  ;;  %11173 = vmatprep.mubr.f32.mxu1 %v2255_v24 }
 0x644   :  { %12454 = vmatprep.subr.bf16.mxu1 %v14057_v35  ;;  %v3119_v4 = vand.u32 4294901760, %v3118_v44 }
 0x646   :  { %11174 = vmatmul.mubr.f32.gmra.mrb[6].mxu1 %v2265_v45  ;;  %v3120_v47 = vsub.f32 %v3118_v44, %v3119_v4 }
 0x647   :  { %12456 = vmatpush3.bf16.msra.mxu1 %v14057_v35  ;;  %11176 = vmatprep.mubr.f32.mxu1 %v2275_v23 }
 0x648   :  { %12458 = vmatprep.subr.bf16.mxu1 %v12457_v25 }
 0x64a   :  { %11177 = vmatmul.mubr.f32.gmra.mrb[8].mxu1 %v2285_v13 }
 0x64b   :  { %12460 = vmatpush3.bf16.msra.mxu1 %v12457_v25  ;;  %11195 = vmatprep.mubr.f32.mxu1 %v14074_v37 }
 0x64c   :  { %12462 = vmatprep.subr.bf16.mxu1 %v14010_v0 }
 0x64e   :  { %11196 = vmatmul.mubr.f32.vlgmr.msra.gmra.mrb[2].mxu1 %v14110_v18 }
 0x64f   :  { %12464 = vmatpush3.bf16.msra.mxu1 %v14010_v0  ;;  %11198 = vmatprep.mubr.f32.mxu1 %v14112_v27  ;;  %v532_v0 = vld [vmem:[%s15384_s1 + $0x80] sm:$0xff] }
 0x650   :  { %12466 = vmatprep.subr.bf16.mxu1 %v14037_v42 }
 0x652   :  { %11199 = vmatmul.mubr.f32.gmra.mrb[4].mxu1 %v14119_v8 }
 0x653   :  { %12468 = vmatpush3.bf16.msra.mxu1 %v14037_v42  ;;  %11201 = vmatprep.mubr.f32.mxu1 %v14124_v5  ;;  %v3021_v42 = vand.u32 4294901760, %v532_v0 }
 0x654   :  { %12470 = vmatprep.subr.bf16.mxu1 %v14045_v16 }
 0x655   :  { %v14289_v11 = vpack.c.bf16 %v3024_v62, %v3021_v42 }
 0x656   :  { %11202 = vmatmul.mubr.f32.gmra.mrb[6].mxu1 %v14131_v28 }
 0x657   :  { %12472 = vmatpush3.bf16.msra.mxu1 %v14045_v16  ;;  %11204 = vmatprep.mubr.f32.mxu1 %v14189_v7 }
 0x658   :  { %12474 = vmatprep.subr.bf16.mxu1 %v14143_v52 }
 0x65a   :  { %11205 = vmatmul.mubr.f32.gmra.mrb[8].mxu1 %v14155_v30 }
 0x65b   :  { %12476 = vmatpush3.bf16.msra.mxu1 %v14143_v52  ;;  %11223 = vmatprep.mubr.f32.mxu1 %v14074_v37  ;;  %v3111_v37 = vsub.f32 %v532_v0, %v3021_v42  ;;  %v3121_v52 = vand.u32 4294901760, %v3120_v47  ;;  %v9992_v42 = vld [vmem:[%s15384_s1 + $0xa0] ss:$0 sm:$0xff]  ;;  %v541_v47 = vld [vmem:[%s15384_s1 + $0xc8] sm:$0xff] }
 0x65c   :  { %12478 = vmatprep.subr.bf16.mxu1 %v14289_v11 }
 0x65d   :  { %v12493_v3 = vpack.c.bf16 %v3118_v44, %v3111_v37 }
 0x65e   :  { %11224 = vmatmul.mubr.f32.vlgmr.msra.gmra.mrb[2].mxu1 %v14110_v18  ;;  %v535_v18 = vld [vmem:[%s15384_s1 + $0x98] sm:$0xff] }
 0x65f   :  { %11226 = vmatprep.mubr.f32.mxu1 %v14112_v27  ;;  %12480 = vmatpush3.bf16.msra.mxu1 %v14289_v11  ;;  %v3027_v27 = vand.u32 4294901760, %v534_v46  ;;  %v3030_v60 = vand.u32 4294901760, %v535_v18 }
 0x661   :  { %v14302_v20 = vpack.c.bf16 %v3030_v60, %v3027_v27  ;;  %v3125_v32 = vsub.f32 %v534_v46, %v3027_v27  ;;  %v3132_v38 = vsub.f32 %v535_v18, %v3030_v60 }
 0x662   :  { %11227 = vmatmul.mubr.f32.gmra.mrb[4].mxu1 %v14119_v8  ;;  %v3112_v8 = vand.u32 4294901760, %v3111_v37 }
 0x663   :  { %11229 = vmatprep.mubr.f32.mxu1 %v14124_v5  ;;  %12482 = vmatprep.subr.bf16.mxu1 %v14302_v20  ;;  %v3126_v1 = vand.u32 4294901760, %v3125_v32  ;;  %v3133_v9 = vand.u32 4294901760, %v3132_v38  ;;  %v12497_v45 = vpack.c.bf16 %v3132_v38, %v3125_v32 }
 0x664   :  { %12484 = vmatpush3.bf16.msra.mxu1 %v14302_v20  ;;  %v12509_v48 = vpack.c.bf16 %v3119_v4, %v3112_v8 }
 0x665   :  { %v3134_v22 = vsub.f32 %v3132_v38, %v3133_v9  ;;  %v12513_v49 = vpack.c.bf16 %v3133_v9, %v3126_v1 }
 0x666   :  { %11230 = vmatmul.mubr.f32.gmra.mrb[6].mxu1 %v14131_v28  ;;  %v3113_v28 = vsub.f32 %v3111_v37, %v3112_v8 }
 0x667   :  { %11232 = vmatprep.mubr.f32.mxu1 %v14189_v7  ;;  %v3135_v36 = vand.u32 4294901760, %v3134_v22 }
 0x668   :  { %v3114_v50 = vand.u32 4294901760, %v3113_v28  ;;  %v540_v28 = vld [vmem:[%s15384_s1 + $0xc0] sm:$0xff] }
 0x669   :  { %v3603_v38 = vand.u32 4294901760, %v540_v28 }
 0x66a   :  { %11233 = vmatmul.mubr.f32.gmra.mrb[8].mxu1 %v14155_v30  ;;  %v12485_v24 = vpack.c.bf16 %v3121_v52, %v3114_v50  ;;  %v3127_v30 = vsub.f32 %v3125_v32, %v3126_v1  ;;  %v542_v50 = vld [vmem:[%s15384_s1 + $0xd0] sm:$0xff]  ;;  %v3606_v52 = vand.u32 4294901760, %v541_v47 }
 0x66b   :  { %v3609_v1 = vand.u32 4294901760, %v542_v50 }
 0x66c   :  { %12486 = vmatprep.subr.bf16.mxu1 %v12485_v24  ;;  %v3128_v34 = vand.u32 4294901760, %v3127_v30 }
 0x66d   :  { %v14348_v9 = vpack.c.bf16 %v3609_v1, %v3606_v52 }
 0x66e   :  { %v12489_v51 = vpack.c.bf16 %v3135_v36, %v3128_v34 }
 0x731   :  { %v11225_v16 = vpop.f32.mrb[2].mxu1 }
 0x732   :  { %v2932_v59 = vpop.f32.mrb[3].mxu1 }
 0x735   :  { %v11228_v35 = vpop.f32.mrb[4].mxu1 }
 0x736   :  { %2982 = vrot.lane.b32.xlu1 %v11228_v35, %s13590_s20  ;;  %v2944_v31 = vpop.f32.mrb[5].mxu1 }
 0x737   :  { %2980 = vrot.lane.b32.xlu0 %v2944_v31, %s13590_s20 }
 0x739   :  { %v11231_v5 = vpop.f32.mrb[6].mxu1 }
 0x73a   :  { %2990 = vrot.lane.b32.xlu1 %v11231_v5, %s13591_s26  ;;  %v2956_v63 = vpop.f32.mrb[7].mxu1 }
 0x73b   :  { %2988 = vrot.lane.b32.xlu0 %v2956_v63, %s13591_s26 }
 0x73d   :  { %v11234_v6 = vpop.f32.mrb[8].mxu1 }
 0x73e   :  { %2998 = vrot.lane.b32.xlu1 %v11234_v6, %s13592_s27  ;;  %v2968_v17 = vpop.f32.mrb[9].mxu1 }
 0x73f   :  { %2996 = vrot.lane.b32.xlu0 %v2968_v17, %s13592_s27 }
 0x7a8   :  { %v2983_v55 = vpop.permute.xlu1 %2982 }
 0x7a9   :  { %v2981_v15 = vpop.permute.xlu0 %2980  ;;  %v3003_v61 = vsel %vm1124_vm3, %v11225_v16, %v2983_v55 }
 0x7aa   :  { %v3002_v53 = vsel %vm1124_vm3, %v2932_v59, %v2981_v15 }
 0x7ac   :  { %v2991_v57 = vpop.permute.xlu1 %2990 }
 0x7ad   :  { %v2989_v41 = vpop.permute.xlu0 %2988  ;;  %v3006_v2 = vsel %vm3004_vm5, %v3003_v61, %v2991_v57 }
 0x7ae   :  { %v3005_v10 = vsel %vm3004_vm5, %v3002_v53, %v2989_v41 }
 0x7b0   :  { %v2999_v7 = vpop.permute.xlu1 %2998 }
 0x7b1   :  { %v3009_v13 = vsel %vm3007_vm6, %v3006_v2, %v2999_v7  ;;  %v2997_v43 = vpop.permute.xlu0 %2996 }
 0x7b2   :  { %v3018_v26 = vsel %vm559_vm2, %v3009_v13, 0  ;;  %v3008_v54 = vsel %vm3007_vm6, %v3005_v10, %v2997_v43 }
 0x7b3   :  { %v3099_v39 = vand.u32 4294901760, %v3018_v26  ;;  %v3015_v23 = vsel %vm559_vm2, %v3008_v54, 0 }
 0x7b4   :  { %v3089_v19 = vand.u32 4294901760, %v3015_v23 }
 0x7b5   :  { %v3100_v21 = vsub.f32 %v3018_v26, %v3099_v39 }
 0x7b6   :  { %v3090_v40 = vsub.f32 %v3015_v23, %v3089_v19 }
 0x7b7   :  { %v3101_v14 = vand.u32 4294901760, %v3100_v21 }
 0x7b8   :  { %v3091_v12 = vand.u32 4294901760, %v3090_v40 }
 0x7b9   :  { %v3102_v29 = vsub.f32 %v3100_v21, %v3101_v14 }
 0x7ba   :  { %v3092_v25 = vsub.f32 %v3090_v40, %v3091_v12 }
 0x7bb   :  { %v3103_v33 = vand.u32 4294901760, %v3102_v29  ;;  %v9994_v29 = vld [vmem:[%s15384_s1 + $0xb0] ss:$0 sm:$0xff] }
 0x7bc   :  { %v3093_v0 = vand.u32 4294901760, %v3092_v25 }
 0x7be   :  { %11243 = vmatprep.mubr.f32.mxu1 %v3093_v0 }
 0x7bf   :  { %11244 = vmatmul.mubr.f32.vlgmr.msra.gmra.mrb[10].mxu1 %v3103_v33 }
 0x7c0   :  { %12488 = vmatpush3.bf16.msra.mxu1 %v12485_v24  ;;  %11254 = vmatprep.mubr.f32.mxu1 %v3089_v19  ;;  %v3697_v24 = vsub.f32 %v540_v28, %v3603_v38  ;;  %v546_v28 = vld [vmem:[%s15384_s1 + $0xf0] sm:$0xff] }
 0x7c1   :  { %12490 = vmatprep.subr.bf16.mxu1 %v12489_v51 }
 0x7c2   :  { %v3698_v22 = vand.u32 4294901760, %v3697_v24 }
 0x7c4   :  { %12492 = vmatpush3.bf16.msra.mxu1 %v12489_v51  ;;  %v3699_v36 = vsub.f32 %v3697_v24, %v3698_v22  ;;  %v3704_v51 = vsub.f32 %v541_v47, %v3606_v52  ;;  %v547_v47 = vld [vmem:[%s15384_s1 + $0xf8] sm:$0xff]  ;;  %v548_v52 = vld [vmem:[%s15384_s1 + $0x100] sm:$0xff] }
 0x7c5   :  { %12494 = vmatprep.subr.bf16.mxu1 %v12493_v3 }
 0x7c7   :  { %11255 = vmatmul.mubr.f32.vlgmr.msra.gmra.mrb[10].mxu1 %v3099_v39 }
 0x7c8   :  { %12496 = vmatpush3.bf16.msra.mxu1 %v12493_v3  ;;  %11265 = vmatprep.mubr.f32.mxu1 %v3090_v40  ;;  %v3711_v3 = vsub.f32 %v542_v50, %v3609_v1  ;;  %v549_v1 = vld [vmem:[%s15384_s1 + $0x108] sm:$0xff] }
 0x7c9   :  { %12498 = vmatprep.subr.bf16.mxu1 %v12497_v45 }
 0x7ca   :  { %v3712_v55 = vand.u32 4294901760, %v3711_v3  ;;  %v12545_v10 = vpack.c.bf16 %v3711_v3, %v3704_v51 }
 0x7cc   :  { %12500 = vmatpush3.bf16.msra.mxu1 %v12497_v45  ;;  %v3713_v41 = vsub.f32 %v3711_v3, %v3712_v55 }
 0x7cd   :  { %12502 = vmatprep.subr.bf16.mxu1 %v14289_v11 }
 0x7ce   :  { %v3714_v53 = vand.u32 4294901760, %v3713_v41 }
 0x7cf   :  { %11266 = vmatmul.mubr.f32.vlgmr.msra.gmra.mrb[10].mxu1 %v3100_v21 }
 0x7d0   :  { %12504 = vmatpush3.bf16.msra.mxu1 %v14289_v11  ;;  %11276 = vmatprep.mubr.f32.mxu1 %v3091_v12 }
 0x7d1   :  { %12506 = vmatprep.subr.bf16.mxu1 %v14302_v20 }
 0x7d4   :  { %12508 = vmatpush3.bf16.msra.mxu1 %v14302_v20 }
 0x7d5   :  { %12510 = vmatprep.subr.bf16.mxu1 %v12509_v48 }
 0x7d7   :  { %11277 = vmatmul.mubr.f32.vlgmr.msra.gmra.mrb[10].mxu1 %v3101_v14  ;;  %v9993_v14 = vld [vmem:[%s15384_s1 + $0xa8] ss:$0 sm:$0xff] }
 0x7d8   :  { %12512 = vmatpush3.bf16.msra.mxu1 %v12509_v48  ;;  %11287 = vmatprep.mubr.f32.mxu1 %v3089_v19  ;;  %v3700_v48 = vand.u32 4294901760, %v3699_v36 }
 0x7d9   :  { %12514 = vmatprep.subr.bf16.mxu1 %v12513_v49 }
 0x7dc   :  { %12516 = vmatpush3.bf16.msra.mxu1 %v12513_v49  ;;  %v3705_v49 = vand.u32 4294901760, %v3704_v51 }
 0x7dd   :  { %12518 = vmatprep.subr.bf16.mxu1 %v14289_v11 }
 0x7de   :  { %v3706_v57 = vsub.f32 %v3704_v51, %v3705_v49  ;;  %v12561_v43 = vpack.c.bf16 %v3712_v55, %v3705_v49 }
 0x7df   :  { %11288 = vmatmul.mubr.f32.vlgmr.msra.gmra.mrb[10].mxu1 %v3099_v39 }
 0x7e0   :  { %12520 = vmatpush3.bf16.msra.mxu1 %v14289_v11  ;;  %11298 = vmatprep.mubr.f32.mxu1 %v3089_v19  ;;  %v3707_v61 = vand.u32 4294901760, %v3706_v57 }
 0x7e1   :  { %12522 = vmatprep.subr.bf16.mxu1 %v14302_v20 }
 0x7e2   :  { %v12537_v2 = vpack.c.bf16 %v3714_v53, %v3707_v61 }
 0x7e4   :  { %12524 = vmatpush3.bf16.msra.mxu1 %v14302_v20 }
 0x7e7   :  { %11299 = vmatmul.mubr.f32.vlgmr.msra.gmra.mrb[10].mxu1 %v3099_v39 }
 0x8ba   :  { %v11300_v62 = vpop.f32.mrb[10].mxu1 }
 0x8bb   :  { %v13167_v16 = vadd.f32 %v11300_v62, %v9992_v42  ;;  %v3538_v59 = vpop.f32.mrb[11].mxu1 }
 0x8bc   :  { %v13168_v35 = vadd.f32 %v9992_v42, %v3538_v59 }
 0x8bd   :  { %v3549_v31 = vadd.f32 %v13167_v16, %v13652_v56 }
 0x8be   :  { %v3548_v37 = vadd.f32 %v13168_v35, %v13654_v58  ;;  %v539_v58 = vld [vmem:[%s15384_s1 + $0xb8] sm:$0xff] }
 0x8bf   :  { %v3553_v11 = vsel %vm559_vm2, %v3549_v31, 0.0  ;;  %v3600_v32 = vand.u32 4294901760, %v539_v58 }
 0x8c0   :  { %3554 = vadd.xlane.f32.xlu1 %v3553_v11  ;;  %v3550_v44 = vsel %vm559_vm2, %v3548_v37, 0.0 }
 0x8c1   :  { %3551 = vadd.xlane.f32.xlu0 %v3550_v44  ;;  %v14346_v6 = vpack.c.bf16 %v3603_v38, %v3600_v32  ;;  %v3690_v17 = vsub.f32 %v539_v58, %v3600_v32  ;;  %v4146_v32 = vand.u32 4294901760, %v546_v28  ;;  %v4149_v38 = vand.u32 4294901760, %v547_v47 }
 0x8c3   :  { %12526 = vmatprep.subr.bf16.mxu1 %v14346_v6  ;;  %v3691_v30 = vand.u32 4294901760, %v3690_v17  ;;  %v12541_v7 = vpack.c.bf16 %v3697_v24, %v3690_v17  ;;  %v14392_v50 = vpack.c.bf16 %v4149_v38, %v4146_v32  ;;  %v4255_v57 = vsub.f32 %v547_v47, %v4149_v38 }
 0x8c4   :  { %12528 = vmatpush3.bf16.msra.mxu1 %v14346_v6 }
 0x8c5   :  { %12530 = vmatprep.subr.bf16.mxu1 %v14348_v9  ;;  %v3692_v34 = vsub.f32 %v3690_v17, %v3691_v30  ;;  %v12557_v13 = vpack.c.bf16 %v3698_v22, %v3691_v30  ;;  %v550_v22 = vld [vmem:[%s15384_s1 + $0x110] sm:$0xff] }
 0x8c6   :  { %v4158_v36 = vand.u32 4294901760, %v550_v22 }
 0x8c7   :  { %v3693_v45 = vand.u32 4294901760, %v3692_v34  ;;  %v551_v34 = vld [vmem:[%s15384_s1 + $0x118] sm:$0xff] }
 0x8c8   :  { %12532 = vmatpush3.bf16.msra.mxu1 %v14348_v9  ;;  %v4161_v51 = vand.u32 4294901760, %v551_v34 }
 0x8c9   :  { %v12533_v15 = vpack.c.bf16 %v3700_v48, %v3693_v45 }
 0x8ca   :  { %v14412_v48 = vpack.c.bf16 %v4161_v51, %v4158_v36 }
 0x8cb   :  { %12534 = vmatprep.subr.bf16.mxu1 %v12533_v15 }
 0x94d   :  { %v3555_v46 = vpop.xlane.xlu1 %3554 }
 0x94e   :  { %v3558_v18 = vmul.f32 0.03125, %v3555_v46  ;;  %v3552_v27 = vpop.xlane.xlu0 %3551 }
 0x94f   :  { %v3557_v60 = vmul.f32 0.03125, %v3552_v27 }
 0x950   :  { %v3560_v8 = vsub.f32 %v3549_v31, %v3558_v18 }
 0x951   :  { %v3559_v4 = vsub.f32 %v3548_v37, %v3557_v60 }
 0x952   :  { %v3562_v20 = vmul.f32 %v3560_v8, %v3560_v8 }
 0x953   :  { %v3561_v5 = vmul.f32 %v3559_v4, %v3559_v4 }
 0x954   :  { %v3566_v56 = vsel %vm559_vm2, %v3562_v20, 0.0 }
 0x955   :  { %v3563_v63 = vsel %vm559_vm2, %v3561_v5, 0.0  ;;  %v544_v5 = vld [vmem:[%s15384_s1 + $0xe0] sm:$0xff] }
 0x956   :  { %3564 = vadd.xlane.f32.xlu0 %v3563_v63  ;;  %v545_v63 = vld [vmem:[%s15384_s1 + $0xe8] sm:$0xff]  ;;  %v4140_v20 = vand.u32 4294901760, %v544_v5 }
 0x958   :  { %v4234_v24 = vsub.f32 %v544_v5, %v4140_v20 }
 0x95a   :  { %3567 = vadd.xlane.f32.xlu0 %v3566_v56  ;;  %v4143_v56 = vand.u32 4294901760, %v545_v63  ;;  %v4235_v3 = vand.u32 4294901760, %v4234_v24 }
 0x95c   :  { %v14382_v58 = vpack.c.bf16 %v4143_v56, %v4140_v20  ;;  %v4241_v30 = vsub.f32 %v545_v63, %v4143_v56  ;;  %v4236_v49 = vsub.f32 %v4234_v24, %v4235_v3  ;;  %v9995_v20 = vld [vmem:[%s15384_s1 + $0xd8] ss:$0 sm:$0xff] }
 0x95e   :  { %12574 = vmatprep.subr.bf16.mxu0 %v14382_v58  ;;  %v4242_v45 = vand.u32 4294901760, %v4241_v30  ;;  %v4237_v41 = vand.u32 4294901760, %v4236_v49 }
 0x95f   :  { %12576 = vmatpush3.bf16.msra.mxu0 %v14382_v58 }
 0x960   :  { %12578 = vmatprep.subr.bf16.mxu0 %v14392_v50  ;;  %v4243_v55 = vsub.f32 %v4241_v30, %v4242_v45 }
 0x962   :  { %v4244_v61 = vand.u32 4294901760, %v4243_v55  ;;  %v9996_v55 = vld [vmem:[%s15384_s1 + $0x120] ss:$0 sm:$0xff] }
 0x963   :  { %12580 = vmatpush3.bf16.msra.mxu0 %v14392_v50 }
 0x9e3   :  { %v3565_v26 = vpop.xlane.xlu0 %3564 }
 0x9e4   :  { %v3569_v54 = vmul.f32 0.03125, %v3565_v26 }
 0x9e6   :  { %v3571_v39 = vadd.f32 1e-05, %v3569_v54 }
 0x9e7   :  { %v3568_v23 = vpop.xlane.xlu0 %3567 }
 0x9e8   :  { %13505 = vrsqrt.f32 %v3571_v39  ;;  %v3570_v19 = vmul.f32 0.03125, %v3568_v23 }
 0x9ea   :  { %v3572_v21 = vadd.f32 1e-05, %v3570_v19 }
 0x9ec   :  { %13507 = vrsqrt.f32 %v3572_v21 }
 0x9f2   :  { %v13506_v40 = vpop.eup %13505 }
 0x9f3   :  { %v3575_v12 = vmul.f32 %v13506_v40, %v3559_v4 }
 0x9f5   :  { %v3581_v25 = vmul.f32 %v9993_v14, %v3575_v12  ;;  %v4283_v12 = vsub.f32 %v551_v34, %v4161_v51 }
 0x9f6   :  { %v13508_v0 = vpop.eup %13507 }
 0x9f7   :  { %v3576_v33 = vmul.f32 %v13508_v0, %v3560_v8  ;;  %v14360_v42 = vadd.f32 %v9994_v29, %v3581_v25 }
 0x9f9   :  { %v3582_v62 = vmul.f32 %v9993_v14, %v3576_v33  ;;  %v3594_v16 = vsel %vm559_vm2, %v14360_v42, 0  ;;  %v4276_v14 = vsub.f32 %v550_v22, %v4158_v36 }
 0x9fa   :  { %v3668_v59 = vand.u32 4294901760, %v3594_v16 }
 0x9fb   :  { %v14364_v35 = vadd.f32 %v9994_v29, %v3582_v62  ;;  %v4277_v33 = vand.u32 4294901760, %v4276_v14  ;;  %v4284_v62 = vand.u32 4294901760, %v4283_v12 }
 0x9fc   :  { %v3669_v31 = vsub.f32 %v3594_v16, %v3668_v59 }
 0x9fd   :  { %v3597_v37 = vsel %vm559_vm2, %v14364_v35, 0  ;;  %v12649_v63 = vpack.c.bf16 %v4284_v62, %v4277_v33 }
 0x9fe   :  { %v3670_v11 = vand.u32 4294901760, %v3669_v31  ;;  %v3678_v44 = vand.u32 4294901760, %v3597_v37 }
 0xa00   :  { %v3671_v46 = vsub.f32 %v3669_v31, %v3670_v11  ;;  %v3679_v18 = vsub.f32 %v3597_v37, %v3678_v44 }
 0xa02   :  { %v3672_v27 = vand.u32 4294901760, %v3671_v46  ;;  %v3680_v60 = vand.u32 4294901760, %v3679_v18  ;;  %v12605_v46 = vpack.c.bf16 %v4241_v30, %v4234_v24 }
 0xa04   :  { %11309 = vmatprep.mubr.f32.mxu1 %v3672_v27  ;;  %v3681_v8 = vsub.f32 %v3679_v18, %v3680_v60 }
 0xa06   :  { %v3682_v4 = vand.u32 4294901760, %v3681_v8  ;;  %v12637_v8 = vpack.c.bf16 %v4242_v45, %v4235_v3 }
 0xa08   :  { %11310 = vmatmul.mubr.f32.vlgmr.msra.gmra.mrb[12].mxu1 %v3682_v4 }
 0xa09   :  { %12536 = vmatpush3.bf16.msra.mxu1 %v12533_v15  ;;  %11320 = vmatprep.mubr.f32.mxu1 %v3668_v59  ;;  %v4248_v15 = vsub.f32 %v546_v28, %v4146_v32 }
 0xa0a   :  { %12538 = vmatprep.subr.bf16.mxu1 %v12537_v2 }
 0xa0b   :  { %v4249_v53 = vand.u32 4294901760, %v4248_v15 }
 0xa0d   :  { %12540 = vmatpush3.bf16.msra.mxu1 %v12537_v2  ;;  %v4256_v2 = vand.u32 4294901760, %v4255_v57 }
 0xa0e   :  { %12542 = vmatprep.subr.bf16.mxu1 %v12541_v7 }
 0xa0f   :  { %v4257_v26 = vsub.f32 %v4255_v57, %v4256_v2  ;;  %v12641_v4 = vpack.c.bf16 %v4256_v2, %v4249_v53 }
 0xa10   :  { %11321 = vmatmul.mubr.f32.vlgmr.msra.gmra.mrb[12].mxu1 %v3678_v44 }
 0xa11   :  { %12544 = vmatpush3.bf16.msra.mxu1 %v12541_v7  ;;  %11331 = vmatprep.mubr.f32.mxu1 %v3669_v31  ;;  %v12589_v7 = vpack.c.bf16 %v4244_v61, %v4237_v41  ;;  %v4258_v19 = vand.u32 4294901760, %v4257_v26  ;;  %v4285_v31 = vsub.f32 %v4283_v12, %v4284_v62 }
 0xa12   :  { %12546 = vmatprep.subr.bf16.mxu1 %v12545_v10 }
 0xa15   :  { %12548 = vmatpush3.bf16.msra.mxu1 %v12545_v10  ;;  %v4250_v10 = vsub.f32 %v4248_v15, %v4249_v53 }
 0xa16   :  { %12550 = vmatprep.subr.bf16.mxu1 %v14346_v6 }
 0xa17   :  { %v4251_v54 = vand.u32 4294901760, %v4250_v10 }
 0xa18   :  { %11332 = vmatmul.mubr.f32.vlgmr.msra.gmra.mrb[12].mxu1 %v3679_v18  ;;  %v12609_v18 = vpack.c.bf16 %v4255_v57, %v4248_v15 }
 0xa19   :  { %12552 = vmatpush3.bf16.msra.mxu1 %v14346_v6  ;;  %11342 = vmatprep.mubr.f32.mxu1 %v3670_v11  ;;  %v12593_v29 = vpack.c.bf16 %v4258_v19, %v4251_v54  ;;  %v4286_v11 = vand.u32 4294901760, %v4285_v31  ;;  %v4761_v19 = vld [vmem:[%s15384_s1 + $0x148] sm:$0xff] }
 0xa1a   :  { %12554 = vmatprep.subr.bf16.mxu1 %v14348_v9 }
 0xa1d   :  { %12556 = vmatpush3.bf16.msra.mxu1 %v14348_v9 }
 0xa1e   :  { %12558 = vmatprep.subr.bf16.mxu1 %v12557_v13 }
 0xa20   :  { %11343 = vmatmul.mubr.f32.vlgmr.msra.gmra.mrb[12].mxu1 %v3680_v60  ;;  %v12617_v60 = vpack.c.bf16 %v4283_v12, %v4276_v14  ;;  %v4804_v12 = vand.u32 4294901760, %v4761_v19 }
 0xa21   :  { %12560 = vmatpush3.bf16.msra.mxu1 %v12557_v13  ;;  %11353 = vmatprep.mubr.f32.mxu1 %v3668_v59 }
 0xa22   :  { %12562 = vmatprep.subr.bf16.mxu1 %v12561_v43 }
 0xa25   :  { %12564 = vmatpush3.bf16.msra.mxu1 %v12561_v43 }
 0xa26   :  { %12566 = vmatprep.subr.bf16.mxu1 %v14346_v6 }
 0xa28   :  { %11354 = vmatmul.mubr.f32.vlgmr.msra.gmra.mrb[12].mxu1 %v3678_v44 }
 0xa29   :  { %12568 = vmatpush3.bf16.msra.mxu1 %v14346_v6  ;;  %11364 = vmatprep.mubr.f32.mxu1 %v3668_v59  ;;  %v4152_v6 = vand.u32 4294901760, %v548_v52  ;;  %v4278_v59 = vsub.f32 %v4276_v14, %v4277_v33  ;;  %v4762_v14 = vld [vmem:[%s15384_s1 + $0x150] sm:$0xff] }
 0xa2a   :  { %12570 = vmatprep.subr.bf16.mxu1 %v14348_v9 }
 0xa2b   :  { %v4262_v13 = vsub.f32 %v548_v52, %v4152_v6  ;;  %v4279_v37 = vand.u32 4294901760, %v4278_v59 }
 0xa2d   :  { %12572 = vmatpush3.bf16.msra.mxu1 %v14348_v9  ;;  %v4155_v9 = vand.u32 4294901760, %v549_v1  ;;  %v4263_v39 = vand.u32 4294901760, %v4262_v13 }
 0xa2f   :  { %v14402_v17 = vpack.c.bf16 %v4155_v9, %v4152_v6  ;;  %v4269_v43 = vsub.f32 %v549_v1, %v4155_v9  ;;  %v4264_v21 = vsub.f32 %v4262_v13, %v4263_v39 }
 0xa30   :  { %11365 = vmatmul.mubr.f32.vlgmr.msra.gmra.mrb[12].mxu1 %v3678_v44  ;;  %v12601_v44 = vpack.c.bf16 %v4286_v11, %v4279_v37  ;;  %v4902_v11 = vsub.f32 %v4761_v19, %v4804_v12 }
 0xa31   :  { %12582 = vmatprep.subr.bf16.mxu0 %v14402_v17  ;;  %v4270_v23 = vand.u32 4294901760, %v4269_v43  ;;  %v4265_v25 = vand.u32 4294901760, %v4264_v21  ;;  %v12613_v27 = vpack.c.bf16 %v4269_v43, %v4262_v13 }
 0xa32   :  { %12584 = vmatpush3.bf16.msra.mxu0 %v14402_v17 }
 0xa33   :  { %12586 = vmatprep.subr.bf16.mxu0 %v14412_v48  ;;  %v4271_v40 = vsub.f32 %v4269_v43, %v4270_v23  ;;  %v12645_v5 = vpack.c.bf16 %v4270_v23, %v4263_v39  ;;  %v4760_v23 = vld [vmem:[%s15384_s1 + $0x140] sm:$0xff] }
 0xa35   :  { %v4272_v0 = vand.u32 4294901760, %v4271_v40  ;;  %v4801_v40 = vand.u32 4294901760, %v4760_v23 }
 0xa36   :  { %12588 = vmatpush3.bf16.msra.mxu0 %v14412_v48 }
 0xa37   :  { %12590 = vmatprep.subr.bf16.mxu0 %v12589_v7  ;;  %v12597_v16 = vpack.c.bf16 %v4272_v0, %v4265_v25  ;;  %v4895_v62 = vsub.f32 %v4760_v23, %v4801_v40 }
 0xa39   :  { %v4896_v59 = vand.u32 4294901760, %v4895_v62 }
 0xa3b   :  { %v4897_v37 = vsub.f32 %v4895_v62, %v4896_v59 }
 0xb03   :  { %v11366_v56 = vpop.f32.mrb[12].mxu1 }
 0xb04   :  { %v13169_v28 = vadd.f32 %v11366_v56, %v9995_v20  ;;  %v4117_v47 = vpop.f32.mrb[13].mxu1 }
 0xb05   :  { %v13170_v32 = vadd.f32 %v9995_v20, %v4117_v47 }
 0xb06   :  { %v4128_v38 = vmax.f32 %v13169_v28, 0.0 }
 0xb07   :  { %v4127_v52 = vmax.f32 %v13170_v32, 0.0 }
 0xb08   :  { %v4137_v1 = vsel %vm1995_vm4, %v4128_v38, 0 }
 0xb09   :  { %v4222_v6 = vand.u32 4294901760, %v4137_v1  ;;  %v4134_v9 = vsel %vm1995_vm4, %v4127_v52, 0 }
 0xb0a   :  { %v4212_v24 = vand.u32 4294901760, %v4134_v9 }
 0xb0b   :  { %v4223_v30 = vsub.f32 %v4137_v1, %v4222_v6 }
 0xb0c   :  { %v4213_v22 = vsub.f32 %v4134_v9, %v4212_v24 }
 0xb0d   :  { %v4224_v34 = vand.u32 4294901760, %v4223_v30 }
 0xb0e   :  { %v4214_v36 = vand.u32 4294901760, %v4213_v22 }
 0xb0f   :  { %v4225_v51 = vsub.f32 %v4223_v30, %v4224_v34 }
 0xb10   :  { %v4215_v3 = vsub.f32 %v4213_v22, %v4214_v36 }
 0xb11   :  { %v4226_v49 = vand.u32 4294901760, %v4225_v51 }
 0xb12   :  { %v4216_v45 = vand.u32 4294901760, %v4215_v3 }
 0xb14   :  { %11383 = vmatprep.mubr.f32.mxu0 %v4216_v45  ;;  %v9998_v45 = vld [vmem:[%s15384_s1 + $0x130] ss:$0 sm:$0xff] }
 0xb15   :  { %11384 = vmatmul.mubr.f32.vlgmr.msra.gmra.mrb[10].mxu0 %v4226_v49 }
 0xb16   :  { %12592 = vmatpush3.bf16.msra.mxu0 %v12589_v7  ;;  %11402 = vmatprep.mubr.f32.mxu0 %v4212_v24 }
 0xb17   :  { %12594 = vmatprep.subr.bf16.mxu0 %v12593_v29 }
 0xb1a   :  { %12596 = vmatpush3.bf16.msra.mxu0 %v12593_v29  ;;  %v4807_v29 = vand.u32 4294901760, %v4762_v14 }
 0xb1b   :  { %12598 = vmatprep.subr.bf16.mxu0 %v12597_v16 }
 0xb1c   :  { %v14460_v0 = vpack.c.bf16 %v4807_v29, %v4804_v12 }
 0xb1e   :  { %12600 = vmatpush3.bf16.msra.mxu0 %v12597_v16 }
 0xb1f   :  { %12602 = vmatprep.subr.bf16.mxu0 %v12601_v44 }
 0xb22   :  { %12604 = vmatpush3.bf16.msra.mxu0 %v12601_v44  ;;  %v4909_v44 = vsub.f32 %v4762_v14, %v4807_v29 }
 0xb23   :  { %12606 = vmatprep.subr.bf16.mxu0 %v12605_v46 }
 0xb24   :  { %v12689_v47 = vpack.c.bf16 %v4909_v44, %v4902_v11 }
 0xb25   :  { %11403 = vmatmul.mubr.f32.vlgmr.msra.gmra.mrb[10].mxu0 %v4222_v6 }
 0xb26   :  { %12608 = vmatpush3.bf16.msra.mxu0 %v12605_v46  ;;  %11421 = vmatprep.mubr.f32.mxu0 %v4213_v22 }
 0xb27   :  { %12610 = vmatprep.subr.bf16.mxu0 %v12609_v18 }
 0xb2a   :  { %12612 = vmatpush3.bf16.msra.mxu0 %v12609_v18  ;;  %v4898_v18 = vand.u32 4294901760, %v4897_v37 }
 0xb2b   :  { %12614 = vmatprep.subr.bf16.mxu0 %v12613_v27 }
 0xb2e   :  { %12616 = vmatpush3.bf16.msra.mxu0 %v12613_v27  ;;  %v4903_v27 = vand.u32 4294901760, %v4902_v11 }
 0xb2f   :  { %12618 = vmatprep.subr.bf16.mxu0 %v12617_v60 }
 0xb32   :  { %12620 = vmatpush3.bf16.msra.mxu0 %v12617_v60  ;;  %v4910_v60 = vand.u32 4294901760, %v4909_v44 }
 0xb33   :  { %12622 = vmatprep.subr.bf16.mxu0 %v14382_v58 }
 0xb34   :  { %v12705_v38 = vpack.c.bf16 %v4910_v60, %v4903_v27 }
 0xb35   :  { %11422 = vmatmul.mubr.f32.vlgmr.msra.gmra.mrb[10].mxu0 %v4223_v30 }
 0xb36   :  { %12624 = vmatpush3.bf16.msra.mxu0 %v14382_v58  ;;  %11440 = vmatprep.mubr.f32.mxu0 %v4214_v36 }
 0xb37   :  { %12626 = vmatprep.subr.bf16.mxu0 %v14392_v50 }
 0xb3a   :  { %12628 = vmatpush3.bf16.msra.mxu0 %v14392_v50 }
 0xb3b   :  { %12630 = vmatprep.subr.bf16.mxu0 %v14402_v17 }
 0xb3e   :  { %12632 = vmatpush3.bf16.msra.mxu0 %v14402_v17 }
 0xb3f   :  { %12634 = vmatprep.subr.bf16.mxu0 %v14412_v48 }
 0xb42   :  { %12636 = vmatpush3.bf16.msra.mxu0 %v14412_v48 }
 0xb43   :  { %12638 = vmatprep.subr.bf16.mxu0 %v12637_v8 }
 0xb45   :  { %11441 = vmatmul.mubr.f32.vlgmr.msra.gmra.mrb[10].mxu0 %v4224_v34  ;;  %v9997_v34 = vld [vmem:[%s15384_s1 + $0x128] ss:$0 sm:$0xff] }
 0xb46   :  { %12640 = vmatpush3.bf16.msra.mxu0 %v12637_v8  ;;  %11459 = vmatprep.mubr.f32.mxu0 %v4212_v24 }
 0xb47   :  { %12642 = vmatprep.subr.bf16.mxu0 %v12641_v4 }
 0xb4a   :  { %12644 = vmatpush3.bf16.msra.mxu0 %v12641_v4  ;;  %v4904_v4 = vsub.f32 %v4902_v11, %v4903_v27 }
 0xb4b   :  { %12646 = vmatprep.subr.bf16.mxu0 %v12645_v5 }
 0xb4e   :  { %12648 = vmatpush3.bf16.msra.mxu0 %v12645_v5  ;;  %v4911_v5 = vsub.f32 %v4909_v44, %v4910_v60 }
 0xb4f   :  { %12650 = vmatprep.subr.bf16.mxu0 %v12649_v63 }
 0xb50   :  { %v4912_v20 = vand.u32 4294901760, %v4911_v5 }
 0xb52   :  { %12652 = vmatpush3.bf16.msra.mxu0 %v12649_v63  ;;  %v4905_v63 = vand.u32 4294901760, %v4904_v4 }
 0xb53   :  { %12654 = vmatprep.subr.bf16.mxu0 %v14382_v58 }
 0xb54   :  { %v12681_v56 = vpack.c.bf16 %v4912_v20, %v4905_v63 }
 0xb55   :  { %11460 = vmatmul.mubr.f32.vlgmr.msra.gmra.mrb[10].mxu0 %v4222_v6 }
 0xb56   :  { %12656 = vmatpush3.bf16.msra.mxu0 %v14382_v58  ;;  %11478 = vmatprep.mubr.f32.mxu0 %v4212_v24 }
 0xb57   :  { %12658 = vmatprep.subr.bf16.mxu0 %v14392_v50 }
 0xb5a   :  { %12660 = vmatpush3.bf16.msra.mxu0 %v14392_v50 }
 0xb5b   :  { %12662 = vmatprep.subr.bf16.mxu0 %v14402_v17 }
 0xb5e   :  { %12664 = vmatpush3.bf16.msra.mxu0 %v14402_v17 }
 0xb5f   :  { %12666 = vmatprep.subr.bf16.mxu0 %v14412_v48 }
 0xb62   :  { %12668 = vmatpush3.bf16.msra.mxu0 %v14412_v48 }
 0xb65   :  { %11479 = vmatmul.mubr.f32.vlgmr.msra.gmra.mrb[10].mxu0 %v4222_v6 }
 0xc38   :  { %v11480_v15 = vpop.f32.mrb[10].mxu0 }
 0xc39   :  { %v13171_v58 = vadd.f32 %v11480_v15, %v9996_v55  ;;  %v4709_v57 = vpop.f32.mrb[11].mxu0 }
 0xc3a   :  { %v13172_v41 = vadd.f32 %v9996_v55, %v4709_v57 }
 0xc3b   :  { %v4720_v61 = vadd.f32 %v13171_v58, %v14364_v35 }
 0xc3c   :  { %v4719_v50 = vadd.f32 %v13172_v41, %v14360_v42  ;;  %v4759_v42 = vld [vmem:[%s15384_s1 + $0x138] sm:$0xff] }
 0xc3d   :  { %v4724_v53 = vsel %vm559_vm2, %v4720_v61, 0.0  ;;  %v4798_v21 = vand.u32 4294901760, %v4759_v42 }
 0xc3e   :  { %4725 = vadd.xlane.f32.xlu0 %v4724_v53  ;;  %v4721_v17 = vsel %vm559_vm2, %v4719_v50, 0.0 }
 0xc3f   :  { %4722 = vadd.xlane.f32.xlu1 %v4721_v17  ;;  %v14458_v25 = vpack.c.bf16 %v4801_v40, %v4798_v21  ;;  %v4888_v33 = vsub.f32 %v4759_v42, %v4798_v21 }
 0xc41   :  { %12670 = vmatprep.subr.bf16.mxu1 %v14458_v25  ;;  %v4889_v16 = vand.u32 4294901760, %v4888_v33  ;;  %v12685_v28 = vpack.c.bf16 %v4895_v62, %v4888_v33 }
 0xc42   :  { %12672 = vmatpush3.bf16.msra.mxu1 %v14458_v25 }
 0xc43   :  { %12674 = vmatprep.subr.bf16.mxu1 %v14460_v0  ;;  %v4890_v31 = vsub.f32 %v4888_v33, %v4889_v16  ;;  %v12701_v32 = vpack.c.bf16 %v4896_v59, %v4889_v16 }
 0xc45   :  { %v4891_v46 = vand.u32 4294901760, %v4890_v31 }
 0xc46   :  { %12676 = vmatpush3.bf16.msra.mxu1 %v14460_v0 }
 0xc47   :  { %v12677_v8 = vpack.c.bf16 %v4898_v18, %v4891_v46 }
 0xc49   :  { %12678 = vmatprep.subr.bf16.mxu1 %v12677_v8 }
 0xccb   :  { %v4726_v48 = vpop.xlane.xlu0 %4725 }
 0xccc   :  { %v4728_v2 = vmul.f32 0.03125, %v4726_v48  ;;  %v4723_v7 = vpop.xlane.xlu1 %4722 }
 0xccd   :  { %v4727_v10 = vmul.f32 0.03125, %v4723_v7 }
 0xcce   :  { %v4730_v13 = vsub.f32 %v4720_v61, %v4728_v2 }
 0xccf   :  { %v4729_v43 = vsub.f32 %v4719_v50, %v4727_v10 }
 0xcd0   :  { %v4732_v26 = vmul.f32 %v4730_v13, %v4730_v13 }
 0xcd1   :  { %v4731_v54 = vmul.f32 %v4729_v43, %v4729_v43 }
 0xcd2   :  { %v4736_v39 = vsel %vm559_vm2, %v4732_v26, 0.0  ;;  %v9999_v26 = vld [vmem:[%s15384_s1 + $0x158] ss:$0 sm:$0xff] }
 0xcd3   :  { %4737 = vadd.xlane.f32.xlu0 %v4736_v39  ;;  %v4733_v35 = vsel %vm559_vm2, %v4731_v54, 0.0 }
 0xcd4   :  { %4734 = vadd.xlane.f32.xlu1 %v4733_v35 }
 0xd60   :  { %v4738_v52 = vpop.xlane.xlu0 %4737 }
 0xd61   :  { %v4740_v1 = vmul.f32 0.03125, %v4738_v52  ;;  %v4735_v6 = vpop.xlane.xlu1 %4734 }
 0xd62   :  { %v4739_v9 = vmul.f32 0.03125, %v4735_v6 }
 0xd63   :  { %v4742_v24 = vadd.f32 1e-05, %v4740_v1 }
 0xd64   :  { %v4741_v30 = vadd.f32 1e-05, %v4739_v9 }
 0xd65   :  { %13509 = vrsqrt.f32 %v4742_v24 }
 0xd66   :  { %13511 = vrsqrt.f32 %v4741_v30 }
 0xd6f   :  { %v13510_v22 = vpop.eup %13509 }
 0xd70   :  { %v13512_v36 = vpop.eup %13511  ;;  %v4746_v51 = vmul.f32 %v13510_v22, %v4730_v13 }
 0xd71   :  { %v4745_v3 = vmul.f32 %v13512_v36, %v4729_v43 }
 0xd72   :  { %v4752_v49 = vmul.f32 %v9997_v34, %v4746_v51 }
 0xd73   :  { %v4751_v55 = vmul.f32 %v9997_v34, %v4745_v3 }
 0xd74   :  { %v14472_v15 = vadd.f32 %v9998_v45, %v4752_v49 }
 0xd75   :  { %v14474_v58 = vadd.f32 %v9998_v45, %v4751_v55 }
 0xd76   :  { %v4795_v57 = vsel %vm559_vm2, %v14472_v15, 0 }
 0xd77   :  { %v4792_v41 = vsel %vm559_vm2, %v14474_v58, 0  ;;  %v4876_v61 = vand.u32 4294901760, %v4795_v57 }
 0xd78   :  { %v4866_v50 = vand.u32 4294901760, %v4792_v41 }
 0xd79   :  { %v4877_v53 = vsub.f32 %v4795_v57, %v4876_v61 }
 0xd7a   :  { %v4867_v17 = vsub.f32 %v4792_v41, %v4866_v50 }
 0xd7b   :  { %v4878_v48 = vand.u32 4294901760, %v4877_v53 }
 0xd7c   :  { %v4868_v2 = vand.u32 4294901760, %v4867_v17 }
 0xd7d   :  { %v4879_v7 = vsub.f32 %v4877_v53, %v4878_v48 }
 0xd7e   :  { %v4869_v10 = vsub.f32 %v4867_v17, %v4868_v2 }
 0xd7f   :  { %v4880_v43 = vand.u32 4294901760, %v4879_v7 }
 0xd80   :  { %v4870_v13 = vand.u32 4294901760, %v4869_v10 }
 0xd82   :  { %11489 = vmatprep.mubr.f32.mxu1 %v4870_v13 }
 0xd83   :  { %11490 = vmatmul.mubr.f32.vlgmr.msra.gmra.mrb[14].mxu1 %v4880_v43 }
 0xd84   :  { %12680 = vmatpush3.bf16.msra.mxu1 %v12677_v8  ;;  %11500 = vmatprep.mubr.f32.mxu1 %v4866_v50 }
 0xd85   :  { %12682 = vmatprep.subr.bf16.mxu1 %v12681_v56 }
 0xd88   :  { %12684 = vmatpush3.bf16.msra.mxu1 %v12681_v56 }
 0xd89   :  { %12686 = vmatprep.subr.bf16.mxu1 %v12685_v28 }
 0xd8b   :  { %11501 = vmatmul.mubr.f32.vlgmr.msra.gmra.mrb[14].mxu1 %v4876_v61 }
 0xd8c   :  { %12688 = vmatpush3.bf16.msra.mxu1 %v12685_v28  ;;  %11511 = vmatprep.mubr.f32.mxu1 %v4867_v17 }
 0xd8d   :  { %12690 = vmatprep.subr.bf16.mxu1 %v12689_v47 }
 0xd90   :  { %12692 = vmatpush3.bf16.msra.mxu1 %v12689_v47 }
 0xd91   :  { %12694 = vmatprep.subr.bf16.mxu1 %v14458_v25 }
 0xd93   :  { %11512 = vmatmul.mubr.f32.vlgmr.msra.gmra.mrb[14].mxu1 %v4877_v53 }
 0xd94   :  { %12696 = vmatpush3.bf16.msra.mxu1 %v14458_v25  ;;  %11522 = vmatprep.mubr.f32.mxu1 %v4868_v2 }
 0xd95   :  { %12698 = vmatprep.subr.bf16.mxu1 %v14460_v0 }
 0xd98   :  { %12700 = vmatpush3.bf16.msra.mxu1 %v14460_v0 }
 0xd99   :  { %12702 = vmatprep.subr.bf16.mxu1 %v12701_v32 }
 0xd9b   :  { %11523 = vmatmul.mubr.f32.vlgmr.msra.gmra.mrb[14].mxu1 %v4878_v48 }
 0xd9c   :  { %12704 = vmatpush3.bf16.msra.mxu1 %v12701_v32  ;;  %11533 = vmatprep.mubr.f32.mxu1 %v4866_v50 }
 0xd9d   :  { %12706 = vmatprep.subr.bf16.mxu1 %v12705_v38 }
 0xda0   :  { %12708 = vmatpush3.bf16.msra.mxu1 %v12705_v38 }
 0xda1   :  { %12710 = vmatprep.subr.bf16.mxu1 %v14458_v25 }
 0xda3   :  { %11534 = vmatmul.mubr.f32.vlgmr.msra.gmra.mrb[14].mxu1 %v4876_v61 }
 0xda4   :  { %12712 = vmatpush3.bf16.msra.mxu1 %v14458_v25  ;;  %11544 = vmatprep.mubr.f32.mxu1 %v4866_v50 }
 0xda5   :  { %12714 = vmatprep.subr.bf16.mxu1 %v14460_v0 }
 0xda8   :  { %12716 = vmatpush3.bf16.msra.mxu1 %v14460_v0 }
 0xdab   :  { %11545 = vmatmul.mubr.f32.vlgmr.msra.gmra.mrb[14].mxu1 %v4876_v61 }
 0xe7e   :  { %v11546_v54 = vpop.f32.mrb[14].mxu1 }
 0xe7f   :  { %v14491_v39 = vadd.f32 %v11546_v54, %v9999_v26  ;;  %v5315_v35 = vpop.f32.mrb[15].mxu1 }
 0xe80   :  { %v14493_v42 = vadd.f32 %v9999_v26, %v5315_v35 }
 0xe81   :  { %5329 = vrot.lane.b32.xlu0 %v14491_v39, %s13586_s5  ;;  %v5357_v53 = vsel %vm1124_vm3, %v14491_v39, 0 }
 0xe82   :  { %5327 = vrot.lane.b32.xlu1 %v14493_v42, %s13586_s5  ;;  %v5355_v23 = vsel %vm1124_vm3, %v14493_v42, 0  ;;  %v14585_v26 = vand.u32 4294901760, %v5357_v53 }
 0xe83   :  { %v14501_v19 = vand.u32 4294901760, %v5355_v23 }
 0xe85   :  { %5335 = vrot.lane.b32.xlu0 %v14493_v42, %s13587_s6  ;;  %v14506_v21 = vsub.f32 %v5355_v23, %v14501_v19 }
 0xe86   :  { %5331 = vrot.lane.b32.xlu1 %v14493_v42, %s13585_s4 }
 0xe87   :  { %v5462_v40 = vand.u32 4294901760, %v14506_v21 }
 0xe89   :  { %5339 = vrot.lane.b32.xlu0 %v14493_v42, %s13588_s7  ;;  %v5463_v14 = vsub.f32 %v14506_v21, %v5462_v40 }
 0xe8a   :  { %5333 = vrot.lane.b32.xlu1 %v14491_v39, %s13585_s4 }
 0xe8b   :  { %v5464_v12 = vand.u32 4294901760, %v5463_v14 }
 0xe8d   :  { %11563 = vmatprep.mubr.f32.mxu1 %v5464_v12 }
 0xe8e   :  { %5337 = vrot.lane.b32.xlu1 %v14491_v39, %s13587_s6 }
 0xe92   :  { %5341 = vrot.lane.b32.xlu1 %v14491_v39, %s13588_s7 }
 0xef3   :  { %v14522_v29 = vpop.permute.xlu0 %5329 }
 0xef4   :  { %5345 = vrot.lane.b32.xlu1 %v14522_v29, %s13588_s7  ;;  %v14526_v25 = vpop.permute.xlu1 %5327  ;;  %v5361_v54 = vsel %vm1124_vm3, %v14522_v29, 0 }
 0xef5   :  { %5343 = vrot.lane.b32.xlu0 %v14526_v25, %s13588_s7  ;;  %v5359_v17 = vsel %vm1124_vm3, %v14526_v25, 0 }
 0xef6   :  { %v14589_v35 = vand.u32 4294901760, %v5359_v17 }
 0xef7   :  { %v14530_v0 = vpop.permute.xlu0 %5335 }
 0xef8   :  { %v14532_v33 = vpop.permute.xlu1 %5331 }
 0xef9   :  { %5347 = vrot.lane.b32.xlu0 %v14532_v33, %s13588_s7  ;;  %v5363_v14 = vsel %vm1124_vm3, %v14532_v33, 0 }
 0xefb   :  { %v5340_v62 = vpop.permute.xlu0 %5339 }
 0xefc   :  { %v5371_v16 = vsel %vm1124_vm3, %v5340_v62, 0  ;;  %v14537_v59 = vpop.permute.xlu1 %5333 }
 0xefd   :  { %v5388_v31 = vand.u32 4294901760, %v5371_v16  ;;  %5351 = vrot.lane.b32.xlu0 %v14530_v0, %s13588_s7  ;;  %5349 = vrot.lane.b32.xlu1 %v14537_v59, %s13588_s7 }
 0xeff   :  { %v5542_v37 = vsub.f32 %v5371_v16, %v5388_v31 }
 0xf00   :  { %v14543_v11 = vpop.permute.xlu1 %5337 }
 0xf01   :  { %5353 = vrot.lane.b32.xlu1 %v14543_v11, %s13588_s7  ;;  %v5543_v18 = vand.u32 4294901760, %v5542_v37 }
 0xf03   :  { %v5544_v4 = vsub.f32 %v5542_v37, %v5543_v18 }
 0xf04   :  { %v5342_v44 = vpop.permute.xlu1 %5341 }
 0xf05   :  { %v5373_v46 = vsel %vm1124_vm3, %v5342_v44, 0  ;;  %v5545_v28 = vand.u32 4294901760, %v5544_v4  ;;  %v5365_v4 = vsel %vm1124_vm3, %v14537_v59, 0 }
 0xf06   :  { %v5391_v27 = vand.u32 4294901760, %v5373_v46 }
 0xf08   :  { %v14548_v60 = vpack.c.bf16 %v5391_v27, %v5388_v31  ;;  %v5549_v8 = vsub.f32 %v5373_v46, %v5391_v27  ;;  %v14610_v27 = vsub.f32 %v5359_v17, %v14589_v35 }
 0xf0a   :  { %v5550_v5 = vand.u32 4294901760, %v5549_v8  ;;  %12718 = vmatprep.subr.bf16.mxu1 %v14548_v60  ;;  %v14551_v63 = vpack.c.bf16 %v5549_v8, %v5542_v37  ;;  %v14600_v37 = vand.u32 4294901760, %v5361_v54 }
 0xf0b   :  { %12720 = vmatpush3.bf16.xpose.msra.mxu1 %v14548_v60 }
 0xf0c   :  { %v5551_v20 = vsub.f32 %v5549_v8, %v5550_v5  ;;  %v14554_v56 = vpack.c.bf16 %v5550_v5, %v5543_v18  ;;  %v14607_v18 = vsub.f32 %v5357_v53, %v14585_v26  ;;  %v14612_v8 = vand.u32 4294901760, %v5363_v14 }
 0xf0e   :  { %v5552_v47 = vand.u32 4294901760, %v5551_v20  ;;  %v5367_v20 = vsel %vm1124_vm3, %v14530_v0, 0 }
 0xf10   :  { %v14556_v32 = vpack.c.bf16 %v5552_v47, %v5545_v28 }
 0xf66   :  { %v5346_v38 = vpop.permute.xlu1 %5345 }
 0xf67   :  { %v5377_v52 = vsel %vm1124_vm3, %v5346_v38, 0  ;;  %v5344_v1 = vpop.permute.xlu0 %5343  ;;  %v14624_v38 = vsub.f32 %v5361_v54, %v14600_v37 }
 0xf68   :  { %v5397_v6 = vand.u32 4294901760, %v5377_v52  ;;  %v5375_v9 = vsel %vm1124_vm3, %v5344_v1, 0  ;;  %v5472_v1 = vand.u32 4294901760, %v14607_v18 }
 0xf69   :  { %v5394_v24 = vand.u32 4294901760, %v5375_v9  ;;  %v15389_v53 = vand.u32 4294901760, %v14624_v38 }
 0xf6a   :  { %v14560_v30 = vsub.f32 %v5377_v52, %v5397_v6  ;;  %v14626_v52 = vand.u32 4294901760, %v5365_v4 }
 0xf6b   :  { %v14562_v22 = vpack.c.bf16 %v5397_v6, %v5394_v24  ;;  %v14564_v34 = vsub.f32 %v5375_v9, %v5394_v24  ;;  %v5348_v36 = vpop.permute.xlu0 %5347  ;;  %v14631_v9 = vand.u32 4294901760, %v5367_v20  ;;  %v14634_v24 = vsub.f32 %v5363_v14, %v14612_v8 }
 0xf6c   :  { %v5564_v51 = vand.u32 4294901760, %v14560_v30  ;;  %v5379_v3 = vsel %vm1124_vm3, %v5348_v36, 0  ;;  %v5369_v36 = vsel %vm1124_vm3, %v14543_v11, 0 }
 0xf6d   :  { %v5557_v45 = vand.u32 4294901760, %v14564_v34  ;;  %12722 = vmatprep.subr.bf16.mxu1 %v14562_v22  ;;  %v5400_v49 = vand.u32 4294901760, %v5379_v3  ;;  %v14653_v17 = vsub.f32 %v5367_v20, %v14631_v9 }
 0xf6e   :  { %12724 = vmatpush3.bf16.xpose.msra.mxu1 %v14562_v22 }
 0xf6f   :  { %v5352_v55 = vpop.permute.xlu0 %5351  ;;  %v5350_v57 = vpop.permute.xlu1 %5349  ;;  %v14571_v41 = vpack.c.bf16 %v5564_v51, %v5557_v45  ;;  %v14579_v7 = vsub.f32 %v5379_v3, %v5400_v49  ;;  %v5482_v3 = vand.u32 4294901760, %v14610_v27  ;;  %v15391_v20 = vand.u32 4294901760, %v14653_v17 }
 0xf70   :  { %v5383_v61 = vsel %vm1124_vm3, %v5352_v55, 0  ;;  %v5381_v50 = vsel %vm1124_vm3, %v5350_v57, 0  ;;  %v5558_v55 = vsub.f32 %v14564_v34, %v5557_v45  ;;  %v14643_v57 = vsub.f32 %v5365_v4, %v14626_v52 }
 0xf71   :  { %v5406_v48 = vand.u32 4294901760, %v5383_v61  ;;  %v5403_v2 = vand.u32 4294901760, %v5381_v50  ;;  %v5571_v31 = vand.u32 4294901760, %v14579_v7  ;;  %v15390_v45 = vand.u32 4294901760, %v14634_v24 }
 0xf72   :  { %v5512_v14 = vand.u32 4294901760, %v14643_v57 }
 0xf73   :  { %v14581_v10 = vpack.c.bf16 %v5403_v2, %v5400_v49  ;;  %v14583_v13 = vsub.f32 %v5381_v50, %v5403_v2  ;;  %v5354_v43 = vpop.permute.xlu1 %5353  ;;  %v14594_v12 = vsub.f32 %v5383_v61, %v5406_v48  ;;  %v5565_v49 = vsub.f32 %v14560_v30, %v5564_v51 }
 0xf74   :  { %v5385_v23 = vsel %vm1124_vm3, %v5354_v43, 0  ;;  %v14645_v61 = vand.u32 4294901760, %v5369_v36  ;;  %v5473_v50 = vsub.f32 %v14607_v18, %v5472_v1  ;;  %v5483_v51 = vsub.f32 %v14610_v27, %v5482_v3 }
 0xf75   :  { %v5578_v62 = vand.u32 4294901760, %v14583_v13  ;;  %v5409_v16 = vand.u32 4294901760, %v5385_v23  ;;  %12726 = vmatprep.subr.bf16.mxu1 %v14581_v10  ;;  %v5585_v28 = vand.u32 4294901760, %v14594_v12  ;;  %v5566_v2 = vand.u32 4294901760, %v5565_v49 }
 0xf76   :  { %12728 = vmatpush3.bf16.xpose.msra.mxu1 %v14581_v10  ;;  %v14660_v43 = vsub.f32 %v5369_v36, %v14645_v61  ;;  %v5474_v54 = vand.u32 4294901760, %v5473_v50  ;;  %v5503_v4 = vsub.f32 %v14634_v24, %v15390_v45  ;;  %v5572_v36 = vsub.f32 %v14579_v7, %v5571_v31 }
 0xf77   :  { %v14602_v44 = vpack.c.bf16 %v5409_v16, %v5406_v48  ;;  %v14604_v46 = vsub.f32 %v5385_v23, %v5409_v16  ;;  %v14616_v5 = vpack.c.bf16 %v5578_v62, %v5571_v31  ;;  %v5559_v48 = vand.u32 4294901760, %v5558_v55 }
 0xf78   :  { %v5493_v23 = vsub.f32 %v14624_v38, %v15389_v53  ;;  %v5484_v16 = vand.u32 4294901760, %v5483_v51  ;;  %v5579_v55 = vsub.f32 %v14583_v13, %v5578_v62  ;;  %v5513_v51 = vsub.f32 %v14643_v57, %v5512_v14 }
 0xf79   :  { %v5592_v47 = vand.u32 4294901760, %v14604_v46  ;;  %12730 = vmatprep.subr.bf16.mxu1 %v14602_v44  ;;  %v12737_v49 = vpack.c.bf16 %v5566_v2, %v5559_v48  ;;  %v5532_v53 = vand.u32 4294901760, %v14660_v43  ;;  %v5504_v45 = vand.u32 4294901760, %v5503_v4 }
 0xf7a   :  { %v5494_v50 = vand.u32 4294901760, %v5493_v23  ;;  %v5523_v62 = vsub.f32 %v14653_v17, %v15391_v20  ;;  %v5580_v48 = vand.u32 4294901760, %v5579_v55  ;;  %v5514_v2 = vand.u32 4294901760, %v5513_v51 }
 0xf7b   :  { %v14629_v6 = vpack.c.bf16 %v5592_v47, %v5585_v28  ;;  %v5533_v31 = vsub.f32 %v14660_v43, %v5532_v53  ;;  %v5593_v23 = vsub.f32 %v14604_v46, %v5592_v47  ;;  %v5586_v4 = vsub.f32 %v14594_v12, %v5585_v28 }
 0xf7c   :  { %v12753_v47 = vpack.c.bf16 %v14560_v30, %v14564_v34  ;;  %v12757_v28 = vpack.c.bf16 %v14583_v13, %v14579_v7  ;;  %v15396_v30 = vand.u32 4294901760, %v14653_v17  ;;  %v13554_v34 = vld [vmem:[%s15384_s1 + $0x18] sm:$0xff] }
 0xf7d   :  { %v5534_v20 = vand.u32 4294901760, %v5533_v31  ;;  %v5594_v55 = vand.u32 4294901760, %v5593_v23 }
 0xf7e   :  { %12732 = vmatpush3.bf16.xpose.msra.mxu1 %v14602_v44 }
 0xf7f   :  { %12734 = vmatprep.subr.bf16.mxu1 %v14556_v32 }
 0xf85   :  { %11564 = vmatmul.mubr.f32.vlgmr.msra.gmra.mrb[16].mxu1 %v5474_v54  ;;  %v5524_v54 = vand.u32 4294901760, %v5523_v62 }
 0xf86   :  { %11566 = vmatprep.mubr.f32.mxu1 %v5484_v16  ;;  %12736 = vmatpush3.bf16.xpose.msra.mxu1 %v14556_v32  ;;  %v5573_v32 = vand.u32 4294901760, %v5572_v36 }
 0xf87   :  { %12738 = vmatprep.subr.bf16.mxu1 %v12737_v49 }
 0xf88   :  { %v12741_v16 = vpack.c.bf16 %v5580_v48, %v5573_v32 }
 0xf89   :  { %11567 = vmatmul.mubr.f32.gmra.mrb[18].mxu1 %v5494_v50 }
 0xf8a   :  { %11569 = vmatprep.mubr.f32.mxu1 %v5504_v45  ;;  %v5587_v45 = vand.u32 4294901760, %v5586_v4 }
 0xf8c   :  { %v12745_v36 = vpack.c.bf16 %v5594_v55, %v5587_v45 }
 0xf8d   :  { %11570 = vmatmul.mubr.f32.gmra.mrb[20].mxu1 %v5514_v2 }
 0xf8e   :  { %11572 = vmatprep.mubr.f32.mxu1 %v5524_v54  ;;  %12740 = vmatpush3.bf16.xpose.msra.mxu1 %v12737_v49 }
 0xf8f   :  { %12742 = vmatprep.subr.bf16.mxu1 %v12741_v16 }
 0xf91   :  { %11573 = vmatmul.mubr.f32.gmra.mrb[22].mxu1 %v5534_v20 }
 0xf92   :  { %11591 = vmatprep.mubr.f32.mxu1 %v14501_v19 }
 0xf96   :  { %12744 = vmatpush3.bf16.xpose.msra.mxu1 %v12741_v16 }
 0xf97   :  { %12746 = vmatprep.subr.bf16.mxu1 %v12745_v36 }
 0xf9e   :  { %12748 = vmatpush3.bf16.xpose.msra.mxu1 %v12745_v36 }
 0xf9f   :  { %12750 = vmatprep.subr.bf16.mxu1 %v14551_v63 }
 0xfa5   :  { %11592 = vmatmul.mubr.f32.vlgmr.msra.gmra.mrb[16].mxu1 %v14585_v26 }
 0xfa6   :  { %11594 = vmatprep.mubr.f32.mxu1 %v14589_v35  ;;  %12752 = vmatpush3.bf16.xpose.msra.mxu1 %v14551_v63  ;;  %v12761_v63 = vpack.c.bf16 %v14604_v46, %v14594_v12 }
 0xfa7   :  { %12754 = vmatprep.subr.bf16.mxu1 %v12753_v47 }
 0xfa9   :  { %11595 = vmatmul.mubr.f32.gmra.mrb[18].mxu1 %v14600_v37 }
 0xfaa   :  { %11597 = vmatprep.mubr.f32.mxu1 %v14612_v8 }
 0xfad   :  { %11598 = vmatmul.mubr.f32.gmra.mrb[20].mxu1 %v14626_v52 }
 0xfae   :  { %11600 = vmatprep.mubr.f32.mxu1 %v14631_v9  ;;  %12756 = vmatpush3.bf16.xpose.msra.mxu1 %v12753_v47 }
 0xfaf   :  { %12758 = vmatprep.subr.bf16.mxu1 %v12757_v28 }
 0xfb1   :  { %11601 = vmatmul.mubr.f32.gmra.mrb[22].mxu1 %v14645_v61 }
 0xfb2   :  { %11619 = vmatprep.mubr.f32.mxu1 %v14506_v21  ;;  %v15394_v21 = vand.u32 4294901760, %v14624_v38 }
 0xfb6   :  { %12760 = vmatpush3.bf16.xpose.msra.mxu1 %v12757_v28 }
 0xfb7   :  { %12762 = vmatprep.subr.bf16.mxu1 %v12761_v63 }
 0xfbe   :  { %12764 = vmatpush3.bf16.xpose.msra.mxu1 %v12761_v63 }
 0xfbf   :  { %12766 = vmatprep.subr.bf16.mxu1 %v14548_v60 }
 0xfc5   :  { %11620 = vmatmul.mubr.f32.vlgmr.msra.gmra.mrb[16].mxu1 %v14607_v18 }
 0xfc6   :  { %11622 = vmatprep.mubr.f32.mxu1 %v14610_v27  ;;  %12768 = vmatpush3.bf16.xpose.msra.mxu1 %v14548_v60 }
 0xfc7   :  { %12770 = vmatprep.subr.bf16.mxu1 %v14562_v22 }
 0xfc9   :  { %11623 = vmatmul.mubr.f32.gmra.mrb[18].mxu1 %v14624_v38  ;;  %v13558_v38 = vld [vmem:[%s15384_s1 + $0x40] sm:$0xff] }
 0xfca   :  { %11625 = vmatprep.mubr.f32.mxu1 %v14634_v24 }
 0xfcd   :  { %11626 = vmatmul.mubr.f32.gmra.mrb[20].mxu1 %v14643_v57 }
 0xfce   :  { %11628 = vmatprep.mubr.f32.mxu1 %v14653_v17  ;;  %12772 = vmatpush3.bf16.xpose.msra.mxu1 %v14562_v22  ;;  %v13560_v17 = vld [vmem:[%s15384_s1 + $0x48] sm:$0xff] }
 0xfcf   :  { %12774 = vmatprep.subr.bf16.mxu1 %v14581_v10 }
 0xfd1   :  { %11629 = vmatmul.mubr.f32.gmra.mrb[22].mxu1 %v14660_v43 }
 0xfd2   :  { %11647 = vmatprep.mubr.f32.mxu1 %v5462_v40  ;;  %v15395_v40 = vand.u32 4294901760, %v14634_v24 }
 0xfd6   :  { %12776 = vmatpush3.bf16.xpose.msra.mxu1 %v14581_v10 }
 0xfd7   :  { %12778 = vmatprep.subr.bf16.mxu1 %v14602_v44 }
 0xfde   :  { %12780 = vmatpush3.bf16.xpose.msra.mxu1 %v14602_v44 }
 0xfdf   :  { %12782 = vmatprep.subr.bf16.mxu1 %v14554_v56 }
 0xfe5   :  { %11648 = vmatmul.mubr.f32.vlgmr.msra.gmra.mrb[16].mxu1 %v5472_v1 }
 0xfe6   :  { %11650 = vmatprep.mubr.f32.mxu1 %v5482_v3  ;;  %12784 = vmatpush3.bf16.xpose.msra.mxu1 %v14554_v56  ;;  %v13559_v3 = vld [vmem:[%s15384_s1 + $0x50] sm:$0xff] }
 0xfe7   :  { %12786 = vmatprep.subr.bf16.mxu1 %v14571_v41 }
 0xfe9   :  { %11651 = vmatmul.mubr.f32.gmra.mrb[18].mxu1 %v15394_v21 }
 0xfea   :  { %11653 = vmatprep.mubr.f32.mxu1 %v15395_v40 }
 0xfed   :  { %11654 = vmatmul.mubr.f32.gmra.mrb[20].mxu1 %v5512_v14 }
 0xfee   :  { %11656 = vmatprep.mubr.f32.mxu1 %v15396_v30  ;;  %12788 = vmatpush3.bf16.xpose.msra.mxu1 %v14571_v41 }
 0xfef   :  { %12790 = vmatprep.subr.bf16.mxu1 %v14616_v5 }
 0xff1   :  { %11657 = vmatmul.mubr.f32.gmra.mrb[22].mxu1 %v5532_v53 }
 0xff2   :  { %11675 = vmatprep.mubr.f32.mxu1 %v14501_v19 }
 0xff6   :  { %12792 = vmatpush3.bf16.xpose.msra.mxu1 %v14616_v5 }
 0xff7   :  { %12794 = vmatprep.subr.bf16.mxu1 %v14629_v6 }
 0xffe   :  { %12796 = vmatpush3.bf16.xpose.msra.mxu1 %v14629_v6 }
 0xfff   :  { %12798 = vmatprep.subr.bf16.mxu1 %v14548_v60 }
0x1005   :  { %11676 = vmatmul.mubr.f32.vlgmr.msra.gmra.mrb[16].mxu1 %v14585_v26 }
0x1006   :  { %11678 = vmatprep.mubr.f32.mxu1 %v14589_v35  ;;  %12800 = vmatpush3.bf16.xpose.msra.mxu1 %v14548_v60  ;;  %v13553_v60 = vld [vmem:[%s15384_s1 + $0x20] sm:$0xff] }
0x1007   :  { %12802 = vmatprep.subr.bf16.mxu1 %v14562_v22 }
0x1009   :  { %11679 = vmatmul.mubr.f32.gmra.mrb[18].mxu1 %v14600_v37 }
0x100a   :  { %11681 = vmatprep.mubr.f32.mxu1 %v14612_v8 }
0x100d   :  { %11682 = vmatmul.mubr.f32.gmra.mrb[20].mxu1 %v14626_v52 }
0x100e   :  { %11684 = vmatprep.mubr.f32.mxu1 %v14631_v9  ;;  %12804 = vmatpush3.bf16.xpose.msra.mxu1 %v14562_v22 }
0x100f   :  { %12806 = vmatprep.subr.bf16.mxu1 %v14581_v10 }
0x1011   :  { %11685 = vmatmul.mubr.f32.gmra.mrb[22].mxu1 %v14645_v61 }
0x1012   :  { %11703 = vmatprep.mubr.f32.mxu1 %v14501_v19 }
0x1016   :  { %12808 = vmatpush3.bf16.xpose.msra.mxu1 %v14581_v10 }
0x1017   :  { %12810 = vmatprep.subr.bf16.mxu1 %v14602_v44 }
0x101e   :  { %12812 = vmatpush3.bf16.xpose.msra.mxu1 %v14602_v44 }
0x1025   :  { %11704 = vmatmul.mubr.f32.vlgmr.msra.gmra.mrb[16].mxu1 %v14585_v26 }
0x1026   :  { %11706 = vmatprep.mubr.f32.mxu1 %v14589_v35  ;;  %v13555_v35 = vld [vmem:[%s15384_s1 + $0x28] sm:$0xff] }
0x1029   :  { %11707 = vmatmul.mubr.f32.gmra.mrb[18].mxu1 %v14600_v37  ;;  %v13556_v37 = vld [vmem:[%s15384_s1 + $0x30] sm:$0xff] }
0x102a   :  { %11709 = vmatprep.mubr.f32.mxu1 %v14612_v8  ;;  %v13557_v8 = vld [vmem:[%s15384_s1 + $0x38] sm:$0xff] }
0x102d   :  { %11710 = vmatmul.mubr.f32.gmra.mrb[20].mxu1 %v14626_v52 }
0x102e   :  { %11712 = vmatprep.mubr.f32.mxu1 %v14631_v9 }
0x1031   :  { %11713 = vmatmul.mubr.f32.gmra.mrb[22].mxu1 %v14645_v61 }
0x10f8   :  { %v11705_v19 = vpop.f32.mrb[16].mxu1 }
0x10f9   :  { %v13175_v56 = vadd.f32 %v13553_v60, %v11705_v19  ;;  %v6179_v22 = vpop.f32.mrb[17].mxu1 }
0x10fa   :  { %v13176_v41 = vadd.f32 %v13554_v34, %v6179_v22 }
0x10fb   :  { %v6228_v7 = vsel %vm1995_vm4, %v13175_v56, -inf }
0x10fc   :  { %6229 = vmax.xlane.f32.xlu1 %v6228_v7  ;;  %v11708_v10 = vpop.f32.mrb[18].mxu1  ;;  %v6225_v13 = vsel %vm1995_vm4, %v13176_v41, -inf }
0x10fd   :  { %v6191_v26 = vpop.f32.mrb[19].mxu1  ;;  %6226 = vmax.xlane.f32.xlu0 %v6225_v13  ;;  %v13177_v44 = vadd.f32 %v13556_v37, %v11708_v10 }
0x10fe   :  { %v13178_v12 = vadd.f32 %v13555_v35, %v6191_v26 }
0x10ff   :  { %v6234_v9 = vsel %vm1995_vm4, %v13177_v44, -inf }
0x1100   :  { %v11711_v46 = vpop.f32.mrb[20].mxu1  ;;  %v6231_v18 = vsel %vm1995_vm4, %v13178_v12, -inf }
0x1101   :  { %v6203_v27 = vpop.f32.mrb[21].mxu1  ;;  %6232 = vmax.xlane.f32.xlu0 %v6231_v18  ;;  %v13179_v52 = vadd.f32 %v13558_v38, %v11711_v46 }
0x1102   :  { %v13180_v5 = vadd.f32 %v13557_v8, %v6203_v27 }
0x1103   :  { %v6240_v61 = vsel %vm1995_vm4, %v13179_v52, -inf }
0x1104   :  { %v11714_v1 = vpop.f32.mrb[22].mxu1  ;;  %v6237_v6 = vsel %vm1995_vm4, %v13180_v5, -inf }
0x1105   :  { %v6215_v24 = vpop.f32.mrb[23].mxu1  ;;  %6238 = vmax.xlane.f32.xlu1 %v6237_v6  ;;  %6235 = vmax.xlane.f32.xlu0 %v6234_v9  ;;  %v13181_v57 = vadd.f32 %v13559_v3, %v11714_v1 }
0x1106   :  { %v14802_v43 = vadd.f32 %v13560_v17, %v6215_v24 }
0x1107   :  { %v6246_v53 = vsel %vm1995_vm4, %v13181_v57, -inf }
0x1108   :  { %v6243_v14 = vsel %vm1995_vm4, %v14802_v43, -inf }
0x1109   :  { %6241 = vmax.xlane.f32.xlu0 %v6240_v61 }
0x110d   :  { %6247 = vmax.xlane.f32.xlu0 %v6246_v53 }
0x1116   :  { %6322 = vrot.lane.b32.xlu1 %v14493_v42, %s13589_s21 }
0x1123   :  { %6324 = vrot.lane.b32.xlu0 %v14491_v39, %s13589_s21 }
0x1127   :  { %6330 = vrot.lane.b32.xlu0 %v14532_v33, %s13589_s21 }
0x113a   :  { %6244 = vmax.xlane.f32.xlu1 %v6243_v14 }
0x114b   :  { %6326 = vrot.lane.b32.xlu1 %v14526_v25, %s13589_s21 }
0x114f   :  { %6328 = vrot.lane.b32.xlu1 %v14522_v29, %s13589_s21 }
0x1153   :  { %6332 = vrot.lane.b32.xlu1 %v14537_v59, %s13589_s21 }
0x1189   :  { %v6230_v39 = vpop.xlane.xlu1 %6229 }
0x118a   :  { %v6250_v42 = vsub.f32 %v13175_v56, %v6230_v39  ;;  %v6227_v33 = vpop.xlane.xlu0 %6226 }
0x118b   :  { %v6249_v20 = vsub.f32 %v13176_v41, %v6227_v33 }
0x118c   :  { %v6259_v49 = vmul.f32 1.442695, %v6250_v42 }
0x118d   :  { %v6257_v50 = vmul.f32 1.442695, %v6249_v20 }
0x118e   :  { %13513 = vpow2.f32 %v6259_v49  ;;  %v6233_v51 = vpop.xlane.xlu0 %6232 }
0x118f   :  { %13515 = vpow2.f32 %v6257_v50  ;;  %v6251_v62 = vsub.f32 %v13178_v12, %v6233_v51 }
0x1191   :  { %v6261_v48 = vmul.f32 1.442695, %v6251_v62 }
0x1192   :  { %v6239_v2 = vpop.xlane.xlu1 %6238  ;;  %v6236_v32 = vpop.xlane.xlu0 %6235 }
0x1193   :  { %13517 = vpow2.f32 %v6261_v48  ;;  %v6253_v25 = vsub.f32 %v13180_v5, %v6239_v2  ;;  %v6252_v31 = vsub.f32 %v13177_v44, %v6236_v32 }
0x1195   :  { %v6265_v29 = vmul.f32 1.442695, %v6253_v25  ;;  %v6263_v54 = vmul.f32 1.442695, %v6252_v31 }
0x1196   :  { %v6323_v23 = vpop.permute.xlu1 %6322  ;;  %v6242_v59 = vpop.xlane.xlu0 %6241 }
0x1197   :  { %13519 = vpow2.f32 %v6265_v29  ;;  %v6371_v16 = vand.u32 4294901760, %v6323_v23  ;;  %v6254_v4 = vsub.f32 %v13179_v52, %v6242_v59 }
0x1198   :  { %v14812_v55 = vpop.eup %13513  ;;  %13521 = vpow2.f32 %v6263_v54 }
0x1199   :  { %v14814_v45 = vpop.eup %13515  ;;  %v6525_v36 = vsub.f32 %v6323_v23, %v6371_v16  ;;  %v6267_v47 = vmul.f32 1.442695, %v6254_v4  ;;  %v6276_v28 = vsel %vm1995_vm4, %v14812_v55, 0.0 }
0x119a   :  { %6277 = vadd.xlane.f32.xlu0 %v6276_v28  ;;  %v6248_v63 = vpop.xlane.xlu0 %6247  ;;  %v6273_v21 = vsel %vm1995_vm4, %v14814_v45, 0.0 }
0x119b   :  { %13523 = vpow2.f32 %v6267_v47  ;;  %v6256_v40 = vsub.f32 %v13181_v57, %v6248_v63  ;;  %6274 = vadd.xlane.f32.xlu1 %v6273_v21  ;;  %v6526_v22 = vand.u32 4294901760, %v6525_v36 }
0x119d   :  { %v14820_v30 = vpop.eup %13517  ;;  %v6271_v19 = vmul.f32 1.442695, %v6256_v40  ;;  %v6527_v35 = vsub.f32 %v6525_v36, %v6526_v22 }
0x119e   :  { %v6325_v60 = vpop.permute.xlu0 %6324  ;;  %v6279_v56 = vsel %vm1995_vm4, %v14820_v30, 0.0 }
0x119f   :  { %13525 = vpow2.f32 %v6271_v19  ;;  %v6374_v34 = vand.u32 4294901760, %v6325_v60  ;;  %6280 = vadd.xlane.f32.xlu1 %v6279_v56  ;;  %v6528_v5 = vand.u32 4294901760, %v6527_v35 }
0x11a1   :  { %v14824_v41 = vpop.eup %13519  ;;  %v14826_v7 = vpack.c.bf16 %v6374_v34, %v6371_v16  ;;  %v6532_v10 = vsub.f32 %v6325_v60, %v6374_v34 }
0x11a2   :  { %v14828_v13 = vpop.eup %13521  ;;  %v6285_v26 = vsel %vm1995_vm4, %v14824_v41, 0.0  ;;  %v6331_v24 = vpop.permute.xlu0 %6330 }
0x11a3   :  { %v6533_v12 = vand.u32 4294901760, %v6532_v10  ;;  %6286 = vadd.xlane.f32.xlu1 %v6285_v26  ;;  %v6282_v37 = vsel %vm1995_vm4, %v14828_v13, 0.0  ;;  %12814 = vmatprep.subr.bf16.mxu0 %v14826_v7  ;;  %v14835_v44 = vpack.c.bf16 %v6532_v10, %v6525_v36  ;;  %v6383_v61 = vand.u32 4294901760, %v6331_v24 }
0x11a4   :  { %6283 = vadd.xlane.f32.xlu0 %v6282_v37  ;;  %12816 = vmatpush3.bf16.msra.mxu0 %v14826_v7 }
0x11a5   :  { %v14838_v46 = vpop.eup %13523  ;;  %v6534_v18 = vsub.f32 %v6532_v10, %v6533_v12  ;;  %v14840_v27 = vpack.c.bf16 %v6533_v12, %v6526_v22  ;;  %v6553_v39 = vsub.f32 %v6331_v24, %v6383_v61 }
0x11a6   :  { %v6288_v8 = vsel %vm1995_vm4, %v14838_v46, 0.0 }
0x11a7   :  { %v6535_v38 = vand.u32 4294901760, %v6534_v18  ;;  %v6554_v51 = vand.u32 4294901760, %v6553_v39 }
0x11a8   :  { %6289 = vadd.xlane.f32.xlu0 %v6288_v8 }
0x11a9   :  { %v14844_v52 = vpop.eup %13525  ;;  %v14846_v1 = vpack.c.bf16 %v6535_v38, %v6528_v5  ;;  %v6555_v23 = vsub.f32 %v6553_v39, %v6554_v51 }
0x11aa   :  { %v6294_v6 = vsel %vm1995_vm4, %v14844_v52, 0.0 }
0x11ab   :  { %v6556_v40 = vand.u32 4294901760, %v6555_v23 }
0x11ac   :  { %6295 = vadd.xlane.f32.xlu0 %v6294_v6 }
0x11c2   :  { %6334 = vrot.lane.b32.xlu0 %v14530_v0, %s13589_s21 }
0x11c7   :  { %v6245_v9 = vpop.xlane.xlu1 %6244 }
0x11c8   :  { %v6255_v3 = vsub.f32 %v14802_v43, %v6245_v9 }
0x11ca   :  { %v6269_v57 = vmul.f32 1.442695, %v6255_v3 }
0x11cb   :  { %v6327_v53 = vpop.permute.xlu1 %6326 }
0x11cc   :  { %13527 = vpow2.f32 %v6269_v57  ;;  %v6377_v17 = vand.u32 4294901760, %v6327_v53 }
0x11ce   :  { %v6539_v14 = vsub.f32 %v6327_v53, %v6377_v17 }
0x11cf   :  { %v6329_v42 = vpop.permute.xlu1 %6328 }
0x11d0   :  { %v6540_v33 = vand.u32 4294901760, %v6539_v14  ;;  %v6380_v20 = vand.u32 4294901760, %v6329_v42 }
0x11d2   :  { %v14853_v49 = vpack.c.bf16 %v6380_v20, %v6377_v17  ;;  %v6546_v50 = vsub.f32 %v6329_v42, %v6380_v20  ;;  %v6541_v0 = vsub.f32 %v6539_v14, %v6540_v33 }
0x11d3   :  { %v6333_v62 = vpop.permute.xlu1 %6332 }
0x11d4   :  { %v6547_v48 = vand.u32 4294901760, %v6546_v50  ;;  %v6386_v2 = vand.u32 4294901760, %v6333_v62  ;;  %12818 = vmatprep.subr.bf16.mxu0 %v14853_v49  ;;  %v14856_v43 = vpack.c.bf16 %v6546_v50, %v6539_v14  ;;  %v6542_v4 = vand.u32 4294901760, %v6541_v0 }
0x11d5   :  { %12820 = vmatpush3.bf16.msra.mxu0 %v14853_v49 }
0x11d6   :  { %v14859_v32 = vpop.eup %13527  ;;  %v6548_v25 = vsub.f32 %v6546_v50, %v6547_v48  ;;  %v14861_v31 = vpack.c.bf16 %v6386_v2, %v6383_v61  ;;  %v6560_v29 = vsub.f32 %v6333_v62, %v6386_v2  ;;  %v14863_v54 = vpack.c.bf16 %v6547_v48, %v6540_v33 }
0x11d7   :  { %v6291_v59 = vsel %vm1995_vm4, %v14859_v32, 0.0 }
0x11d8   :  { %v6561_v16 = vand.u32 4294901760, %v6560_v29  ;;  %6292 = vadd.xlane.f32.xlu1 %v6291_v59  ;;  %12822 = vmatprep.subr.bf16.mxu0 %v14861_v31  ;;  %v6549_v36 = vand.u32 4294901760, %v6548_v25  ;;  %v14868_v47 = vpack.c.bf16 %v6560_v29, %v6553_v39 }
0x11d9   :  { %12824 = vmatpush3.bf16.msra.mxu0 %v14861_v31 }
0x11da   :  { %v6562_v28 = vsub.f32 %v6560_v29, %v6561_v16  ;;  %v14871_v63 = vpack.c.bf16 %v6549_v36, %v6542_v4  ;;  %v14873_v21 = vpack.c.bf16 %v6561_v16, %v6554_v51 }
0x11dc   :  { %v6563_v19 = vand.u32 4294901760, %v6562_v28 }
0x11de   :  { %v14875_v60 = vpack.c.bf16 %v6563_v19, %v6556_v40 }
0x11e9   :  { %6336 = vrot.lane.b32.xlu1 %v14543_v11, %s13589_s21 }
0x1227   :  { %v6278_v56 = vpop.xlane.xlu0 %6277 }
0x1228   :  { %13529 = vrcp.f32 %v6278_v56  ;;  %v6275_v22 = vpop.xlane.xlu1 %6274 }
0x1229   :  { %13531 = vrcp.f32 %v6275_v22 }
0x122c   :  { %v6281_v34 = vpop.xlane.xlu1 %6280 }
0x122d   :  { %13533 = vrcp.f32 %v6281_v34 }
0x1230   :  { %v6287_v10 = vpop.xlane.xlu1 %6286 }
0x1231   :  { %13535 = vrcp.f32 %v6287_v10  ;;  %v6284_v26 = vpop.xlane.xlu0 %6283 }
0x1232   :  { %v13530_v35 = vpop.eup %13529  ;;  %13537 = vrcp.f32 %v6284_v26 }
0x1233   :  { %v13532_v12 = vpop.eup %13531  ;;  %v6300_v37 = vmul.f32 %v13530_v35, %v14812_v55 }
0x1234   :  { %v6298_v18 = vmul.f32 %v13532_v12, %v14814_v45 }
0x1235   :  { %10001 = vst.msk [vmem:[%s15386_s3 + $0x48] sm:$0xff] %vm1995_vm4, %v6300_v37  ;;  %v6290_v11 = vpop.xlane.xlu0 %6289  ;;  %v6350_v39 = vsel %vm1995_vm4, %v6300_v37, 0 }
0x1236   :  { %10000 = vst.msk [vmem:[%s15386_s3 + $0x40] sm:$0xff] %vm1995_vm4, %v6298_v18  ;;  %13539 = vrcp.f32 %v6290_v11  ;;  %v6347_v8 = vsel %vm1995_vm4, %v6298_v18, 0  ;;  %v14926_v33 = vand.u32 4294901760, %v6350_v39 }
0x1237   :  { %v13534_v5 = vpop.eup %13533  ;;  %v14890_v38 = vand.u32 4294901760, %v6347_v8 }
0x1238   :  { %v6302_v55 = vmul.f32 %v13534_v5, %v14820_v30  ;;  %v14933_v51 = vsub.f32 %v6350_v39, %v14926_v33 }
0x1239   :  { %v6296_v45 = vpop.xlane.xlu0 %6295  ;;  %v14894_v6 = vsub.f32 %v6347_v8, %v14890_v38 }
0x123a   :  { %10002 = vst.msk [vmem:[%s15386_s3 + $0x50] sm:$0xff] %vm1995_vm4, %v6302_v55  ;;  %13541 = vrcp.f32 %v6296_v45  ;;  %v6353_v42 = vsel %vm1995_vm4, %v6302_v55, 0  ;;  %v6455_v23 = vand.u32 4294901760, %v14933_v51 }
0x123b   :  { %v13536_v9 = vpop.eup %13535  ;;  %v6445_v24 = vand.u32 4294901760, %v14894_v6 }
0x123c   :  { %v13538_v3 = vpop.eup %13537  ;;  %v6306_v57 = vmul.f32 %v13536_v9, %v14824_v41  ;;  %v6456_v22 = vsub.f32 %v14933_v51, %v6455_v23 }
0x123d   :  { %v6304_v61 = vmul.f32 %v13538_v3, %v14828_v13  ;;  %v6446_v30 = vsub.f32 %v14894_v6, %v6445_v24 }
0x123e   :  { %10004 = vst.msk [vmem:[%s15386_s3 + $0x60] sm:$0xff] %vm1995_vm4, %v6306_v57  ;;  %v6359_v50 = vsel %vm1995_vm4, %v6306_v57, 0  ;;  %v6457_v55 = vand.u32 4294901760, %v6456_v22 }
0x123f   :  { %10003 = vst.msk [vmem:[%s15386_s3 + $0x58] sm:$0xff] %vm1995_vm4, %v6304_v61  ;;  %v6447_v53 = vand.u32 4294901760, %v6446_v30  ;;  %v6356_v20 = vsel %vm1995_vm4, %v6304_v61, 0  ;;  %v14940_v2 = vand.u32 4294901760, %v6359_v50 }
0x1240   :  { %v13540_v17 = vpop.eup %13539  ;;  %v14935_v62 = vand.u32 4294901760, %v6356_v20 }
0x1241   :  { %v6308_v41 = vmul.f32 %v13540_v17, %v14838_v46  ;;  %11731 = vmatprep.mubr.f32.mxu0 %v6447_v53  ;;  %v14928_v46 = vand.u32 4294901760, %v6353_v42  ;;  %v14951_v28 = vsub.f32 %v6359_v50, %v14940_v2 }
0x1242   :  { %v14945_v59 = vsub.f32 %v6356_v20, %v14935_v62 }
0x1243   :  { %10005 = vst.msk [vmem:[%s15386_s3 + $0x68] sm:$0xff] %vm1995_vm4, %v6308_v41  ;;  %v14938_v48 = vsub.f32 %v6353_v42, %v14928_v46  ;;  %v6362_v25 = vsel %vm1995_vm4, %v6308_v41, 0  ;;  %v6485_v37 = vand.u32 4294901760, %v14951_v28 }
0x1244   :  { %v13542_v13 = vpop.eup %13541  ;;  %v14947_v16 = vand.u32 4294901760, %v6362_v25  ;;  %v6475_v26 = vand.u32 4294901760, %v14945_v59 }
0x1245   :  { %v6312_v14 = vmul.f32 %v13542_v13, %v14844_v52  ;;  %v6335_v52 = vpop.permute.xlu0 %6334  ;;  %v6465_v36 = vand.u32 4294901760, %v14938_v48  ;;  %v6486_v61 = vsub.f32 %v14951_v28, %v6485_v37 }
0x1246   :  { %v6389_v29 = vand.u32 4294901760, %v6335_v52  ;;  %v14965_v35 = vsub.f32 %v6362_v25, %v14947_v16  ;;  %v6476_v45 = vsub.f32 %v14945_v59, %v6475_v26 }
0x1247   :  { %10007 = vst.msk [vmem:[%s15386_s3 + $0x78] sm:$0xff] %vm1995_vm4, %v6312_v14  ;;  %v6368_v19 = vsel %vm1995_vm4, %v6312_v14, 0  ;;  %v6466_v12 = vsub.f32 %v14938_v48, %v6465_v36  ;;  %v6487_v39 = vand.u32 4294901760, %v6486_v61 }
0x1248   :  { %v14954_v56 = vsub.f32 %v6335_v52, %v6389_v29  ;;  %v14971_v18 = vand.u32 4294901760, %v6368_v19  ;;  %v6495_v9 = vand.u32 4294901760, %v14965_v35  ;;  %v6477_v41 = vand.u32 4294901760, %v6476_v45 }
0x1249   :  { %v6467_v57 = vand.u32 4294901760, %v6466_v12 }
0x124a   :  { %v6568_v5 = vand.u32 4294901760, %v14954_v56  ;;  %v14987_v30 = vsub.f32 %v6368_v19, %v14971_v18  ;;  %v6496_v13 = vsub.f32 %v14965_v35, %v6495_v9 }
0x124c   :  { %v6569_v17 = vsub.f32 %v14954_v56, %v6568_v5  ;;  %v6515_v42 = vand.u32 4294901760, %v14987_v30  ;;  %v6497_v50 = vand.u32 4294901760, %v6496_v13 }
0x124e   :  { %v6570_v52 = vand.u32 4294901760, %v6569_v17  ;;  %v6516_v25 = vsub.f32 %v14987_v30, %v6515_v42 }
0x1250   :  { %v6517_v19 = vand.u32 4294901760, %v6516_v25 }
0x1265   :  { %v6293_v0 = vpop.xlane.xlu1 %6292 }
0x1266   :  { %13543 = vrcp.f32 %v6293_v0 }
0x1269   :  { %v6337_v4 = vpop.permute.xlu1 %6336 }
0x126a   :  { %v6392_v40 = vand.u32 4294901760, %v6337_v4 }
0x126c   :  { %v14959_v34 = vpack.c.bf16 %v6392_v40, %v6389_v29  ;;  %v14961_v10 = vsub.f32 %v6337_v4, %v6392_v40 }
0x126e   :  { %v6575_v11 = vand.u32 4294901760, %v14961_v10  ;;  %12826 = vmatprep.subr.bf16.mxu0 %v14959_v34 }
0x126f   :  { %12828 = vmatpush3.bf16.msra.mxu0 %v14959_v34 }
0x1270   :  { %v13544_v8 = vpop.eup %13543  ;;  %12830 = vmatprep.subr.bf16.mxu0 %v14846_v1  ;;  %v6576_v53 = vsub.f32 %v14961_v10, %v6575_v11 }
0x1271   :  { %v6310_v3 = vmul.f32 %v13544_v8, %v14859_v32 }
0x1272   :  { %11732 = vmatmul.mubr.f32.vlgmr.msra.gmra.mrb[12].mxu0 %v6457_v55 }
0x1273   :  { %10006 = vst.msk [vmem:[%s15386_s3 + $0x70] sm:$0xff] %vm1995_vm4, %v6310_v3  ;;  %11734 = vmatprep.mubr.f32.mxu0 %v6467_v57  ;;  %12832 = vmatpush3.bf16.msra.mxu0 %v14846_v1  ;;  %v6365_v32 = vsel %vm1995_vm4, %v6310_v3, 0  ;;  %v6577_v1 = vand.u32 4294901760, %v6576_v53 }
0x1274   :  { %12834 = vmatprep.subr.bf16.mxu0 %v14871_v63  ;;  %v15005_v14 = vand.u32 4294901760, %v6365_v32 }
0x1275   :  { %v12841_v29 = vpack.c.bf16 %v6577_v1, %v6570_v52 }
0x1276   :  { %11735 = vmatmul.mubr.f32.gmra.mrb[14].mxu0 %v6477_v41  ;;  %v15009_v20 = vsub.f32 %v6365_v32, %v15005_v14 }
0x1277   :  { %11737 = vmatprep.mubr.f32.mxu0 %v6487_v39  ;;  %12836 = vmatpush3.bf16.msra.mxu0 %v14871_v63  ;;  %v12857_v63 = vpack.c.bf16 %v14961_v10, %v14954_v56 }
0x1278   :  { %12838 = vmatprep.subr.bf16.mxu0 %v14875_v60  ;;  %v6505_v0 = vand.u32 4294901760, %v15009_v20 }
0x127a   :  { %11738 = vmatmul.mubr.f32.gmra.mrb[16].mxu0 %v6497_v50  ;;  %v6506_v4 = vsub.f32 %v15009_v20, %v6505_v0 }
0x127b   :  { %12840 = vmatpush3.bf16.msra.mxu0 %v14875_v60 }
0x127c   :  { %12842 = vmatprep.subr.bf16.mxu0 %v12841_v29  ;;  %v6507_v40 = vand.u32 4294901760, %v6506_v4 }
0x127e   :  { %11740 = vmatprep.mubr.f32.mxu0 %v6507_v40 }
0x127f   :  { %11741 = vmatmul.mubr.f32.gmra.mrb[18].mxu0 %v6517_v19 }
0x1280   :  { %12844 = vmatpush3.bf16.msra.mxu0 %v12841_v29  ;;  %11759 = vmatprep.mubr.f32.mxu0 %v14890_v38 }
0x1281   :  { %12846 = vmatprep.subr.bf16.mxu0 %v14835_v44 }
0x1283   :  { %11760 = vmatmul.mubr.f32.vlgmr.msra.gmra.mrb[12].mxu0 %v14926_v33 }
0x1284   :  { %12848 = vmatpush3.bf16.msra.mxu0 %v14835_v44  ;;  %11762 = vmatprep.mubr.f32.mxu0 %v14928_v46  ;;  %v12889_v44 = vpack.c.bf16 %v6575_v11, %v6568_v5 }
0x1285   :  { %12850 = vmatprep.subr.bf16.mxu0 %v14856_v43 }
0x1287   :  { %11763 = vmatmul.mubr.f32.gmra.mrb[14].mxu0 %v14935_v62 }
0x1288   :  { %12852 = vmatpush3.bf16.msra.mxu0 %v14856_v43  ;;  %11765 = vmatprep.mubr.f32.mxu0 %v14940_v2 }
0x1289   :  { %12854 = vmatprep.subr.bf16.mxu0 %v14868_v47 }
0x128b   :  { %11766 = vmatmul.mubr.f32.gmra.mrb[16].mxu0 %v14947_v16 }
0x128c   :  { %12856 = vmatpush3.bf16.msra.mxu0 %v14868_v47  ;;  %11768 = vmatprep.mubr.f32.mxu0 %v15005_v14 }
0x128d   :  { %12858 = vmatprep.subr.bf16.mxu0 %v12857_v63 }
0x128f   :  { %11769 = vmatmul.mubr.f32.gmra.mrb[18].mxu0 %v14971_v18 }
0x1290   :  { %12860 = vmatpush3.bf16.msra.mxu0 %v12857_v63  ;;  %11787 = vmatprep.mubr.f32.mxu0 %v14894_v6 }
0x1291   :  { %12862 = vmatprep.subr.bf16.mxu0 %v14826_v7 }
0x1293   :  { %11788 = vmatmul.mubr.f32.vlgmr.msra.gmra.mrb[12].mxu0 %v14933_v51 }
0x1294   :  { %12864 = vmatpush3.bf16.msra.mxu0 %v14826_v7  ;;  %11790 = vmatprep.mubr.f32.mxu0 %v14938_v48 }
0x1295   :  { %12866 = vmatprep.subr.bf16.mxu0 %v14853_v49 }
0x1297   :  { %11791 = vmatmul.mubr.f32.gmra.mrb[14].mxu0 %v14945_v59 }
0x1298   :  { %12868 = vmatpush3.bf16.msra.mxu0 %v14853_v49  ;;  %11793 = vmatprep.mubr.f32.mxu0 %v14951_v28 }
0x1299   :  { %12870 = vmatprep.subr.bf16.mxu0 %v14861_v31 }
0x129b   :  { %11794 = vmatmul.mubr.f32.gmra.mrb[16].mxu0 %v14965_v35 }
0x129c   :  { %12872 = vmatpush3.bf16.msra.mxu0 %v14861_v31  ;;  %11796 = vmatprep.mubr.f32.mxu0 %v15009_v20 }
0x129d   :  { %12874 = vmatprep.subr.bf16.mxu0 %v14959_v34 }
0x129f   :  { %11797 = vmatmul.mubr.f32.gmra.mrb[18].mxu0 %v14987_v30 }
0x12a0   :  { %12876 = vmatpush3.bf16.msra.mxu0 %v14959_v34  ;;  %11815 = vmatprep.mubr.f32.mxu0 %v6445_v24  ;;  %v4766_v24 = vld [vmem:[%s15384_s1 + $0x170] sm:$0xff] }
0x12a1   :  { %12878 = vmatprep.subr.bf16.mxu0 %v14840_v27 }
0x12a3   :  { %11816 = vmatmul.mubr.f32.vlgmr.msra.gmra.mrb[12].mxu0 %v6455_v23 }
0x12a4   :  { %12880 = vmatpush3.bf16.msra.mxu0 %v14840_v27  ;;  %11818 = vmatprep.mubr.f32.mxu0 %v6465_v36  ;;  %v4765_v27 = vld [vmem:[%s15384_s1 + $0x168] sm:$0xff] }
0x12a5   :  { %12882 = vmatprep.subr.bf16.mxu0 %v14863_v54  ;;  %v7252_v43 = vand.u32 4294901760, %v4765_v27 }
0x12a7   :  { %11819 = vmatmul.mubr.f32.gmra.mrb[14].mxu0 %v6475_v26  ;;  %v7346_v6 = vsub.f32 %v4765_v27, %v7252_v43 }
0x12a8   :  { %12884 = vmatpush3.bf16.msra.mxu0 %v14863_v54  ;;  %11821 = vmatprep.mubr.f32.mxu0 %v6485_v37 }
0x12a9   :  { %12886 = vmatprep.subr.bf16.mxu0 %v14873_v21  ;;  %v7347_v48 = vand.u32 4294901760, %v7346_v6 }
0x12ab   :  { %11822 = vmatmul.mubr.f32.gmra.mrb[16].mxu0 %v6495_v9  ;;  %v7348_v36 = vsub.f32 %v7346_v6, %v7347_v48 }
0x12ac   :  { %12888 = vmatpush3.bf16.msra.mxu0 %v14873_v21  ;;  %11824 = vmatprep.mubr.f32.mxu0 %v6505_v0 }
0x12ad   :  { %12890 = vmatprep.subr.bf16.mxu0 %v12889_v44 }
0x12af   :  { %11825 = vmatmul.mubr.f32.gmra.mrb[18].mxu0 %v6515_v42 }
0x12b0   :  { %12892 = vmatpush3.bf16.msra.mxu0 %v12889_v44  ;;  %11843 = vmatprep.mubr.f32.mxu0 %v14890_v38 }
0x12b1   :  { %12894 = vmatprep.subr.bf16.mxu0 %v14826_v7 }
0x12b3   :  { %11844 = vmatmul.mubr.f32.vlgmr.msra.gmra.mrb[12].mxu0 %v14926_v33 }
0x12b4   :  { %12896 = vmatpush3.bf16.msra.mxu0 %v14826_v7  ;;  %11846 = vmatprep.mubr.f32.mxu0 %v14928_v46  ;;  %v4764_v7 = vld [vmem:[%s15384_s1 + $0x160] sm:$0xff] }
0x12b5   :  { %12898 = vmatprep.subr.bf16.mxu0 %v14853_v49 }
0x12b7   :  { %11847 = vmatmul.mubr.f32.gmra.mrb[14].mxu0 %v14935_v62 }
0x12b8   :  { %12900 = vmatpush3.bf16.msra.mxu0 %v14853_v49  ;;  %11849 = vmatprep.mubr.f32.mxu0 %v14940_v2  ;;  %v7249_v49 = vand.u32 4294901760, %v4764_v7 }
0x12b9   :  { %12902 = vmatprep.subr.bf16.mxu0 %v14861_v31 }
0x12ba   :  { %v15105_v54 = vpack.c.bf16 %v7252_v43, %v7249_v49 }
0x12bb   :  { %11850 = vmatmul.mubr.f32.gmra.mrb[16].mxu0 %v14947_v16 }
0x12bc   :  { %12904 = vmatpush3.bf16.msra.mxu0 %v14861_v31  ;;  %11852 = vmatprep.mubr.f32.mxu0 %v15005_v14 }
0x12bd   :  { %12906 = vmatprep.subr.bf16.mxu0 %v14959_v34 }
0x12bf   :  { %11853 = vmatmul.mubr.f32.gmra.mrb[18].mxu0 %v14971_v18 }
0x12c0   :  { %12908 = vmatpush3.bf16.msra.mxu0 %v14959_v34  ;;  %11871 = vmatprep.mubr.f32.mxu0 %v14890_v38  ;;  %v7339_v38 = vsub.f32 %v4764_v7, %v7249_v49  ;;  %v7349_v34 = vand.u32 4294901760, %v7348_v36  ;;  %v10008_v49 = vld [vmem:[%s15384_s1 + $0x180] ss:$0 sm:$0xff]  ;;  %v4773_v36 = vld [vmem:[%s15384_s1 + $0x1a8] sm:$0xff] }
0x12c1   :  { %12910 = vmatprep.subr.bf16.mxu0 %v15105_v54 }
0x12c2   :  { %v12925_v45 = vpack.c.bf16 %v7346_v6, %v7339_v38 }
0x12c3   :  { %11872 = vmatmul.mubr.f32.vlgmr.msra.gmra.mrb[12].mxu0 %v14926_v33  ;;  %v4767_v33 = vld [vmem:[%s15384_s1 + $0x178] sm:$0xff] }
0x12c4   :  { %11874 = vmatprep.mubr.f32.mxu0 %v14928_v46  ;;  %12912 = vmatpush3.bf16.msra.mxu0 %v15105_v54  ;;  %v7255_v46 = vand.u32 4294901760, %v4766_v24  ;;  %v7258_v51 = vand.u32 4294901760, %v4767_v33 }
0x12c6   :  { %v15118_v59 = vpack.c.bf16 %v7258_v51, %v7255_v46  ;;  %v7353_v28 = vsub.f32 %v4766_v24, %v7255_v46  ;;  %v7360_v56 = vsub.f32 %v4767_v33, %v7258_v51 }
0x12c7   :  { %11875 = vmatmul.mubr.f32.gmra.mrb[14].mxu0 %v14935_v62  ;;  %v7340_v62 = vand.u32 4294901760, %v7339_v38 }
0x12c8   :  { %11877 = vmatprep.mubr.f32.mxu0 %v14940_v2  ;;  %12914 = vmatprep.subr.bf16.mxu0 %v15118_v59  ;;  %v7354_v10 = vand.u32 4294901760, %v7353_v28  ;;  %v7361_v35 = vand.u32 4294901760, %v7360_v56  ;;  %v12929_v9 = vpack.c.bf16 %v7360_v56, %v7353_v28 }
0x12c9   :  { %12916 = vmatpush3.bf16.msra.mxu0 %v15118_v59  ;;  %v12941_v3 = vpack.c.bf16 %v7347_v48, %v7340_v62 }
0x12ca   :  { %v7362_v11 = vsub.f32 %v7360_v56, %v7361_v35  ;;  %v12945_v57 = vpack.c.bf16 %v7361_v35, %v7354_v10 }
0x12cb   :  { %11878 = vmatmul.mubr.f32.gmra.mrb[16].mxu0 %v14947_v16  ;;  %v7341_v16 = vsub.f32 %v7339_v38, %v7340_v62 }
0x12cc   :  { %11880 = vmatprep.mubr.f32.mxu0 %v15005_v14  ;;  %v7363_v5 = vand.u32 4294901760, %v7362_v11 }
0x12cd   :  { %v7342_v22 = vand.u32 4294901760, %v7341_v16  ;;  %v4772_v16 = vld [vmem:[%s15384_s1 + $0x1a0] sm:$0xff] }
0x12ce   :  { %v7830_v56 = vand.u32 4294901760, %v4772_v16 }
0x12cf   :  { %11881 = vmatmul.mubr.f32.gmra.mrb[18].mxu0 %v14971_v18  ;;  %v12917_v37 = vpack.c.bf16 %v7349_v34, %v7342_v22  ;;  %v7355_v18 = vsub.f32 %v7353_v28, %v7354_v10  ;;  %v4774_v22 = vld [vmem:[%s15384_s1 + $0x1b0] sm:$0xff]  ;;  %v7833_v34 = vand.u32 4294901760, %v4773_v36 }
0x12d0   :  { %v7836_v10 = vand.u32 4294901760, %v4774_v22 }
0x12d1   :  { %12918 = vmatprep.subr.bf16.mxu0 %v12917_v37  ;;  %v7356_v8 = vand.u32 4294901760, %v7355_v18 }
0x12d2   :  { %v15164_v35 = vpack.c.bf16 %v7836_v10, %v7833_v34 }
0x12d3   :  { %v12921_v55 = vpack.c.bf16 %v7363_v5, %v7356_v8 }
0x1396   :  { %v11873_v31 = vpop.f32.mrb[12].mxu0 }
0x1397   :  { %v7162_v47 = vpop.f32.mrb[13].mxu0 }
0x139a   :  { %v11876_v21 = vpop.f32.mrb[14].mxu0 }
0x139b   :  { %7212 = vrot.lane.b32.xlu1 %v11876_v21, %s13590_s20  ;;  %v7174_v60 = vpop.f32.mrb[15].mxu0 }
0x139c   :  { %7210 = vrot.lane.b32.xlu0 %v7174_v60, %s13590_s20 }
0x139e   :  { %v11879_v2 = vpop.f32.mrb[16].mxu0 }
0x139f   :  { %7220 = vrot.lane.b32.xlu1 %v11879_v2, %s13591_s26  ;;  %v7186_v23 = vpop.f32.mrb[17].mxu0 }
0x13a0   :  { %7218 = vrot.lane.b32.xlu0 %v7186_v23, %s13591_s26 }
0x13a2   :  { %v11882_v26 = vpop.f32.mrb[18].mxu0 }
0x13a3   :  { %7228 = vrot.lane.b32.xlu1 %v11882_v26, %s13592_s27  ;;  %v7198_v12 = vpop.f32.mrb[19].mxu0 }
0x13a4   :  { %7226 = vrot.lane.b32.xlu0 %v7198_v12, %s13592_s27 }
0x140d   :  { %v7213_v61 = vpop.permute.xlu1 %7212 }
0x140e   :  { %v7211_v30 = vpop.permute.xlu0 %7210  ;;  %v7233_v17 = vsel %vm1124_vm3, %v11873_v31, %v7213_v61 }
0x140f   :  { %v7232_v41 = vsel %vm1124_vm3, %v7162_v47, %v7211_v30 }
0x1411   :  { %v7221_v53 = vpop.permute.xlu1 %7220 }
0x1412   :  { %v7219_v32 = vpop.permute.xlu0 %7218  ;;  %v7235_v13 = vsel %vm3004_vm5, %v7233_v17, %v7221_v53 }
0x1413   :  { %v7234_v39 = vsel %vm3004_vm5, %v7232_v41, %v7219_v32 }
0x1415   :  { %v7229_v14 = vpop.permute.xlu1 %7228 }
0x1416   :  { %v7237_v42 = vsel %vm3007_vm6, %v7235_v13, %v7229_v14  ;;  %v7227_v1 = vpop.permute.xlu0 %7226 }
0x1417   :  { %v7246_v20 = vsel %vm559_vm2, %v7237_v42, 0  ;;  %v7236_v50 = vsel %vm3007_vm6, %v7234_v39, %v7227_v1 }
0x1418   :  { %v7327_v52 = vand.u32 4294901760, %v7246_v20  ;;  %v7243_v0 = vsel %vm559_vm2, %v7236_v50, 0 }
0x1419   :  { %v7317_v25 = vand.u32 4294901760, %v7243_v0 }
0x141a   :  { %v7328_v29 = vsub.f32 %v7246_v20, %v7327_v52 }
0x141b   :  { %v7318_v4 = vsub.f32 %v7243_v0, %v7317_v25 }
0x141c   :  { %v7329_v40 = vand.u32 4294901760, %v7328_v29 }
0x141d   :  { %v7319_v19 = vand.u32 4294901760, %v7318_v4 }
0x141e   :  { %v7330_v63 = vsub.f32 %v7328_v29, %v7329_v40 }
0x141f   :  { %v7320_v44 = vsub.f32 %v7318_v4, %v7319_v19 }
0x1420   :  { %v7331_v27 = vand.u32 4294901760, %v7330_v63  ;;  %v10010_v63 = vld [vmem:[%s15384_s1 + $0x190] ss:$0 sm:$0xff] }
0x1421   :  { %v7321_v7 = vand.u32 4294901760, %v7320_v44 }
0x1423   :  { %11891 = vmatprep.mubr.f32.mxu0 %v7321_v7 }
0x1424   :  { %11892 = vmatmul.mubr.f32.vlgmr.msra.gmra.mrb[20].mxu0 %v7331_v27 }
0x1425   :  { %12920 = vmatpush3.bf16.msra.mxu0 %v12917_v37  ;;  %11902 = vmatprep.mubr.f32.mxu0 %v7317_v25  ;;  %v7924_v37 = vsub.f32 %v4772_v16, %v7830_v56  ;;  %v4778_v16 = vld [vmem:[%s15384_s1 + $0x1d0] sm:$0xff] }
0x1426   :  { %12922 = vmatprep.subr.bf16.mxu0 %v12921_v55 }
0x1427   :  { %v7925_v11 = vand.u32 4294901760, %v7924_v37 }
0x1429   :  { %12924 = vmatpush3.bf16.msra.mxu0 %v12921_v55  ;;  %v7926_v5 = vsub.f32 %v7924_v37, %v7925_v11  ;;  %v7931_v55 = vsub.f32 %v4773_v36, %v7833_v34  ;;  %v4779_v36 = vld [vmem:[%s15384_s1 + $0x1d8] sm:$0xff]  ;;  %v4780_v34 = vld [vmem:[%s15384_s1 + $0x1e0] sm:$0xff] }
0x142a   :  { %12926 = vmatprep.subr.bf16.mxu0 %v12925_v45 }
0x142c   :  { %11903 = vmatmul.mubr.f32.vlgmr.msra.gmra.mrb[20].mxu0 %v7327_v52 }
0x142d   :  { %12928 = vmatpush3.bf16.msra.mxu0 %v12925_v45  ;;  %11913 = vmatprep.mubr.f32.mxu0 %v7318_v4  ;;  %v7938_v45 = vsub.f32 %v4774_v22, %v7836_v10  ;;  %v4781_v10 = vld [vmem:[%s15384_s1 + $0x1e8] sm:$0xff] }
0x142e   :  { %12930 = vmatprep.subr.bf16.mxu0 %v12929_v9 }
0x142f   :  { %v7939_v61 = vand.u32 4294901760, %v7938_v45  ;;  %v12977_v39 = vpack.c.bf16 %v7938_v45, %v7931_v55 }
0x1431   :  { %12932 = vmatpush3.bf16.msra.mxu0 %v12929_v9  ;;  %v7940_v32 = vsub.f32 %v7938_v45, %v7939_v61 }
0x1432   :  { %12934 = vmatprep.subr.bf16.mxu0 %v15105_v54 }
0x1433   :  { %v7941_v41 = vand.u32 4294901760, %v7940_v32 }
0x1434   :  { %11914 = vmatmul.mubr.f32.vlgmr.msra.gmra.mrb[20].mxu0 %v7328_v29 }
0x1435   :  { %12936 = vmatpush3.bf16.msra.mxu0 %v15105_v54  ;;  %11924 = vmatprep.mubr.f32.mxu0 %v7319_v19 }
0x1436   :  { %12938 = vmatprep.subr.bf16.mxu0 %v15118_v59 }
0x1439   :  { %12940 = vmatpush3.bf16.msra.mxu0 %v15118_v59 }
0x143a   :  { %12942 = vmatprep.subr.bf16.mxu0 %v12941_v3 }
0x143c   :  { %11925 = vmatmul.mubr.f32.vlgmr.msra.gmra.mrb[20].mxu0 %v7329_v40  ;;  %v10009_v40 = vld [vmem:[%s15384_s1 + $0x188] ss:$0 sm:$0xff] }
0x143d   :  { %12944 = vmatpush3.bf16.msra.mxu0 %v12941_v3  ;;  %11935 = vmatprep.mubr.f32.mxu0 %v7317_v25  ;;  %v7927_v3 = vand.u32 4294901760, %v7926_v5 }
0x143e   :  { %12946 = vmatprep.subr.bf16.mxu0 %v12945_v57 }
0x1441   :  { %12948 = vmatpush3.bf16.msra.mxu0 %v12945_v57  ;;  %v7932_v57 = vand.u32 4294901760, %v7931_v55 }
0x1442   :  { %12950 = vmatprep.subr.bf16.mxu0 %v15105_v54 }
0x1443   :  { %v7933_v53 = vsub.f32 %v7931_v55, %v7932_v57  ;;  %v12993_v1 = vpack.c.bf16 %v7939_v61, %v7932_v57 }
0x1444   :  { %11936 = vmatmul.mubr.f32.vlgmr.msra.gmra.mrb[20].mxu0 %v7327_v52 }
0x1445   :  { %12952 = vmatpush3.bf16.msra.mxu0 %v15105_v54  ;;  %11946 = vmatprep.mubr.f32.mxu0 %v7317_v25  ;;  %v7934_v17 = vand.u32 4294901760, %v7933_v53 }
0x1446   :  { %12954 = vmatprep.subr.bf16.mxu0 %v15118_v59 }
0x1447   :  { %v12969_v13 = vpack.c.bf16 %v7941_v41, %v7934_v17 }
0x1449   :  { %12956 = vmatpush3.bf16.msra.mxu0 %v15118_v59 }
0x144c   :  { %11947 = vmatmul.mubr.f32.vlgmr.msra.gmra.mrb[20].mxu0 %v7327_v52 }
0x151f   :  { %v11948_v43 = vpop.f32.mrb[20].mxu0 }
0x1520   :  { %v13183_v31 = vadd.f32 %v11948_v43, %v10008_v49  ;;  %v7766_v47 = vpop.f32.mrb[21].mxu0 }
0x1521   :  { %v13184_v21 = vadd.f32 %v10008_v49, %v7766_v47 }
0x1522   :  { %v7777_v60 = vadd.f32 %v13183_v31, %v14472_v15 }
0x1523   :  { %v7776_v38 = vadd.f32 %v13184_v21, %v14474_v58  ;;  %v4771_v58 = vld [vmem:[%s15384_s1 + $0x198] sm:$0xff] }
0x1524   :  { %v7781_v54 = vsel %vm559_vm2, %v7777_v60, 0.0  ;;  %v7827_v28 = vand.u32 4294901760, %v4771_v58 }
0x1525   :  { %7782 = vadd.xlane.f32.xlu1 %v7781_v54  ;;  %v7778_v6 = vsel %vm559_vm2, %v7776_v38, 0.0 }
0x1526   :  { %7779 = vadd.xlane.f32.xlu0 %v7778_v6  ;;  %v15162_v26 = vpack.c.bf16 %v7830_v56, %v7827_v28  ;;  %v7917_v12 = vsub.f32 %v4771_v58, %v7827_v28  ;;  %v8373_v28 = vand.u32 4294901760, %v4778_v16  ;;  %v8376_v56 = vand.u32 4294901760, %v4779_v36 }
0x1528   :  { %12958 = vmatprep.subr.bf16.mxu0 %v15162_v26  ;;  %v7918_v18 = vand.u32 4294901760, %v7917_v12  ;;  %v12973_v14 = vpack.c.bf16 %v7924_v37, %v7917_v12  ;;  %v15208_v22 = vpack.c.bf16 %v8376_v56, %v8373_v28  ;;  %v8482_v53 = vsub.f32 %v4779_v36, %v8376_v56 }
0x1529   :  { %12960 = vmatpush3.bf16.msra.mxu0 %v15162_v26 }
0x152a   :  { %12962 = vmatprep.subr.bf16.mxu0 %v15164_v35  ;;  %v7919_v8 = vsub.f32 %v7917_v12, %v7918_v18  ;;  %v12989_v42 = vpack.c.bf16 %v7925_v11, %v7918_v18  ;;  %v4782_v11 = vld [vmem:[%s15384_s1 + $0x1f0] sm:$0xff] }
0x152b   :  { %v8385_v5 = vand.u32 4294901760, %v4782_v11 }
0x152c   :  { %v7920_v9 = vand.u32 4294901760, %v7919_v8  ;;  %v4783_v8 = vld [vmem:[%s15384_s1 + $0x1f8] sm:$0xff] }
0x152d   :  { %12964 = vmatpush3.bf16.msra.mxu0 %v15164_v35  ;;  %v8388_v55 = vand.u32 4294901760, %v4783_v8 }
0x152e   :  { %v12965_v30 = vpack.c.bf16 %v7927_v3, %v7920_v9 }
0x152f   :  { %v15228_v3 = vpack.c.bf16 %v8388_v55, %v8385_v5 }
0x1530   :  { %12966 = vmatprep.subr.bf16.mxu0 %v12965_v30 }
0x15b2   :  { %v7783_v24 = vpop.xlane.xlu1 %7782 }
0x15b3   :  { %v7785_v33 = vmul.f32 0.03125, %v7783_v24  ;;  %v7780_v46 = vpop.xlane.xlu0 %7779 }
0x15b4   :  { %v7784_v51 = vmul.f32 0.03125, %v7780_v46 }
0x15b5   :  { %v7787_v62 = vsub.f32 %v7777_v60, %v7785_v33 }
0x15b6   :  { %v7786_v48 = vsub.f32 %v7776_v38, %v7784_v51 }
0x15b7   :  { %v7789_v59 = vmul.f32 %v7787_v62, %v7787_v62 }
0x15b8   :  { %v7788_v2 = vmul.f32 %v7786_v48, %v7786_v48 }
0x15b9   :  { %v7793_v15 = vsel %vm559_vm2, %v7789_v59, 0.0 }
0x15ba   :  { %v7790_v23 = vsel %vm559_vm2, %v7788_v2, 0.0  ;;  %v4776_v2 = vld [vmem:[%s15384_s1 + $0x1c0] sm:$0xff] }
0x15bb   :  { %7791 = vadd.xlane.f32.xlu0 %v7790_v23  ;;  %v4777_v23 = vld [vmem:[%s15384_s1 + $0x1c8] sm:$0xff]  ;;  %v8367_v59 = vand.u32 4294901760, %v4776_v2 }
0x15bd   :  { %v8461_v37 = vsub.f32 %v4776_v2, %v8367_v59 }
0x15bf   :  { %7794 = vadd.xlane.f32.xlu0 %v7793_v15  ;;  %v8370_v15 = vand.u32 4294901760, %v4777_v23  ;;  %v8462_v45 = vand.u32 4294901760, %v8461_v37 }
0x15c1   :  { %v15198_v58 = vpack.c.bf16 %v8370_v15, %v8367_v59  ;;  %v8468_v18 = vsub.f32 %v4777_v23, %v8370_v15  ;;  %v8463_v57 = vsub.f32 %v8461_v37, %v8462_v45  ;;  %v10011_v59 = vld [vmem:[%s15384_s1 + $0x1b8] ss:$0 sm:$0xff] }
0x15c3   :  { %13006 = vmatprep.subr.bf16.mxu1 %v15198_v58  ;;  %v8469_v9 = vand.u32 4294901760, %v8468_v18  ;;  %v8464_v32 = vand.u32 4294901760, %v8463_v57 }
0x15c4   :  { %13008 = vmatpush3.bf16.msra.mxu1 %v15198_v58 }
0x15c5   :  { %13010 = vmatprep.subr.bf16.mxu1 %v15208_v22  ;;  %v8470_v61 = vsub.f32 %v8468_v18, %v8469_v9 }
0x15c7   :  { %v8471_v17 = vand.u32 4294901760, %v8470_v61  ;;  %v10012_v61 = vld [vmem:[%s15384_s1 + $0x200] ss:$0 sm:$0xff] }
0x15c8   :  { %13012 = vmatpush3.bf16.msra.mxu1 %v15208_v22 }
0x1648   :  { %v7792_v20 = vpop.xlane.xlu0 %7791 }
0x1649   :  { %v7796_v50 = vmul.f32 0.03125, %v7792_v20 }
0x164b   :  { %v7798_v52 = vadd.f32 1e-05, %v7796_v50 }
0x164c   :  { %v7795_v0 = vpop.xlane.xlu0 %7794 }
0x164d   :  { %13545 = vrsqrt.f32 %v7798_v52  ;;  %v7797_v25 = vmul.f32 0.03125, %v7795_v0 }
0x164f   :  { %v7799_v29 = vadd.f32 1e-05, %v7797_v25 }
0x1651   :  { %13547 = vrsqrt.f32 %v7799_v29 }
0x1657   :  { %v13546_v4 = vpop.eup %13545 }
0x1658   :  { %v7802_v19 = vmul.f32 %v13546_v4, %v7786_v48 }
0x165a   :  { %v7808_v44 = vmul.f32 %v10009_v40, %v7802_v19  ;;  %v8510_v19 = vsub.f32 %v4783_v8, %v8388_v55 }
0x165b   :  { %v13548_v7 = vpop.eup %13547 }
0x165c   :  { %v7803_v27 = vmul.f32 %v13548_v7, %v7787_v62  ;;  %v15176_v49 = vadd.f32 %v10010_v63, %v7808_v44 }
0x165e   :  { %v7809_v43 = vmul.f32 %v10009_v40, %v7803_v27  ;;  %v7821_v31 = vsel %vm559_vm2, %v15176_v49, 0  ;;  %v8503_v40 = vsub.f32 %v4782_v11, %v8385_v5 }
0x165f   :  { %v7895_v47 = vand.u32 4294901760, %v7821_v31 }
0x1660   :  { %v15180_v21 = vadd.f32 %v10010_v63, %v7809_v43  ;;  %v8504_v27 = vand.u32 4294901760, %v8503_v40  ;;  %v8511_v43 = vand.u32 4294901760, %v8510_v19 }
0x1661   :  { %v7896_v60 = vsub.f32 %v7821_v31, %v7895_v47 }
0x1662   :  { %v7824_v38 = vsel %vm559_vm2, %v15180_v21, 0  ;;  %v13081_v23 = vpack.c.bf16 %v8511_v43, %v8504_v27 }
0x1663   :  { %v7897_v54 = vand.u32 4294901760, %v7896_v60  ;;  %v7905_v6 = vand.u32 4294901760, %v7824_v38 }
0x1665   :  { %v7898_v24 = vsub.f32 %v7896_v60, %v7897_v54  ;;  %v7906_v33 = vsub.f32 %v7824_v38, %v7905_v6 }
0x1667   :  { %v7899_v46 = vand.u32 4294901760, %v7898_v24  ;;  %v7907_v51 = vand.u32 4294901760, %v7906_v33  ;;  %v13037_v24 = vpack.c.bf16 %v8468_v18, %v8461_v37 }
0x1669   :  { %11957 = vmatprep.mubr.f32.mxu0 %v7899_v46  ;;  %v7908_v62 = vsub.f32 %v7906_v33, %v7907_v51 }
0x166b   :  { %v7909_v48 = vand.u32 4294901760, %v7908_v62  ;;  %v13069_v62 = vpack.c.bf16 %v8469_v9, %v8462_v45 }
0x166d   :  { %11958 = vmatmul.mubr.f32.vlgmr.msra.gmra.mrb[22].mxu0 %v7909_v48 }
0x166e   :  { %12968 = vmatpush3.bf16.msra.mxu0 %v12965_v30  ;;  %11968 = vmatprep.mubr.f32.mxu0 %v7895_v47  ;;  %v8475_v30 = vsub.f32 %v4778_v16, %v8373_v28 }
0x166f   :  { %12970 = vmatprep.subr.bf16.mxu0 %v12969_v13 }
0x1670   :  { %v8476_v41 = vand.u32 4294901760, %v8475_v30 }
0x1672   :  { %12972 = vmatpush3.bf16.msra.mxu0 %v12969_v13  ;;  %v8483_v13 = vand.u32 4294901760, %v8482_v53 }
0x1673   :  { %12974 = vmatprep.subr.bf16.mxu0 %v12973_v14 }
0x1674   :  { %v8484_v20 = vsub.f32 %v8482_v53, %v8483_v13  ;;  %v13073_v48 = vpack.c.bf16 %v8483_v13, %v8476_v41 }
0x1675   :  { %11969 = vmatmul.mubr.f32.vlgmr.msra.gmra.mrb[22].mxu0 %v7905_v6 }
0x1676   :  { %12976 = vmatpush3.bf16.msra.mxu0 %v12973_v14  ;;  %11979 = vmatprep.mubr.f32.mxu0 %v7896_v60  ;;  %v13021_v14 = vpack.c.bf16 %v8471_v17, %v8464_v32  ;;  %v8485_v25 = vand.u32 4294901760, %v8484_v20  ;;  %v8512_v60 = vsub.f32 %v8510_v19, %v8511_v43 }
0x1677   :  { %12978 = vmatprep.subr.bf16.mxu0 %v12977_v39 }
0x167a   :  { %12980 = vmatpush3.bf16.msra.mxu0 %v12977_v39  ;;  %v8477_v39 = vsub.f32 %v8475_v30, %v8476_v41 }
0x167b   :  { %12982 = vmatprep.subr.bf16.mxu0 %v15162_v26 }
0x167c   :  { %v8478_v50 = vand.u32 4294901760, %v8477_v39 }
0x167d   :  { %11980 = vmatmul.mubr.f32.vlgmr.msra.gmra.mrb[22].mxu0 %v7906_v33  ;;  %v13041_v33 = vpack.c.bf16 %v8482_v53, %v8475_v30 }
0x167e   :  { %12984 = vmatpush3.bf16.msra.mxu0 %v15162_v26  ;;  %11990 = vmatprep.mubr.f32.mxu0 %v7897_v54  ;;  %v13025_v63 = vpack.c.bf16 %v8485_v25, %v8478_v50  ;;  %v8513_v54 = vand.u32 4294901760, %v8512_v60  ;;  %v9007_v25 = vld [vmem:[%s15384_s1 + $0x228] sm:$0xff] }
0x167f   :  { %12986 = vmatprep.subr.bf16.mxu0 %v15164_v35 }
0x1682   :  { %12988 = vmatpush3.bf16.msra.mxu0 %v15164_v35 }
0x1683   :  { %12990 = vmatprep.subr.bf16.mxu0 %v12989_v42 }
0x1685   :  { %11991 = vmatmul.mubr.f32.vlgmr.msra.gmra.mrb[22].mxu0 %v7907_v51  ;;  %v13049_v51 = vpack.c.bf16 %v8510_v19, %v8503_v40  ;;  %v9008_v19 = vld [vmem:[%s15384_s1 + $0x230] sm:$0xff] }
0x1686   :  { %12992 = vmatpush3.bf16.msra.mxu0 %v12989_v42  ;;  %12001 = vmatprep.mubr.f32.mxu0 %v7895_v47 }
0x1687   :  { %12994 = vmatprep.subr.bf16.mxu0 %v12993_v1 }
0x168a   :  { %12996 = vmatpush3.bf16.msra.mxu0 %v12993_v1 }
0x168b   :  { %12998 = vmatprep.subr.bf16.mxu0 %v15162_v26 }
0x168d   :  { %12002 = vmatmul.mubr.f32.vlgmr.msra.gmra.mrb[22].mxu0 %v7905_v6 }
0x168e   :  { %13000 = vmatpush3.bf16.msra.mxu0 %v15162_v26  ;;  %12012 = vmatprep.mubr.f32.mxu0 %v7895_v47  ;;  %v8379_v26 = vand.u32 4294901760, %v4780_v34  ;;  %v8505_v47 = vsub.f32 %v8503_v40, %v8504_v27 }
0x168f   :  { %13002 = vmatprep.subr.bf16.mxu0 %v15164_v35 }
0x1690   :  { %v8489_v42 = vsub.f32 %v4780_v34, %v8379_v26  ;;  %v8506_v38 = vand.u32 4294901760, %v8505_v47 }
0x1692   :  { %13004 = vmatpush3.bf16.msra.mxu0 %v15164_v35  ;;  %v8382_v35 = vand.u32 4294901760, %v4781_v10  ;;  %v8490_v52 = vand.u32 4294901760, %v8489_v42 }
0x1694   :  { %v15218_v12 = vpack.c.bf16 %v8382_v35, %v8379_v26  ;;  %v8496_v1 = vsub.f32 %v4781_v10, %v8382_v35  ;;  %v8491_v29 = vsub.f32 %v8489_v42, %v8490_v52 }
0x1695   :  { %12013 = vmatmul.mubr.f32.vlgmr.msra.gmra.mrb[22].mxu0 %v7905_v6  ;;  %v13033_v6 = vpack.c.bf16 %v8513_v54, %v8506_v38 }
0x1696   :  { %13014 = vmatprep.subr.bf16.mxu1 %v15218_v12  ;;  %v8497_v0 = vand.u32 4294901760, %v8496_v1  ;;  %v8492_v44 = vand.u32 4294901760, %v8491_v29  ;;  %v13045_v46 = vpack.c.bf16 %v8496_v1, %v8489_v42  ;;  %v13593_v29 = vmov 0.0|0.0  }
0x1697   :  { %13016 = vmatpush3.bf16.msra.mxu1 %v15218_v12  ;;  %13101 = vmatprep.subr.bf16.mxu0 %v13593_v29 }
0x1698   :  { %13018 = vmatprep.subr.bf16.mxu1 %v15228_v3  ;;  %v8498_v4 = vsub.f32 %v8496_v1, %v8497_v0  ;;  %v13077_v2 = vpack.c.bf16 %v8497_v0, %v8490_v52  ;;  %v9006_v0 = vld [vmem:[%s15384_s1 + $0x220] sm:$0xff] }
0x1699   :  { %v9024_v40 = vand.u32 4294901760, %v9006_v0 }
0x169a   :  { %v8499_v7 = vand.u32 4294901760, %v8498_v4 }
0x169b   :  { %13020 = vmatpush3.bf16.msra.mxu1 %v15228_v3 }
0x169c   :  { %13022 = vmatprep.subr.bf16.mxu1 %v13021_v14  ;;  %v13029_v31 = vpack.c.bf16 %v8499_v7, %v8492_v44  ;;  %v13595_v44 = vmov 0.0   ;;  %v9030_v7 = vand.u32 4294901760, %v9008_v19 }
0x169d   :  { %12137 = vmatprep.mubr.msk.f32.mxu0 %vm13594_vm7, %v13595_v44 }
0x169e   :  { %v15285_v60 = vsub.f32 %v9008_v19, %v9030_v7 }
0x1768   :  { %v12014_v15 = vpop.f32.mrb[22].mxu0 }
0x1769   :  { %v13185_v16 = vadd.f32 %v12014_v15, %v10011_v59  ;;  %v8344_v36 = vpop.f32.mrb[23].mxu0 }
0x176a   :  { %v13186_v28 = vadd.f32 %v10011_v59, %v8344_v36 }
0x176b   :  { %v8355_v56 = vmax.f32 %v13185_v16, 0.0 }
0x176c   :  { %v8354_v34 = vmax.f32 %v13186_v28, 0.0 }
0x176d   :  { %v8364_v10 = vsel %vm1995_vm4, %v8355_v56, 0 }
0x176e   :  { %v8449_v26 = vand.u32 4294901760, %v8364_v10  ;;  %v8361_v35 = vsel %vm1995_vm4, %v8354_v34, 0 }
0x176f   :  { %v8439_v37 = vand.u32 4294901760, %v8361_v35 }
0x1770   :  { %v8450_v18 = vsub.f32 %v8364_v10, %v8449_v26 }
0x1771   :  { %v8440_v11 = vsub.f32 %v8361_v35, %v8439_v37 }
0x1772   :  { %v8451_v8 = vand.u32 4294901760, %v8450_v18 }
0x1773   :  { %v8441_v5 = vand.u32 4294901760, %v8440_v11 }
0x1774   :  { %v8452_v55 = vsub.f32 %v8450_v18, %v8451_v8 }
0x1775   :  { %v8442_v45 = vsub.f32 %v8440_v11, %v8441_v5 }
0x1776   :  { %v8453_v57 = vand.u32 4294901760, %v8452_v55  ;;  %v10013_v55 = vld [vmem:[%s15384_s1 + $0x208] ss:$0 sm:$0xff] }
0x1777   :  { %v8443_v9 = vand.u32 4294901760, %v8442_v45 }
0x1779   :  { %12031 = vmatprep.mubr.f32.mxu1 %v8443_v9 }
0x177a   :  { %12032 = vmatmul.mubr.f32.vlgmr.msra.gmra.mrb[24].mxu1 %v8453_v57  ;;  %v10014_v57 = vld [vmem:[%s15384_s1 + $0x210] ss:$0 sm:$0xff] }
0x177b   :  { %13024 = vmatpush3.bf16.msra.mxu1 %v13021_v14  ;;  %12050 = vmatprep.mubr.f32.mxu1 %v8439_v37 }
0x177c   :  { %13026 = vmatprep.subr.bf16.mxu1 %v13025_v63 }
0x177f   :  { %13028 = vmatpush3.bf16.msra.mxu1 %v13025_v63  ;;  %v9027_v63 = vand.u32 4294901760, %v9007_v25 }
0x1780   :  { %13030 = vmatprep.subr.bf16.mxu1 %v13029_v31 }
0x1781   :  { %v15283_v47 = vsub.f32 %v9007_v25, %v9027_v63  ;;  %v15288_v38 = vpack.c.bf16 %v9030_v7, %v9027_v63 }
0x1783   :  { %13032 = vmatpush3.bf16.msra.mxu1 %v13029_v31  ;;  %v15281_v31 = vsub.f32 %v9006_v0, %v9024_v40  ;;  %v13117_v56 = vpack.c.bf16 %v15285_v60, %v15283_v47 }
0x1784   :  { %13034 = vmatprep.subr.bf16.mxu1 %v13033_v6 }
0x1787   :  { %13036 = vmatpush3.bf16.msra.mxu1 %v13033_v6  ;;  %v9109_v6 = vand.u32 4294901760, %v15281_v31 }
0x1788   :  { %13038 = vmatprep.subr.bf16.mxu1 %v13037_v24 }
0x178a   :  { %12051 = vmatmul.mubr.f32.vlgmr.msra.gmra.mrb[24].mxu1 %v8449_v26 }
0x178b   :  { %13040 = vmatpush3.bf16.msra.mxu1 %v13037_v24  ;;  %12069 = vmatprep.mubr.f32.mxu1 %v8440_v11 }
0x178c   :  { %13042 = vmatprep.subr.bf16.mxu1 %v13041_v33 }
0x178f   :  { %13044 = vmatpush3.bf16.msra.mxu1 %v13041_v33  ;;  %v9110_v33 = vsub.f32 %v15281_v31, %v9109_v6 }
0x1790   :  { %13046 = vmatprep.subr.bf16.mxu1 %v13045_v46 }
0x1793   :  { %13048 = vmatpush3.bf16.msra.mxu1 %v13045_v46 }
0x1794   :  { %13050 = vmatprep.subr.bf16.mxu1 %v13049_v51 }
0x1797   :  { %13052 = vmatpush3.bf16.msra.mxu1 %v13049_v51  ;;  %v9111_v51 = vand.u32 4294901760, %v9110_v33 }
0x1798   :  { %13054 = vmatprep.subr.bf16.mxu1 %v15198_v58 }
0x179a   :  { %12070 = vmatmul.mubr.f32.vlgmr.msra.gmra.mrb[24].mxu1 %v8450_v18 }
0x179b   :  { %13056 = vmatpush3.bf16.msra.mxu1 %v15198_v58  ;;  %12088 = vmatprep.mubr.f32.mxu1 %v8441_v5 }
0x179c   :  { %13058 = vmatprep.subr.bf16.mxu1 %v15208_v22 }
0x179f   :  { %13060 = vmatpush3.bf16.msra.mxu1 %v15208_v22 }
0x17a0   :  { %13062 = vmatprep.subr.bf16.mxu1 %v15218_v12 }
0x17a3   :  { %13064 = vmatpush3.bf16.msra.mxu1 %v15218_v12 }
0x17a4   :  { %13066 = vmatprep.subr.bf16.mxu1 %v15228_v3 }
0x17a7   :  { %13068 = vmatpush3.bf16.msra.mxu1 %v15228_v3 }
0x17a8   :  { %13070 = vmatprep.subr.bf16.mxu1 %v13069_v62 }
0x17aa   :  { %12089 = vmatmul.mubr.f32.vlgmr.msra.gmra.mrb[24].mxu1 %v8451_v8 }
0x17ab   :  { %13072 = vmatpush3.bf16.msra.mxu1 %v13069_v62  ;;  %12107 = vmatprep.mubr.f32.mxu1 %v8439_v37  ;;  %v9116_v62 = vand.u32 4294901760, %v15283_v47 }
0x17ac   :  { %13074 = vmatprep.subr.bf16.mxu1 %v13073_v48 }
0x17af   :  { %13076 = vmatpush3.bf16.msra.mxu1 %v13073_v48  ;;  %v9123_v48 = vand.u32 4294901760, %v15285_v60 }
0x17b0   :  { %13078 = vmatprep.subr.bf16.mxu1 %v13077_v2 }
0x17b1   :  { %v9124_v59 = vsub.f32 %v15285_v60, %v9123_v48  ;;  %v15305_v10 = vpack.c.bf16 %v9123_v48, %v9116_v62 }
0x17b3   :  { %13080 = vmatpush3.bf16.msra.mxu1 %v13077_v2  ;;  %v9125_v16 = vand.u32 4294901760, %v9124_v59 }
0x17b4   :  { %13082 = vmatprep.subr.bf16.mxu1 %v13081_v23 }
0x17b7   :  { %13084 = vmatpush3.bf16.msra.mxu1 %v13081_v23  ;;  %v9117_v23 = vsub.f32 %v15283_v47, %v9116_v62 }
0x17b8   :  { %13086 = vmatprep.subr.bf16.mxu1 %v15198_v58 }
0x17b9   :  { %v9118_v15 = vand.u32 4294901760, %v9117_v23 }
0x17ba   :  { %12108 = vmatmul.mubr.f32.vlgmr.msra.gmra.mrb[24].mxu1 %v8449_v26 }
0x17bb   :  { %13088 = vmatpush3.bf16.msra.mxu1 %v15198_v58  ;;  %12126 = vmatprep.mubr.f32.mxu1 %v8439_v37  ;;  %v13111_v36 = vpack.c.bf16 %v9125_v16, %v9118_v15  ;;  %v10015_v15 = vld [vmem:[%s15384_s1 + $0x238] ss:$0 sm:$0xff] }
0x17bc   :  { %13090 = vmatprep.subr.bf16.mxu1 %v15208_v22 }
0x17bf   :  { %13092 = vmatpush3.bf16.msra.mxu1 %v15208_v22 }
0x17c0   :  { %13094 = vmatprep.subr.bf16.mxu1 %v15218_v12 }
0x17c3   :  { %13096 = vmatpush3.bf16.msra.mxu1 %v15218_v12 }
0x17c4   :  { %13098 = vmatprep.subr.bf16.mxu1 %v15228_v3 }
0x17c7   :  { %13100 = vmatpush3.bf16.msra.mxu1 %v15228_v3 }
0x17ca   :  { %12127 = vmatmul.mubr.f32.vlgmr.msra.gmra.mrb[24].mxu1 %v8449_v26 }
0x189d   :  { %v12128_v30 = vpop.f32.mrb[24].mxu1 }
0x189e   :  { %v13187_v58 = vadd.f32 %v12128_v30, %v10012_v61  ;;  %v8936_v53 = vpop.f32.mrb[25].mxu1 }
0x189f   :  { %v13188_v32 = vadd.f32 %v10012_v61, %v8936_v53 }
0x18a0   :  { %v8947_v17 = vadd.f32 %v13187_v58, %v15180_v21 }
0x18a1   :  { %v8946_v22 = vadd.f32 %v13188_v32, %v15176_v49  ;;  %v9005_v49 = vld [vmem:[%s15384_s1 + $0x218] sm:$0xff] }
0x18a2   :  { %v8951_v41 = vsel %vm559_vm2, %v8947_v17, 0.0  ;;  %v9021_v4 = vand.u32 4294901760, %v9005_v49 }
0x18a3   :  { %8952 = vadd.xlane.f32.xlu0 %v8951_v41  ;;  %v8948_v12 = vsel %vm559_vm2, %v8946_v22, 0.0 }
0x18a4   :  { %8949 = vadd.xlane.f32.xlu1 %v8948_v12  ;;  %v15277_v27 = vpack.c.bf16 %v9024_v40, %v9021_v4  ;;  %v15279_v43 = vsub.f32 %v9005_v49, %v9021_v4 }
0x18a6   :  { %13103 = vmatpush3.bf16.msra.mxu0 %v15277_v27  ;;  %v9102_v54 = vand.u32 4294901760, %v15279_v43  ;;  %v13114_v28 = vpack.c.bf16 %v15281_v31, %v15279_v43  ;;  %v9010_v31 = vld [vmem:[%s15384_s1 + $0x240] sm:$0xff] }
0x18a7   :  { %13104 = vmatprep.subr.bf16.mxu0 %v13593_v29  ;;  %v9514_v47 = vand.u32 4294901760, %v9010_v31 }
0x18a8   :  { %v9103_v24 = vsub.f32 %v15279_v43, %v9102_v54  ;;  %v13126_v34 = vpack.c.bf16 %v9109_v6, %v9102_v54 }
0x18a9   :  { %v9592_v6 = vsub.f32 %v9010_v31, %v9514_v47 }
0x18aa   :  { %13106 = vmatpush3.bf16.msra.mxu0 %v15288_v38  ;;  %v9104_v46 = vand.u32 4294901760, %v9103_v24 }
0x18ab   :  { %13107 = vmatprep.subr.bf16.mxu0 %v13593_v29 }
0x18ac   :  { %v13108_v2 = vpack.c.bf16 %v9111_v51, %v9104_v46 }
0x1930   :  { %v8953_v3 = vpop.xlane.xlu0 %8952 }
0x1931   :  { %v8955_v13 = vmul.f32 0.03125, %v8953_v3  ;;  %v8950_v14 = vpop.xlane.xlu1 %8949 }
0x1932   :  { %v8954_v39 = vmul.f32 0.03125, %v8950_v14 }
0x1933   :  { %v8957_v42 = vsub.f32 %v8947_v17, %v8955_v13 }
0x1934   :  { %v8956_v1 = vsub.f32 %v8946_v22, %v8954_v39 }
0x1935   :  { %v8959_v20 = vmul.f32 %v8957_v42, %v8957_v42 }
0x1936   :  { %v8958_v50 = vmul.f32 %v8956_v1, %v8956_v1 }
0x1937   :  { %v8963_v52 = vsel %vm559_vm2, %v8959_v20, 0.0 }
0x1938   :  { %8964 = vadd.xlane.f32.xlu0 %v8963_v52  ;;  %v8960_v21 = vsel %vm559_vm2, %v8958_v50, 0.0 }
0x1939   :  { %8961 = vadd.xlane.f32.xlu1 %v8960_v21 }
0x19c5   :  { %v8965_v26 = vpop.xlane.xlu0 %8964 }
0x19c6   :  { %v8967_v35 = vmul.f32 0.03125, %v8965_v26  ;;  %v8962_v37 = vpop.xlane.xlu1 %8961 }
0x19c7   :  { %v8966_v18 = vmul.f32 0.03125, %v8962_v37 }
0x19c8   :  { %v8969_v11 = vadd.f32 1e-05, %v8967_v35 }
0x19c9   :  { %v8968_v8 = vadd.f32 1e-05, %v8966_v18 }
0x19ca   :  { %13549 = vrsqrt.f32 %v8969_v11  ;;  %v10016_v11 = vld [vmem:[%s15384_s1 + $0x250] ss:$0 sm:$0xff] }
0x19cb   :  { %13551 = vrsqrt.f32 %v8968_v8 }
0x19d4   :  { %v13550_v5 = vpop.eup %13549 }
0x19d5   :  { %v13552_v45 = vpop.eup %13551  ;;  %v8973_v9 = vmul.f32 %v13550_v5, %v8957_v42 }
0x19d6   :  { %v8972_v61 = vmul.f32 %v13552_v45, %v8956_v1 }
0x19d7   :  { %v8979_v30 = vmul.f32 %v10013_v55, %v8973_v9 }
0x19d8   :  { %v8978_v58 = vmul.f32 %v10013_v55, %v8972_v61 }
0x19d9   :  { %v8985_v53 = vadd.f32 %v10014_v57, %v8979_v30 }
0x19da   :  { %v8984_v32 = vadd.f32 %v10014_v57, %v8978_v58 }
0x19db   :  { %v8995_v17 = vsel %vm559_vm2, %v8985_v53, 0.0 }
0x19dc   :  { %v8996_v22 = vrot.slane %v8995_v17, 4  ;;  %v8986_v41 = vsel %vm559_vm2, %v8984_v32, 0.0 }
0x19dd   :  { %v8987_v12 = vrot.slane %v8986_v41, 4 }
0x19de   :  { %v8997_v3 = vadd.f32 %v8996_v22, %v8995_v17 }
0x19df   :  { %v8988_v13 = vadd.f32 %v8987_v12, %v8986_v41 }
0x19e0   :  { %v8998_v14 = vrot.slane %v8997_v3, 2 }
0x19e1   :  { %v8989_v39 = vrot.slane %v8988_v13, 2 }
0x19e2   :  { %v8999_v42 = vadd.f32 %v8998_v14, %v8997_v3 }
0x19e3   :  { %v8990_v20 = vadd.f32 %v8989_v39, %v8988_v13 }
0x19e4   :  { %v9000_v50 = vrot.slane %v8999_v42, 1 }
0x19e5   :  { %v8991_v52 = vrot.slane %v8990_v20, 1 }
0x19e6   :  { %v9001_v21 = vadd.f32 %v9000_v50, %v8999_v42 }
0x19e7   :  { %v8992_v1 = vadd.f32 %v8991_v52, %v8990_v20 }
0x19e8   :  { %v9002_v49 = vmul.f32 0.125, %v9001_v21 }
0x19e9   :  { %v8994_v0 = vmul.f32 0.125, %v8992_v1 }
0x19eb   :  { %v9004_v25 = vsel %vm9003_vm8, %v8994_v0, %v9002_v49 }
0x19ec   :  { %v9018_v4 = vsel %vm559_vm2, %v9004_v25, 0 }
0x19ed   :  { %v9089_v40 = vand.u32 4294901760, %v9018_v4 }
0x19ef   :  { %v9090_v19 = vsub.f32 %v9018_v4, %v9089_v40 }
0x19f1   :  { %v9091_v63 = vand.u32 4294901760, %v9090_v19 }
0x19f3   :  { %v9092_v7 = vsub.f32 %v9090_v19, %v9091_v63 }
0x19f5   :  { %v9093_v43 = vand.u32 4294901760, %v9092_v7 }
0x19f7   :  { %12138 = vmatmul.mubr.f32.vlgmr.msra.gmra.mrb[24].mxu0 %v9093_v43 }
0x19f8   :  { %13109 = vmatpush3.bf16.msra.mxu0 %v13108_v2  ;;  %12148 = vmatprep.mubr.msk.f32.mxu0 %vm13594_vm7, %v13595_v44 }
0x19f9   :  { %13110 = vmatprep.subr.bf16.mxu0 %v13593_v29 }
0x19fc   :  { %13112 = vmatpush3.bf16.msra.mxu0 %v13111_v36 }
0x19fd   :  { %13113 = vmatprep.subr.bf16.mxu0 %v13593_v29 }
0x19ff   :  { %12149 = vmatmul.mubr.f32.vlgmr.msra.gmra.mrb[24].mxu0 %v9089_v40 }
0x1a00   :  { %13115 = vmatpush3.bf16.msra.mxu0 %v13114_v28  ;;  %12159 = vmatprep.mubr.msk.f32.mxu0 %vm13594_vm7, %v13595_v44 }
0x1a01   :  { %13116 = vmatprep.subr.bf16.mxu0 %v13593_v29 }
0x1a04   :  { %13118 = vmatpush3.bf16.msra.mxu0 %v13117_v56 }
0x1a05   :  { %13119 = vmatprep.subr.bf16.mxu0 %v13593_v29 }
0x1a07   :  { %12160 = vmatmul.mubr.f32.vlgmr.msra.gmra.mrb[24].mxu0 %v9090_v19 }
0x1a08   :  { %13121 = vmatpush3.bf16.msra.mxu0 %v15277_v27  ;;  %12170 = vmatprep.mubr.msk.f32.mxu0 %vm13594_vm7, %v13595_v44 }
0x1a09   :  { %13122 = vmatprep.subr.bf16.mxu0 %v13593_v29 }
0x1a0c   :  { %13124 = vmatpush3.bf16.msra.mxu0 %v15288_v38 }
0x1a0d   :  { %13125 = vmatprep.subr.bf16.mxu0 %v13593_v29 }
0x1a0f   :  { %12171 = vmatmul.mubr.f32.vlgmr.msra.gmra.mrb[24].mxu0 %v9091_v63 }
0x1a10   :  { %13127 = vmatpush3.bf16.msra.mxu0 %v13126_v34  ;;  %12181 = vmatprep.mubr.msk.f32.mxu0 %vm13594_vm7, %v13595_v44 }
0x1a11   :  { %13128 = vmatprep.subr.bf16.mxu0 %v13593_v29 }
0x1a14   :  { %13130 = vmatpush3.bf16.msra.mxu0 %v15305_v10 }
0x1a15   :  { %13131 = vmatprep.subr.bf16.mxu0 %v13593_v29 }
0x1a17   :  { %12182 = vmatmul.mubr.f32.vlgmr.msra.gmra.mrb[24].mxu0 %v9089_v40 }
0x1a18   :  { %13133 = vmatpush3.bf16.msra.mxu0 %v15277_v27  ;;  %12192 = vmatprep.mubr.msk.f32.mxu0 %vm13594_vm7, %v13595_v44  ;;  %v9011_v27 = vld [vmem:[%s15384_s1 + $0x248] sm:$0xff] }
0x1a19   :  { %13134 = vmatprep.subr.bf16.mxu0 %v13593_v29  ;;  %v9517_v60 = vand.u32 4294901760, %v9011_v27 }
0x1a1b   :  { %v13138_v54 = vpack.c.bf16 %v9517_v60, %v9514_v47  ;;  %v9599_v24 = vsub.f32 %v9011_v27, %v9517_v60 }
0x1a1c   :  { %13136 = vmatpush3.bf16.msra.mxu0 %v15288_v38  ;;  %v9593_v38 = vand.u32 4294901760, %v9592_v6 }
0x1a1d   :  { %13137 = vmatprep.subr.bf16.mxu0 %v13593_v29  ;;  %v9600_v33 = vand.u32 4294901760, %v9599_v24  ;;  %v13144_v23 = vpack.c.bf16 %v9599_v24, %v9592_v6 }
0x1a1e   :  { %v9594_v46 = vsub.f32 %v9592_v6, %v9593_v38 }
0x1a1f   :  { %12193 = vmatmul.mubr.f32.vlgmr.msra.gmra.mrb[24].mxu0 %v9089_v40  ;;  %v9601_v51 = vsub.f32 %v9599_v24, %v9600_v33  ;;  %v13150_v59 = vpack.c.bf16 %v9600_v33, %v9593_v38 }
0x1a20   :  { %12199 = vmatprep.mubr.msk.f32.mxu0 %vm13594_vm7, %v13595_v44  ;;  %13139 = vmatpush3.bf16.msra.mxu0 %v13138_v54  ;;  %v9595_v62 = vand.u32 4294901760, %v9594_v46 }
0x1a21   :  { %13140 = vmatprep.subr.bf16.mxu0 %v13593_v29  ;;  %v9602_v48 = vand.u32 4294901760, %v9601_v51 }
0x1a23   :  { %v13141_v2 = vpack.c.bf16 %v9602_v48, %v9595_v62 }
0x1af2   :  { %v9501_v16 = vpop.f32.mrb[24].mxu0 }
0x1af3   :  { %v13189_v36 = vadd.f32 %v10015_v15, %v9501_v16  ;;  %v12194_v28 = vpop.f32.mrb[25].mxu0 }
0x1af5   :  { %v9505_v56 = vmax.f32 %v13189_v36, 0.0 }
0x1af7   :  { %v9511_v34 = vsel %vm3004_vm5, %v9505_v56, 0 }
0x1af8   :  { %v9580_v10 = vand.u32 4294901760, %v9511_v34 }
0x1afa   :  { %v9581_v26 = vsub.f32 %v9511_v34, %v9580_v10 }
0x1afc   :  { %v9582_v35 = vand.u32 4294901760, %v9581_v26 }
0x1afe   :  { %v9583_v37 = vsub.f32 %v9581_v26, %v9582_v35 }
0x1b00   :  { %v9584_v18 = vand.u32 4294901760, %v9583_v37 }
0x1b02   :  { %12200 = vmatmul.mubr.f32.vlgmr.msra.gmra.mrb[26].mxu0 %v9584_v18 }
0x1b03   :  { %13142 = vmatpush3.bf16.msra.mxu0 %v13141_v2  ;;  %12206 = vmatprep.mubr.msk.f32.mxu0 %vm13594_vm7, %v13595_v44 }
0x1b04   :  { %13143 = vmatprep.subr.bf16.mxu0 %v13593_v29 }
0x1b0a   :  { %12207 = vmatmul.mubr.f32.vlgmr.msra.gmra.mrb[26].mxu0 %v9580_v10 }
0x1b0b   :  { %13145 = vmatpush3.bf16.msra.mxu0 %v13144_v23  ;;  %12213 = vmatprep.mubr.msk.f32.mxu0 %vm13594_vm7, %v13595_v44 }
0x1b0c   :  { %13146 = vmatprep.subr.bf16.mxu0 %v13593_v29 }
0x1b12   :  { %12214 = vmatmul.mubr.f32.vlgmr.msra.gmra.mrb[26].mxu0 %v9581_v26 }
0x1b13   :  { %13148 = vmatpush3.bf16.msra.mxu0 %v13138_v54  ;;  %12220 = vmatprep.mubr.msk.f32.mxu0 %vm13594_vm7, %v13595_v44 }
0x1b14   :  { %13149 = vmatprep.subr.bf16.mxu0 %v13593_v29 }
0x1b1a   :  { %12221 = vmatmul.mubr.f32.vlgmr.msra.gmra.mrb[26].mxu0 %v9582_v35 }
0x1b1b   :  { %13151 = vmatpush3.bf16.msra.mxu0 %v13150_v59  ;;  %12227 = vmatprep.mubr.msk.f32.mxu0 %vm13594_vm7, %v13595_v44 }
0x1b1c   :  { %13152 = vmatprep.subr.bf16.mxu0 %v13593_v29 }
0x1b22   :  { %12228 = vmatmul.mubr.f32.vlgmr.msra.gmra.mrb[26].mxu0 %v9580_v10 }
0x1b23   :  { %13154 = vmatpush3.bf16.msra.mxu0 %v13138_v54  ;;  %12234 = vmatprep.mubr.msk.f32.mxu0 %vm13594_vm7, %v13595_v44 }
0x1b2a   :  { %12235 = vmatmul.mubr.f32.vlgmr.msra.gmra.mrb[26].mxu0 %v9580_v10 }
0x1bfd   :  { %v9968_v8 = vpop.f32.mrb[26].mxu0 }
0x1bfe   :  { %v13190_v5 = vadd.f32 %v10016_v11, %v9968_v8  ;;  %v12236_v55 = vpop.f32.mrb[27].mxu0 }
0x1c00   :  { %9972 = vst [vmem:[#allocation2] sm:$0x3] %v13190_v5 }
0x1c01   :  { %13572 = shalt.err (!%p13569_p4)
}
0x1c02   :  { %s13573_s26 = scalar_lea.hbm %s15385_s2, 32 }
0x1c03   :  { %p13574_p5 = scmp.ne.s32.totalorder %s15385_s2, %s13573_s26  ;;  %p13577_p6 = scmp.lt.u32.totalorder %s13573_s26, %s15385_s2 }
0x1c05   :  { %p13579_p7 = pnand %p13577_p6, %p13574_p5 }
0x1c07   :  { %13582 = shalt.err (!%p13579_p7)
}
0x1c08   :  { %9982 = dma.vmem_to_hbm [thread:$0]  %s9980_s19, 32, %s15385_s2, [#allocation3]  }
0x1c09   :  { %13583 = dma.done.wait [#allocation3], 32  }
0x1c0a   :  { %13584 = vsyncadd [#allocation3], 4294967264 }
0x1c0b   :  { %9990 = vsyncpa [#allocation3], 1 }

</bundles_post_ra>
